<compile_context>
chip_gen: v5e
topology: v5e:2x2
jax: 0.10.0
libtpu: 0.0.40
codegen_flags: <defaults>
</compile_context>

<pallas_src>
import functools

import numpy as np
import jax
import jax.numpy as jnp
from jax.experimental import pallas as pl
from jax.experimental.pallas import tpu as pltpu

_EPS = 1e-5  # nn.BatchNorm2d default eps


# ----------------------------------------------------------------------------
# small helpers
# ----------------------------------------------------------------------------
def _round_up(x, m):
    return ((x + m - 1) // m) * m


def _largest_divisor_at_most(n, cap):
    cap = max(1, min(n, int(cap)))
    for d in range(cap, 0, -1):
        if n % d == 0:
            return d
    return n


def _vmem_capacity_bytes():
    try:
        cap = getattr(pltpu.get_tpu_info(), "vmem_capacity_bytes", None)
        if cap:
            return int(cap)
    except Exception:
        pass
    return 64 * 1024 * 1024  # conservative default (v7x per-TensorCore VMEM)


def _pick_row_tile(N, H, Wp, Cin_p, Cout_p, vmem_cap):
    # rough live bytes per output row inside one tile: input band + dy-folded concat
    # (bf16), acc1 / rolled dot / acc2 (f32), hp + its concat (bf16), output block (bf16)
    per_row = Wp * (Cin_p * 2 * 4 + Cout_p * (4 + 4 + 2 + 3 * 2 + 4 + 2))
    cap_rows = max(8, (vmem_cap // 3) // max(per_row, 1))
    th = _largest_divisor_at_most(H, min(cap_rows, 256))
    # make sure there are >= 2 grid points so both v7x TensorCores get work
    if N * (H // th) < 2 and th > 1:
        th = _largest_divisor_at_most(H, max(1, th // 2))
    return th


# ----------------------------------------------------------------------------
# Pallas kernel: double_conv (conv3x3->BN->ReLU x2) + (1x1 conv->BN) residual
# ----------------------------------------------------------------------------
def _double_conv_kernel(W, Wp, TH,
                        xt_ref,   # (1, TH+4, Wp, Cin_p)   bf16 halo row band
                        w1_ref,   # (3, 3*Cin_p, Cout_p)   bf16, BN1+bias folded (K = dy-major)
                        t1_ref,   # (1, Cout_p)            f32 shift
                        w2_ref,   # (3, 3*Cout_p, Cout_p)  bf16, BN2+bias folded
                        t2_ref,   # (1, Cout_p)            f32 shift
                        wc_ref,   # (Cin_p, Cout_p)        bf16, BNc folded (or identity)
                        tc_ref,   # (1, Cout_p)            f32 shift
                        o_ref):   # (1, TH, Wp, Cout_p)    bf16
    Cin_p = xt_ref.shape[-1]
    Cout_p = o_ref.shape[-1]
    Mfull = (TH + 4) * Wp     # flattened rows of the input band
    Mh = (TH + 2) * Wp        # flattened rows of the conv1 intermediate (1-row halo/side)
    Mo = TH * Wp              # flattened rows of this tile's output

    # Load the halo band once; (row, width) flattened onto the sublane axis.
    slab = xt_ref[0].reshape(Mfull, Cin_p)

    # ---- conv1: fold the 3 dy taps into K (aligned Wp-multiple slices -> no shifts),
    #      3 MXU dots with K = 3*Cin_p; the 2 dx taps are realigned via f32 output rolls.
    cat1 = jnp.concatenate(
        [slab[0:Mh], slab[Wp:Wp + Mh], slab[2 * Wp:2 * Wp + Mh]], axis=1)
    acc1 = jnp.dot(cat1, w1_ref[0], preferred_element_type=jnp.float32)
    for dx in (1, 2):
        y = jnp.dot(cat1, w1_ref[dx], preferred_element_type=jnp.float32)
        acc1 = acc1 + pltpu.roll(y, Mh - dx, 0)        # y[i] <- y[i + dx]
    h1 = jnp.maximum(acc1 + t1_ref[...], 0.0)

    # ---- zero lanes that are not real conv outputs: columns >= W (width padding / roll
    #      wrap) everywhere, plus the global zero-pad rows on the boundary tiles only.
    #      Mask built on a small (TH+2, Wp) array -> one broadcast multiply on the slab.
    rid = jax.lax.broadcasted_iota(jnp.int32, (TH + 2, Wp), 0)
    cid = jax.lax.broadcasted_iota(jnp.int32, (TH + 2, Wp), 1)
    not_first = pl.program_id(1) > 0
    not_last = pl.program_id(1) < pl.num_programs(1) - 1
    keep = ((cid < W)
            & jnp.logical_or(rid > 0, not_first)
            & jnp.logical_or(rid < TH + 1, not_last))
    mask = keep.astype(jnp.float32)[:, :, None]
    h1 = (h1.reshape(TH + 2, Wp, Cout_p) * mask).reshape(Mh, Cout_p)

    # Shift right by one flattened element -> padded-column coordinates for conv2
    # (columns 0 and W+1 become the zero pad); cast the intermediate to bf16 for the MXU.
    hp = pltpu.roll(h1, 1, 0).astype(jnp.bfloat16)     # hp[i] <- h1[i - 1]

    # ---- conv2: identical dy-fold + 3 dots on the in-register intermediate.
    cat2 = jnp.concatenate(
        [hp[0:Mo], hp[Wp:Wp + Mo], hp[2 * Wp:2 * Wp + Mo]], axis=1)
    acc2 = jnp.dot(cat2, w2_ref[0], preferred_element_type=jnp.float32)
    for dx in (1, 2):
        y = jnp.dot(cat2, w2_ref[dx], preferred_element_type=jnp.float32)
        acc2 = acc2 + pltpu.roll(y, Mo - dx, 0)
    h2 = jnp.maximum(acc2 + t2_ref[...], 0.0)

    # ---- residual: 1x1 conv (+ folded BN) on the original rows of this tile (no ReLU).
    xres = slab[2 * Wp:2 * Wp + Mo]
    res = jnp.dot(xres, wc_ref[...], preferred_element_type=jnp.float32)
    res = pltpu.roll(res, Mo - 1, 0) + tc_ref[...]     # res[i] <- res[i + 1] (column shift)

    o_ref[0] = (h2 + res).reshape(TH, Wp, Cout_p).astype(o_ref.dtype)


# ----------------------------------------------------------------------------
# Wrapper: BN folding, channel/width padding, halo pre-tiling, pallas_call
# ----------------------------------------------------------------------------
def _fold_bn(gamma, beta, mean, var, bias=None):
    scale = gamma / jnp.sqrt(var + _EPS)
    shift = beta - mean * scale
    if bias is not None:
        shift = shift + bias * scale
    return scale.astype(jnp.float32), shift.astype(jnp.float32)


def _pack_conv3x3(w, scale, Cin_p, Cout_p):
    """(Cout, Cin, 3, 3) OIHW -> (3[dx], 3*Cin_p [dy-major K], Cout_p) bf16."""
    Cout, Cin = w.shape[0], w.shape[1]
    wt = jnp.transpose(w * scale[:, None, None, None], (2, 3, 1, 0))   # (dy, dx, ci, co)
    wt = jnp.pad(wt, ((0, 0), (0, 0), (0, Cin_p - Cin), (0, Cout_p - Cout)))
    return jnp.transpose(wt, (1, 0, 2, 3)).reshape(3, 3 * Cin_p, Cout_p).astype(jnp.bfloat16)


def double_conv_pallas(x, p, row_tile=None, out_dtype=None):
    """x: (N, Cin, H, W) float32 -> (N, Cout, H, W) (bf16 unless out_dtype is given)."""
    N, Cin, H, W = x.shape
    Cout = p['w1'].shape[0]
    Cin_p = _round_up(max(Cin, 1), 128)
    Cout_p = _round_up(max(Cout, 1), 128)
    Wp = _round_up(W + 2, 16)
    assert Wp - W >= 2, "need >=2 right-pad columns for roll-wrap safety"

    vmem_cap = _vmem_capacity_bytes()
    if row_tile is None:
        TH = _pick_row_tile(N, H, Wp, Cin_p, Cout_p, vmem_cap)
    else:
        TH = _largest_divisor_at_most(H, row_tile)
    T = H // TH

    # NCHW -> NHWC; pad 2 rows top/bottom, 1 left col, Wp-W-1 right cols, channels to
    # Cin_p; cast to bf16; pre-tile into overlapping row bands with a +4-row halo.
    x_nhwc = jnp.transpose(x, (0, 2, 3, 1))
    xpad = jnp.pad(x_nhwc, ((0, 0), (2, 2), (1, Wp - W - 1),
                            (0, Cin_p - Cin))).astype(jnp.bfloat16)
    rows = jnp.arange(T)[:, None] * TH + jnp.arange(TH + 4)[None, :]
    x_tiles = jnp.take(xpad, rows, axis=1).reshape(N * T, TH + 4, Wp, Cin_p)

    # Fold BN (inference running stats) + conv bias into the weights / per-channel shifts.
    s1, t1 = _fold_bn(p['bn1_gamma'], p['bn1_beta'], p['bn1_mean'], p['bn1_var'], p['b1'])
    s2, t2 = _fold_bn(p['bn2_gamma'], p['bn2_beta'], p['bn2_mean'], p['bn2_var'], p['b2'])
    w1k = _pack_conv3x3(p['w1'], s1, Cin_p, Cout_p)
    w2k = _pack_conv3x3(p['w2'], s2, Cout_p, Cout_p)

    if Cin != Cout:
        sc, tc = _fold_bn(p['bnc_gamma'], p['bnc_beta'], p['bnc_mean'], p['bnc_var'])
        wck = jnp.pad(jnp.transpose(p['wc'][:, :, 0, 0] * sc[:, None], (1, 0)),
                      ((0, Cin_p - Cin), (0, Cout_p - Cout))).astype(jnp.bfloat16)
    else:
        # identity skip in PyTorch when channel counts match (bf16-rounded here)
        wck = jnp.eye(Cin_p, Cout_p, dtype=jnp.bfloat16)
        tc = jnp.zeros((Cout,), jnp.float32)

    def shift_vec(t):
        return jnp.pad(t, (0, Cout_p - Cout)).reshape(1, Cout_p).astype(jnp.float32)

    kernel = functools.partial(_double_conv_kernel, W, Wp, TH)
    vmem_limit = int(min(max(32 * 1024 * 1024, vmem_cap // 2), 96 * 1024 * 1024))

    out = pl.pallas_call(
        kernel,
        out_shape=jax.ShapeDtypeStruct((N, H, Wp, Cout_p), jnp.bfloat16),
        grid=(N, T),
        in_specs=[
            pl.BlockSpec((1, TH + 4, Wp, Cin_p), lambda n, t: (n * T + t, 0, 0, 0)),
            pl.BlockSpec((3, 3 * Cin_p, Cout_p), lambda n, t: (0, 0, 0)),
            pl.BlockSpec((1, Cout_p), lambda n, t: (0, 0)),
            pl.BlockSpec((3, 3 * Cout_p, Cout_p), lambda n, t: (0, 0, 0)),
            pl.BlockSpec((1, Cout_p), lambda n, t: (0, 0)),
            pl.BlockSpec((Cin_p, Cout_p), lambda n, t: (0, 0)),
            pl.BlockSpec((1, Cout_p), lambda n, t: (0, 0)),
        ],
        out_specs=pl.BlockSpec((1, TH, Wp, Cout_p), lambda n, t: (n, t, 0, 0)),
        compiler_params=pltpu.CompilerParams(
            dimension_semantics=("parallel", "parallel"),
            vmem_limit_bytes=vmem_limit),
    )(x_tiles, w1k, shift_vec(t1), w2k, shift_vec(t2), wck, shift_vec(tc))

    out = jnp.transpose(out[:, :, :W, :Cout], (0, 3, 1, 2))   # crop padding, NHWC -> NCHW
    if out_dtype is not None:
        out = out.astype(out_dtype)
    return out


# ----------------------------------------------------------------------------
# Glue (plain JAX): separable bilinear x2 upsample (align_corners=True), pad, concat
# ----------------------------------------------------------------------------
def _bilinear_upsample_x2_align_corners(x):
    """x: (N, C, H, W) -> (N, C, 2H, 2W), matching nn.Upsample(2,'bilinear',True)."""
    N, C, H, W = x.shape
    Ho, Wo = 2 * H, 2 * W

    def axis_coords(n_in, n_out):
        if n_in == 1:
            z = jnp.zeros((n_out,), jnp.int32)
            return z, z, jnp.zeros((n_out,), jnp.float32)
        pos = jnp.arange(n_out, dtype=jnp.float32) * ((n_in - 1) / (n_out - 1))
        i0 = jnp.floor(pos).astype(jnp.int32)
        i1 = jnp.minimum(i0 + 1, n_in - 1)
        return i0, i1, pos - i0.astype(jnp.float32)

    y0, y1, wy = axis_coords(H, Ho)
    x0, x1, wx = axis_coords(W, Wo)
    wy = wy[None, None, :, None]
    wx = wx[None, None, None, :]
    xh = x[:, :, y0, :] * (1.0 - wy) + x[:, :, y1, :] * wy
    return xh[:, :, :, x0] * (1.0 - wx) + xh[:, :, :, x1] * wx


def _up_glue(x1, x2):
    x1u = _bilinear_upsample_x2_align_corners(x1)
    diffY = x2.shape[2] - x1u.shape[2]
    diffX = x2.shape[3] - x1u.shape[3]
    x1u = jnp.pad(x1u, ((0, 0), (0, 0),
                        (diffY // 2, diffY - diffY // 2),
                        (diffX // 2, diffX - diffX // 2)))
    return jnp.concatenate([x2, x1u], axis=1)  # channel dim (NCHW)


def up_forward(x1, x2, params, row_tile=None, out_dtype=None):
    x = _up_glue(x1, x2)
    return double_conv_pallas(x, params, row_tile=row_tile, out_dtype=out_dtype)


# ----------------------------------------------------------------------------
# Deterministic parameter init (shapes implied by up(in_ch, out_ch))
# ----------------------------------------------------------------------------
def init_params(key, in_ch, out_ch):
    ks = jax.random.split(key, 18)
    p = {}
    p['w1'] = 0.1 * jax.random.normal(ks[0], (out_ch, in_ch, 3, 3), jnp.float32)
    p['b1'] = 0.1 * jax.random.normal(ks[1], (out_ch,), jnp.float32)
    p['bn1_gamma'] = 1.0 + 0.1 * jax.random.normal(ks[2], (out_ch,), jnp.float32)
    p['bn1_beta'] = 0.1 * jax.random.normal(ks[3], (out_ch,), jnp.float32)
    p['bn1_mean'] = 0.1 * jax.random.normal(ks[4], (out_ch,), jnp.float32)
    p['bn1_var'] = jax.random.uniform(ks[5], (out_ch,), jnp.float32, 0.5, 1.5)

    p['w2'] = 0.1 * jax.random.normal(ks[6], (out_ch, out_ch, 3, 3), jnp.float32)
    p['b2'] = 0.1 * jax.random.normal(ks[7], (out_ch,), jnp.float32)
    p['bn2_gamma'] = 1.0 + 0.1 * jax.random.normal(ks[8], (out_ch,), jnp.float32)
    p['bn2_beta'] = 0.1 * jax.random.normal(ks[9], (out_ch,), jnp.float32)
    p['bn2_mean'] = 0.1 * jax.random.normal(ks[10], (out_ch,), jnp.float32)
    p['bn2_var'] = jax.random.uniform(ks[11], (out_ch,), jnp.float32, 0.5, 1.5)

    p['wc'] = 0.1 * jax.random.normal(ks[12], (out_ch, in_ch, 1, 1), jnp.float32)
    p['bnc_gamma'] = 1.0 + 0.1 * jax.random.normal(ks[13], (out_ch,), jnp.float32)
    p['bnc_beta'] = 0.1 * jax.random.normal(ks[14], (out_ch,), jnp.float32)
    p['bnc_mean'] = 0.1 * jax.random.normal(ks[15], (out_ch,), jnp.float32)
    p['bnc_var'] = jax.random.uniform(ks[16], (out_ch,), jnp.float32, 0.5, 1.5)
    return p


# ----------------------------------------------------------------------------
# Pure-JAX f32 reference (XLA convs) for a correctness cross-check
# ----------------------------------------------------------------------------
def _ref_double_conv(x, p):
    def conv(inp, w, pad):
        return jax.lax.conv_general_dilated(
            inp, w, (1, 1), [(pad, pad), (pad, pad)],
            dimension_numbers=('NCHW', 'OIHW', 'NCHW'))

    def bn(inp, g, b, m, v):
        g = g[None, :, None, None]
        b = b[None, :, None, None]
        m = m[None, :, None, None]
        v = v[None, :, None, None]
        return (inp - m) / jnp.sqrt(v + _EPS) * g + b

    h = conv(x, p['w1'], 1) + p['b1'][None, :, None, None]
    h = jax.nn.relu(bn(h, p['bn1_gamma'], p['bn1_beta'], p['bn1_mean'], p['bn1_var']))
    h = conv(h, p['w2'], 1) + p['b2'][None, :, None, None]
    h = jax.nn.relu(bn(h, p['bn2_gamma'], p['bn2_beta'], p['bn2_mean'], p['bn2_var']))
    if x.shape[1] != h.shape[1]:
        res = bn(conv(x, p['wc'], 0),
                 p['bnc_gamma'], p['bnc_beta'], p['bnc_mean'], p['bnc_var'])
    else:
        res = x
    return h + res


if __name__ == "__main__":
    in_ch, out_ch = 8, 4
    key = jax.random.PRNGKey(0)
    k1, k2, kp = jax.random.split(key, 3)

    # x1 is the low-res decoder feature (in_ch//2 channels), x2 the skip feature.
    x1 = jax.random.normal(k1, (2, in_ch // 2, 8, 8), jnp.float32)
    x2 = jax.random.normal(k2, (2, in_ch // 2, 16, 16), jnp.float32)
    params = init_params(kp, in_ch, out_ch)

    # row_tile=8 -> grid (N=2, T=2), exercising the halo-band tiling + boundary masking.
    up_fn = jax.jit(functools.partial(up_forward, row_tile=8))
    out = jax.block_until_ready(up_fn(x1, x2, params))

    # cross-check against a plain-JAX f32 reference of the same forward pass
    # (bf16 MXU operands + bf16 output -> looser tolerance than pure f32)
    xcat = _up_glue(x1, x2)
    ref = _ref_double_conv(xcat, params)
    np.testing.assert_allclose(np.asarray(jnp.asarray(out, jnp.float32)),
                               np.asarray(ref), rtol=5e-2, atol=5e-2)

    print("KERNEL_OK")
</pallas_src>

<mosaic_0001>
module attributes {stable_mosaic.version = 11 : i64} {
  func.func @_double_conv_kernel(%arg0: i32, %arg1: i32, %arg2: memref<1x12x32x128xbf16, #tpu.memory_space<vmem>>, %arg3: memref<3x384x128xbf16, #tpu.memory_space<vmem>>, %arg4: memref<1x128xf32, #tpu.memory_space<vmem>>, %arg5: memref<3x384x128xbf16, #tpu.memory_space<vmem>>, %arg6: memref<1x128xf32, #tpu.memory_space<vmem>>, %arg7: memref<128x128xbf16, #tpu.memory_space<vmem>>, %arg8: memref<1x128xf32, #tpu.memory_space<vmem>>, %arg9: memref<1x8x32x128xbf16, #tpu.memory_space<vmem>>) attributes {dimension_semantics = [#tpu.dimension_semantics<parallel>, #tpu.dimension_semantics<parallel>], iteration_bounds = array<i64: 2, 2>, scalar_prefetch = 0 : i64, scratch_operands = 0 : i64, tpu.core_type = #tpu.core_type<tc>, window_params = [{transform_indices = @transform_0, window_bounds = array<i64: 1, 12, 32, 128>}, {pipeline_mode = #tpu.pipeline_mode<synchronous>, transform_indices = @transform_1, window_bounds = array<i64: 3, 384, 128>}, {pipeline_mode = #tpu.pipeline_mode<synchronous>, transform_indices = @transform_2, window_bounds = array<i64: 1, 128>}, {pipeline_mode = #tpu.pipeline_mode<synchronous>, transform_indices = @transform_3, window_bounds = array<i64: 3, 384, 128>}, {pipeline_mode = #tpu.pipeline_mode<synchronous>, transform_indices = @transform_4, window_bounds = array<i64: 1, 128>}, {pipeline_mode = #tpu.pipeline_mode<synchronous>, transform_indices = @transform_5, window_bounds = array<i64: 128, 128>}, {pipeline_mode = #tpu.pipeline_mode<synchronous>, transform_indices = @transform_6, window_bounds = array<i64: 1, 128>}, {transform_indices = @transform_7, window_bounds = array<i64: 1, 8, 32, 128>}]} {
    %c0 = arith.constant 0 : index
    %c0_0 = arith.constant 0 : index
    %c0_1 = arith.constant 0 : index
    %c0_2 = arith.constant 0 : index
    %0 = vector.load %arg2[%c0, %c0_0, %c0_1, %c0_2] : memref<1x12x32x128xbf16, #tpu.memory_space<vmem>>, vector<1x12x32x128xbf16>
    %1 = vector.shape_cast %0 : vector<1x12x32x128xbf16> to vector<12x32x128xbf16>
    %2 = vector.shape_cast %1 : vector<12x32x128xbf16> to vector<384x128xbf16>
    %3 = vector.extract_strided_slice %2 {offsets = [0, 0], sizes = [320, 128], strides = [1, 1]} : vector<384x128xbf16> to vector<320x128xbf16>
    %4 = vector.extract_strided_slice %2 {offsets = [32, 0], sizes = [320, 128], strides = [1, 1]} : vector<384x128xbf16> to vector<320x128xbf16>
    %5 = vector.extract_strided_slice %2 {offsets = [64, 0], sizes = [320, 128], strides = [1, 1]} : vector<384x128xbf16> to vector<320x128xbf16>
    %6 = tpu.concatenate %3, %4, %5 in 1 : vector<320x128xbf16>, vector<320x128xbf16>, vector<320x128xbf16> -> vector<320x384xbf16>
    %c0_3 = arith.constant 0 : index
    %c0_4 = arith.constant 0 : index
    %c0_5 = arith.constant 0 : index
    %7 = vector.load %arg3[%c0_3, %c0_4, %c0_5] : memref<3x384x128xbf16, #tpu.memory_space<vmem>>, vector<1x384x128xbf16>
    %8 = vector.shape_cast %7 : vector<1x384x128xbf16> to vector<384x128xbf16>
    %cst = arith.constant dense<0.000000e+00> : vector<320x128xf32>
    %9 = tpu.matmul %6, %8, %cst {dimension_numbers = #tpu.dot_dimension_numbers<[1], [0], [0], [1], [0, 0, 1, 1], [], []>} : vector<320x384xbf16>, vector<384x128xbf16>, vector<320x128xf32> -> vector<320x128xf32>
    %c1 = arith.constant 1 : index
    %c0_6 = arith.constant 0 : index
    %c0_7 = arith.constant 0 : index
    %10 = vector.load %arg3[%c1, %c0_6, %c0_7] : memref<3x384x128xbf16, #tpu.memory_space<vmem>>, vector<1x384x128xbf16>
    %11 = vector.shape_cast %10 : vector<1x384x128xbf16> to vector<384x128xbf16>
    %cst_8 = arith.constant dense<0.000000e+00> : vector<320x128xf32>
    %12 = tpu.matmul %6, %11, %cst_8 {dimension_numbers = #tpu.dot_dimension_numbers<[1], [0], [0], [1], [0, 0, 1, 1], [], []>} : vector<320x384xbf16>, vector<384x128xbf16>, vector<320x128xf32> -> vector<320x128xf32>
    %c319_i32 = arith.constant 319 : i32
    %13 = tpu.dynamic_rotate %12 by %c319_i32 dim 0 : vector<320x128xf32>, i32 -> vector<320x128xf32>
    %14 = arith.addf %9, %13 : vector<320x128xf32>
    %c2 = arith.constant 2 : index
    %c0_9 = arith.constant 0 : index
    %c0_10 = arith.constant 0 : index
    %15 = vector.load %arg3[%c2, %c0_9, %c0_10] : memref<3x384x128xbf16, #tpu.memory_space<vmem>>, vector<1x384x128xbf16>
    %16 = vector.shape_cast %15 : vector<1x384x128xbf16> to vector<384x128xbf16>
    %cst_11 = arith.constant dense<0.000000e+00> : vector<320x128xf32>
    %17 = tpu.matmul %6, %16, %cst_11 {dimension_numbers = #tpu.dot_dimension_numbers<[1], [0], [0], [1], [0, 0, 1, 1], [], []>} : vector<320x384xbf16>, vector<384x128xbf16>, vector<320x128xf32> -> vector<320x128xf32>
    %c318_i32 = arith.constant 318 : i32
    %18 = tpu.dynamic_rotate %17 by %c318_i32 dim 0 : vector<320x128xf32>, i32 -> vector<320x128xf32>
    %19 = arith.addf %14, %18 : vector<320x128xf32>
    %c0_12 = arith.constant 0 : index
    %c0_13 = arith.constant 0 : index
    %20 = vector.load %arg4[%c0_12, %c0_13] : memref<1x128xf32, #tpu.memory_space<vmem>>, vector<1x128xf32>
    %21 = vector.broadcast %20 : vector<1x128xf32> to vector<320x128xf32>
    %22 = arith.addf %19, %21 : vector<320x128xf32>
    %cst_14 = arith.constant 0.000000e+00 : f32
    %23 = vector.broadcast %cst_14 : f32 to vector<320x128xf32>
    %24 = arith.maximumf %22, %23 : vector<320x128xf32>
    %25 = tpu.iota {dimensions = array<i32: 0>} : vector<10x32xi32>
    %26 = tpu.iota {dimensions = array<i32: 1>} : vector<10x32xi32>
    %c0_i32 = arith.constant 0 : i32
    %27 = arith.cmpi sgt, %arg1, %c0_i32 : i32
    %c1_i32 = arith.constant 1 : i32
    %28 = arith.cmpi slt, %arg1, %c1_i32 : i32
    %c16_i32 = arith.constant 16 : i32
    %29 = vector.broadcast %c16_i32 : i32 to vector<10x32xi32>
    %30 = arith.cmpi slt, %26, %29 : vector<10x32xi32>
    %c0_i32_15 = arith.constant 0 : i32
    %31 = vector.broadcast %c0_i32_15 : i32 to vector<10x32xi32>
    %32 = arith.cmpi sgt, %25, %31 : vector<10x32xi32>
    %33 = vector.broadcast %27 : i1 to vector<10x32xi1>
    %34 = arith.ori %32, %33 : vector<10x32xi1>
    %35 = arith.andi %30, %34 : vector<10x32xi1>
    %c9_i32 = arith.constant 9 : i32
    %36 = vector.broadcast %c9_i32 : i32 to vector<10x32xi32>
    %37 = arith.cmpi slt, %25, %36 : vector<10x32xi32>
    %38 = vector.broadcast %28 : i1 to vector<10x32xi1>
    %39 = arith.ori %37, %38 : vector<10x32xi1>
    %40 = arith.andi %35, %39 : vector<10x32xi1>
    %41 = arith.extui %40 : vector<10x32xi1> to vector<10x32xi32>
    %42 = arith.sitofp %41 : vector<10x32xi32> to vector<10x32xf32>
    %43 = vector.shape_cast %42 : vector<10x32xf32> to vector<10x32x1xf32>
    %44 = vector.shape_cast %24 : vector<320x128xf32> to vector<10x32x128xf32>
    %45 = vector.broadcast %43 : vector<10x32x1xf32> to vector<10x32x128xf32>
    %46 = arith.mulf %44, %45 : vector<10x32x128xf32>
    %47 = vector.shape_cast %46 : vector<10x32x128xf32> to vector<320x128xf32>
    %c1_i32_16 = arith.constant 1 : i32
    %48 = tpu.dynamic_rotate %47 by %c1_i32_16 dim 0 : vector<320x128xf32>, i32 -> vector<320x128xf32>
    %49 = arith.truncf %48 : vector<320x128xf32> to vector<320x128xbf16>
    %50 = vector.extract_strided_slice %49 {offsets = [0, 0], sizes = [256, 128], strides = [1, 1]} : vector<320x128xbf16> to vector<256x128xbf16>
    %51 = vector.extract_strided_slice %49 {offsets = [32, 0], sizes = [256, 128], strides = [1, 1]} : vector<320x128xbf16> to vector<256x128xbf16>
    %52 = vector.extract_strided_slice %49 {offsets = [64, 0], sizes = [256, 128], strides = [1, 1]} : vector<320x128xbf16> to vector<256x128xbf16>
    %53 = tpu.concatenate %50, %51, %52 in 1 : vector<256x128xbf16>, vector<256x128xbf16>, vector<256x128xbf16> -> vector<256x384xbf16>
    %c0_17 = arith.constant 0 : index
    %c0_18 = arith.constant 0 : index
    %c0_19 = arith.constant 0 : index
    %54 = vector.load %arg5[%c0_17, %c0_18, %c0_19] : memref<3x384x128xbf16, #tpu.memory_space<vmem>>, vector<1x384x128xbf16>
    %55 = vector.shape_cast %54 : vector<1x384x128xbf16> to vector<384x128xbf16>
    %cst_20 = arith.constant dense<0.000000e+00> : vector<256x128xf32>
    %56 = tpu.matmul %53, %55, %cst_20 {dimension_numbers = #tpu.dot_dimension_numbers<[1], [0], [0], [1], [0, 0, 1, 1], [], []>} : vector<256x384xbf16>, vector<384x128xbf16>, vector<256x128xf32> -> vector<256x128xf32>
    %c1_21 = arith.constant 1 : index
    %c0_22 = arith.constant 0 : index
    %c0_23 = arith.constant 0 : index
    %57 = vector.load %arg5[%c1_21, %c0_22, %c0_23] : memref<3x384x128xbf16, #tpu.memory_space<vmem>>, vector<1x384x128xbf16>
    %58 = vector.shape_cast %57 : vector<1x384x128xbf16> to vector<384x128xbf16>
    %cst_24 = arith.constant dense<0.000000e+00> : vector<256x128xf32>
    %59 = tpu.matmul %53, %58, %cst_24 {dimension_numbers = #tpu.dot_dimension_numbers<[1], [0], [0], [1], [0, 0, 1, 1], [], []>} : vector<256x384xbf16>, vector<384x128xbf16>, vector<256x128xf32> -> vector<256x128xf32>
    %c255_i32 = arith.constant 255 : i32
    %60 = tpu.dynamic_rotate %59 by %c255_i32 dim 0 : vector<256x128xf32>, i32 -> vector<256x128xf32>
    %61 = arith.addf %56, %60 : vector<256x128xf32>
    %c2_25 = arith.constant 2 : index
    %c0_26 = arith.constant 0 : index
    %c0_27 = arith.constant 0 : index
    %62 = vector.load %arg5[%c2_25, %c0_26, %c0_27] : memref<3x384x128xbf16, #tpu.memory_space<vmem>>, vector<1x384x128xbf16>
    %63 = vector.shape_cast %62 : vector<1x384x128xbf16> to vector<384x128xbf16>
    %cst_28 = arith.constant dense<0.000000e+00> : vector<256x128xf32>
    %64 = tpu.matmul %53, %63, %cst_28 {dimension_numbers = #tpu.dot_dimension_numbers<[1], [0], [0], [1], [0, 0, 1, 1], [], []>} : vector<256x384xbf16>, vector<384x128xbf16>, vector<256x128xf32> -> vector<256x128xf32>
    %c254_i32 = arith.constant 254 : i32
    %65 = tpu.dynamic_rotate %64 by %c254_i32 dim 0 : vector<256x128xf32>, i32 -> vector<256x128xf32>
    %66 = arith.addf %61, %65 : vector<256x128xf32>
    %c0_29 = arith.constant 0 : index
    %c0_30 = arith.constant 0 : index
    %67 = vector.load %arg6[%c0_29, %c0_30] : memref<1x128xf32, #tpu.memory_space<vmem>>, vector<1x128xf32>
    %68 = vector.broadcast %67 : vector<1x128xf32> to vector<256x128xf32>
    %69 = arith.addf %66, %68 : vector<256x128xf32>
    %cst_31 = arith.constant 0.000000e+00 : f32
    %70 = vector.broadcast %cst_31 : f32 to vector<256x128xf32>
    %71 = arith.maximumf %69, %70 : vector<256x128xf32>
    %72 = vector.extract_strided_slice %2 {offsets = [64, 0], sizes = [256, 128], strides = [1, 1]} : vector<384x128xbf16> to vector<256x128xbf16>
    %c0_32 = arith.constant 0 : index
    %c0_33 = arith.constant 0 : index
    %73 = vector.load %arg7[%c0_32, %c0_33] : memref<128x128xbf16, #tpu.memory_space<vmem>>, vector<128x128xbf16>
    %cst_34 = arith.constant dense<0.000000e+00> : vector<256x128xf32>
    %74 = tpu.matmul %72, %73, %cst_34 {dimension_numbers = #tpu.dot_dimension_numbers<[1], [0], [0], [1], [0, 0, 1, 1], [], []>} : vector<256x128xbf16>, vector<128x128xbf16>, vector<256x128xf32> -> vector<256x128xf32>
    %c255_i32_35 = arith.constant 255 : i32
    %75 = tpu.dynamic_rotate %74 by %c255_i32_35 dim 0 : vector<256x128xf32>, i32 -> vector<256x128xf32>
    %c0_36 = arith.constant 0 : index
    %c0_37 = arith.constant 0 : index
    %76 = vector.load %arg8[%c0_36, %c0_37] : memref<1x128xf32, #tpu.memory_space<vmem>>, vector<1x128xf32>
    %77 = vector.broadcast %76 : vector<1x128xf32> to vector<256x128xf32>
    %78 = arith.addf %75, %77 : vector<256x128xf32>
    %79 = arith.addf %71, %78 : vector<256x128xf32>
    %80 = vector.shape_cast %79 : vector<256x128xf32> to vector<8x32x128xf32>
    %81 = arith.truncf %80 : vector<8x32x128xf32> to vector<8x32x128xbf16>
    %c0_38 = arith.constant 0 : index
    %c0_39 = arith.constant 0 : index
    %c0_40 = arith.constant 0 : index
    %c0_41 = arith.constant 0 : index
    %82 = vector.load %arg9[%c0_38, %c0_39, %c0_40, %c0_41] : memref<1x8x32x128xbf16, #tpu.memory_space<vmem>>, vector<1x8x32x128xbf16>
    %83 = vector.shape_cast %82 : vector<1x8x32x128xbf16> to vector<8x32x128xbf16>
    %84 = vector.shape_cast %81 : vector<8x32x128xbf16> to vector<1x8x32x128xbf16>
    tpu.vector_store %arg9[%c0_38, %c0_39, %c0_40, %c0_41], %84 {strides = array<i32>} : memref<1x8x32x128xbf16, #tpu.memory_space<vmem>>, vector<1x8x32x128xbf16>,
    return
  }
  func.func @transform_0(%arg0: i32, %arg1: i32) -> (i32, i32, i32, i32) {
    %c2_i32 = arith.constant 2 : i32
    %0 = arith.muli %arg0, %c2_i32 : i32
    %1 = arith.addi %0, %arg1 : i32
    %c0_i32 = arith.constant 0 : i32
    %c0_i32_0 = arith.constant 0 : i32
    %c0_i32_1 = arith.constant 0 : i32
    %c0_i32_2 = arith.constant 0 : i32
    return %1, %c0_i32, %c0_i32_0, %c0_i32_1 : i32, i32, i32, i32
  }
  func.func @transform_1(%arg0: i32, %arg1: i32) -> (i32, i32, i32) {
    %c0_i32 = arith.constant 0 : i32
    %c0_i32_0 = arith.constant 0 : i32
    %c0_i32_1 = arith.constant 0 : i32
    %c0_i32_2 = arith.constant 0 : i32
    return %c0_i32, %c0_i32_0, %c0_i32_1 : i32, i32, i32
  }
  func.func @transform_2(%arg0: i32, %arg1: i32) -> (i32, i32) {
    %c0_i32 = arith.constant 0 : i32
    %c0_i32_0 = arith.constant 0 : i32
    %c0_i32_1 = arith.constant 0 : i32
    return %c0_i32, %c0_i32_0 : i32, i32
  }
  func.func @transform_3(%arg0: i32, %arg1: i32) -> (i32, i32, i32) {
    %c0_i32 = arith.constant 0 : i32
    %c0_i32_0 = arith.constant 0 : i32
    %c0_i32_1 = arith.constant 0 : i32
    %c0_i32_2 = arith.constant 0 : i32
    return %c0_i32, %c0_i32_0, %c0_i32_1 : i32, i32, i32
  }
  func.func @transform_4(%arg0: i32, %arg1: i32) -> (i32, i32) {
    %c0_i32 = arith.constant 0 : i32
    %c0_i32_0 = arith.constant 0 : i32
    %c0_i32_1 = arith.constant 0 : i32
    return %c0_i32, %c0_i32_0 : i32, i32
  }
  func.func @transform_5(%arg0: i32, %arg1: i32) -> (i32, i32) {
    %c0_i32 = arith.constant 0 : i32
    %c0_i32_0 = arith.constant 0 : i32
    %c0_i32_1 = arith.constant 0 : i32
    return %c0_i32, %c0_i32_0 : i32, i32
  }
  func.func @transform_6(%arg0: i32, %arg1: i32) -> (i32, i32) {
    %c0_i32 = arith.constant 0 : i32
    %c0_i32_0 = arith.constant 0 : i32
    %c0_i32_1 = arith.constant 0 : i32
    return %c0_i32, %c0_i32_0 : i32, i32
  }
  func.func @transform_7(%arg0: i32, %arg1: i32) -> (i32, i32, i32, i32) {
    %c0_i32 = arith.constant 0 : i32
    %c0_i32_0 = arith.constant 0 : i32
    %c0_i32_1 = arith.constant 0 : i32
    return %arg0, %arg1, %c0_i32, %c0_i32_0 : i32, i32, i32, i32
  }
}

</mosaic_0001>

<bundles_post_ra>
// kernel: up_forward.1
= control target key start
LH: loop header
LB: loop body
LE: loop exit
PB: predicated region body
PF: predicated region fallthrough
CT: control target
= control target key end

     0   :  { %s6398_s24 = smov 0   ;;  %s6400_s25 = smov 0   ;;  %s9516_s0 = inlined_call_operand.vmem [shape: bf16[4,12,32,128], index: 0, kind: input, shape index: {}]   ;;  %s9517_s1 = inlined_call_operand.vmem [shape: bf16[3,384,128], index: 1, kind: input, shape index: {}]   ;;  %s9518_s2 = inlined_call_operand.vmem [shape: f32[1,128], index: 2, kind: input, shape index: {}]   ;;  %s9519_s3 = inlined_call_operand.vmem [shape: bf16[3,384,128], index: 3, kind: input, shape index: {}]   ;;  %s9520_s4 = inlined_call_operand.vmem [shape: f32[1,128], index: 4, kind: input, shape index: {}]   ;;  %s9521_s5 = inlined_call_operand.vmem [shape: bf16[128,128], index: 5, kind: input, shape index: {}]   ;;  %s9522_s6 = inlined_call_operand.vmem [shape: f32[1,128], index: 6, kind: input, shape index: {}]   ;;  %s9523_s7 = inlined_call_operand.vmem [shape: bf16[2,16,32,128], index: 7, kind: output, shape index: {}]  }
   0x1   :  { %s6402_s26 = smov 0   ;;  %s6404_s27 = smov 0  }
   0x2   :  { %s6406_s28 = smov 0  }
   0x3 LB: > { %s26_s29 = sadd.s32 1, %s6347_s26  ;;  %s29_s30 = sadd.s32 1, %s6351_s27  ;;  %s6355_s28 = sphi %s6406_s28, %s17_s28   ;;  %s6351_s27 = sphi %s6404_s27, %s9922_s27   ;;  %s6347_s26 = sphi %s6402_s26, %s9921_s26   ;;  %s6343_s25 = sphi %s6400_s25, %s9920_s25   ;;  %s6339_s24 = sphi %s6398_s24, %s9919_s24  }
   0x4   : > { %p27_p0 = scmp.ge.s32.totalorder %s26_s29, 2  ;;  %p4968_p1 = scmp.ge.s32.totalorder %s6355_s28, 1 }
   0x5   : > { %p259_p2 = scmp.lt.s32.totalorder %s6355_s28, 5 }
   0x6   : > { %s9924_s29 = smov (%p27_p0, %s26_s29), 0  ;;  %s9926_s30 = smov (!%p27_p0, %s29_s30), %s6351_s27 }
   0x7   : > { %p260_p3 = pnand %p4968_p1, %p259_p2  ;;  %p31_p4 = scmp.ge.s32.totalorder %s9926_s30, 2 }
   0x9   : > { %s9928_s30 = smov (%p31_p4, %s9926_s30), 0  ;;  %263 = sbr.rel (%p260_p3) target bundleno = 2194 (0x892), region = 48 }
   0xe   : > { %v5930_v0 = vld [vmem:[%s9517_s1 + $0xf8] sm:$0xff]  ;;  %v5929_v1 = vld [vmem:[%s9517_s1 + $0xf0] sm:$0xff]  ;;  %v5928_v4 = vld [vmem:[%s9517_s1 + $0xe8] sm:$0xff]  ;;  %s4969_s18 = sshll.u32 %s6343_s25, 1  ;;  %v9524_v56 = vlaneseq  ;;  %p2360_p6 = scmp.gt.s32.totalorder %s6339_s24, 0 }
   0xf   : > { %751 = vmatpush.bf16.msra.mxu0 %v5930_v0  ;;  %v5938_v2 = vld [vmem:[%s9517_s1 + $0x138] sm:$0xff]  ;;  %v5927_v5 = vld [vmem:[%s9517_s1 + $0xe0] sm:$0xff]  ;;  %s299_s21 = sadd.s32 %s6339_s24, %s4969_s18  ;;  %v6461_v7 = vld [vmem:[%s9517_s1 + $0x170] sm:$0xff]  ;;  %p2361_p7 = scmp.lt.s32.totalorder %s6339_s24, 1 }
  0x10   : > { %v6444_v3 = vld [vmem:[%s9517_s1 + $0x178] sm:$0xff]  ;;  %6146 = vmatpush.bf16.msra.mxu1 %v5938_v2  ;;  %p300_p5 = scmp.lt.s32.totalorder %s299_s21, 3  ;;  %v5937_v8 = vld [vmem:[%s9517_s1 + $0x130] sm:$0xff]  ;;  %v6473_v10 = vld [vmem:[%s9517_s1 + $0x168] sm:$0xff]  ;;  %v6669_v57 = vshrl.u32 %v9524_v56, 7  ;;  %p308_p8 = scmp.lt.s32.totalorder %s6343_s25, 1 }
  0x11   : > { %6154 = vmatpush.bf16.msra.mxu2 %v6444_v3  ;;  %v5926_v6 = vld [vmem:[%s9517_s1 + $0xd8] sm:$0xff]  ;;  %v5925_v9 = vld [vmem:[%s9517_s1 + $0xd0] sm:$0xff]  ;;  %v5936_v12 = vld [vmem:[%s9517_s1 + $0x128] sm:$0xff]  ;;  %s2365_s22 = scalar_select %p2360_p6, 1, 0 }
  0x12   : > { %s9930_s21 = smov (!%p300_p5, %s299_s21), 3  ;;  %v6478_v11 = vld [vmem:[%s9517_s1 + $0x38] sm:$0xff]  ;;  %v6487_v13 = vld [vmem:[%s9517_s1 + $0x30] sm:$0xff]  ;;  %v5924_v14 = vld [vmem:[%s9517_s1 + $0xc8] sm:$0xff]  ;;  %6231 = vset.pattern.permute.xlu2 %v6669_v57  ;;  %vm1120_vm0 = vcmp.lt.s32.totalorder %v6669_v57, 7  ;;  %vm2363_vm1 = vcmp.gt.s32.totalorder %v6669_v57, 0 }
  0x13   : > { %752 = vmatpush.bf16.msra.mxu0 %v5929_v1  ;;  %6162 = vmatpush.bf16.msra.mxu3 %v6478_v11  ;;  %s6170_s9 = smul.u32 192, %s9930_s21  ;;  %v6496_v15 = vld [vmem:[%s9517_s1 + $0x160] sm:$0xff]  ;;  %v5942_v18 = vld [vmem:[%s9517_s1 + $0x158] sm:$0xff]  ;;  %v5941_v21 = vld [vmem:[%s9517_s1 + $0x150] sm:$0xff]  ;;  %vm2192_vm10 = vcmp.lt.s32.totalorder %v6669_v57, 6  ;;  %vm2715_vm11 = vcmp.lt.s32.totalorder %v6669_v57, 1 }
  0x14   : > { %6147 = vmatpush.bf16.msra.mxu1 %v5937_v8  ;;  %v5935_v16 = vld [vmem:[%s9517_s1 + $0x120] sm:$0xff]  ;;  %v5934_v20 = vld [vmem:[%s9517_s1 + $0x118] sm:$0xff]  ;;  %v6527_v22 = vld [vmem:[%s9517_s1 + $0x28] sm:$0xff]  ;;  %s2374_s23 = scalar_select %p2361_p7, 1, 0 }
  0x15   : > { %6155 = vmatpush.bf16.msra.mxu2 %v6461_v7  ;;  %v5923_v17 = vld [vmem:[%s9517_s1 + $0xc0] sm:$0xff]  ;;  %s6508_s17 = scalar_lea.vmem %s9516_s0, %s6170_s9  ;;  %v5933_v23 = vld [vmem:[%s9517_s1 + $0x110] sm:$0xff]  ;;  %v5940_v24 = vld [vmem:[%s9517_s1 + $0x148] sm:$0xff]  ;;  %s9932_s25 = smov (!%p308_p8, %s6343_s25), 1 }
  0x16   : > { %v6515_v19 = vld [vmem:[%s6508_s17] sm:$0xff]  ;;  %v5932_v26 = vld [vmem:[%s9517_s1 + $0x108] sm:$0xff]  ;;  %v6551_v28 = vld [vmem:[%s9517_s1 + $0x18] sm:$0xff]  ;;  %s4973_s11 = sshll.u32 %s9932_s25, 6 }
  0x17   : > { %753 = vmatpush.bf16.msra.mxu0 %v5928_v4  ;;  %6163 = vmatpush.bf16.msra.mxu3 %v6487_v13  ;;  %v6539_v25 = vld [vmem:[%s9517_s1 + $0x20] sm:$0xff]  ;;  %v6554_v29 = vld [vmem:[%s6508_s17 + $0x38] sm:$0xff]  ;;  %v6563_v31 = vld [vmem:[%s9517_s1 + $0x10] sm:$0xff] }
  0x18   : > { %6148 = vmatpush.bf16.msra.mxu1 %v5936_v12  ;;  %v5939_v27 = vld [vmem:[%s9517_s1 + $0x140] sm:$0xff]  ;;  %v6566_v32 = vld [vmem:[%s6508_s17 + $0x8] sm:$0xff]  ;;  %v6588_v36 = vld [vmem:[%s6508_s17 + $0x18] sm:$0xff] }
  0x19   : > { %6156 = vmatpush.bf16.msra.mxu2 %v6473_v10  ;;  %v5931_v30 = vld [vmem:[%s9517_s1 + $0x100] sm:$0xff]  ;;  %v6571_v33 = vld [vmem:[%s6508_s17 + $0x28] sm:$0xff]  ;;  %v6596_v38 = vld [vmem:[%s6508_s17 + $0x10] sm:$0xff] }
  0x1a   : > { %v6578_v34 = vld [vmem:[%s9517_s1 + $0x8] sm:$0xff]  ;;  %v6584_v35 = vld [vmem:[%s9517_s1] sm:$0xff]  ;;  %v6600_v39 = vld [vmem:[%s6508_s17 + $0x30] sm:$0xff] }
  0x1b   : > { %754 = vmatpush.bf16.msra.mxu0 %v5927_v5  ;;  %6164 = vmatpush.bf16.msra.mxu3 %v6527_v22  ;;  %v6591_v37 = vld [vmem:[%s6508_s17 + $0x40] sm:$0xff]  ;;  %v6611_v41 = vld [vmem:[%s6508_s17 + $0x48] sm:$0xff]  ;;  %v6618_v42 = vld [vmem:[%s6508_s17 + $0x50] sm:$0xff] }
  0x1c   : > { %6149 = vmatpush.bf16.msra.mxu1 %v5935_v16  ;;  %v6607_v40 = vld [vmem:[%s6508_s17 + $0x20] sm:$0xff]  ;;  %v6625_v43 = vld [vmem:[%s6508_s17 + $0x58] sm:$0xff]  ;;  %v6639_v45 = vld [vmem:[%s6508_s17 + $0x68] sm:$0xff] }
  0x1d   : > { %6157 = vmatpush.bf16.msra.mxu2 %v6496_v15  ;;  %v6632_v44 = vld [vmem:[%s6508_s17 + $0x60] sm:$0xff]  ;;  %v6646_v46 = vld [vmem:[%s6508_s17 + $0x70] sm:$0xff]  ;;  %v6657_v49 = vld [vmem:[%s6508_s17 + $0x78] sm:$0xff] }
  0x1e   : > { %v6672_v58 = vld [vmem:[%s6508_s17 + $0x80] sm:$0xff] }
  0x1f   : > { %755 = vmatpush.bf16.msra.mxu0 %v5926_v6  ;;  %6165 = vmatpush.bf16.msra.mxu3 %v6539_v25 }
  0x20   : > { %6150 = vmatpush.bf16.msra.mxu1 %v5934_v20 }
  0x21   : > { %6158 = vmatpush.bf16.msra.mxu2 %v5942_v18 }
  0x23   : > { %756 = vmatpush.bf16.msra.mxu0 %v5925_v9  ;;  %6166 = vmatpush.bf16.msra.mxu3 %v6551_v28 }
  0x24   : > { %6151 = vmatpush.bf16.msra.mxu1 %v5933_v23 }
  0x25   : > { %6159 = vmatpush.bf16.msra.mxu2 %v5941_v21 }
  0x27   : > { %757 = vmatpush.bf16.msra.mxu0 %v5924_v14  ;;  %6167 = vmatpush.bf16.msra.mxu3 %v6563_v31 }
  0x28   : > { %6152 = vmatpush.bf16.msra.mxu1 %v5932_v26 }
  0x29   : > { %6160 = vmatpush.bf16.msra.mxu2 %v5940_v24 }
  0x2b   : > { %758 = vmatpush.bf16.msra.mxu0 %v5923_v17  ;;  %6168 = vmatpush.bf16.msra.mxu3 %v6578_v34 }
  0x2c   : > { %6153 = vmatpush.bf16.msra.mxu1 %v5931_v30 }
  0x2d   : > { %6161 = vmatpush.bf16.msra.mxu2 %v5939_v27 }
  0x2e   : > { %759 = vmatmul.bf16.vlgmr.msra.gmra.mxu0 %v6515_v19 }
  0x2f   : > { %860 = vmatpush.bf16.msrb.mxu0 %v5938_v2  ;;  %883 = vmatmul.bf16.vlgmr.msra.gmra.mxu1 %v6571_v33 }
  0x30   : > { %992 = vmatmul.bf16.vlgmr.msra.gmra.mxu2 %v6554_v29  ;;  %6169 = vmatpush.bf16.msra.mxu3 %v6584_v35 }
  0x33   : > { %861 = vmatpush.bf16.msrb.mxu0 %v5937_v8  ;;  %1328 = vmatmul.bf16.vlgmr.msra.gmra.mxu3 %v6588_v36 }
  0x37   : > { %862 = vmatpush.bf16.msrb.mxu0 %v5936_v12 }
  0x3b   : > { %863 = vmatpush.bf16.msrb.mxu0 %v5935_v16 }
  0x3e   : > { %764 = vmatmul.bf16.gmra.mxu0 %v6566_v32 }
  0x3f   : > { %864 = vmatpush.bf16.msrb.mxu0 %v5934_v20  ;;  %888 = vmatmul.bf16.gmra.mxu1 %v6600_v39 }
  0x40   : > { %997 = vmatmul.bf16.gmra.mxu2 %v6591_v37 }
  0x43   : > { %865 = vmatpush.bf16.msrb.mxu0 %v5933_v23  ;;  %1333 = vmatmul.bf16.gmra.mxu3 %v6607_v40 }
  0x47   : > { %866 = vmatpush.bf16.msrb.mxu0 %v5932_v26 }
  0x4b   : > { %867 = vmatpush.bf16.msrb.mxu0 %v5931_v30 }
  0x4e   : > { %769 = vmatmul.bf16.gmra.mxu0 %v6596_v38 }
  0x4f   : > { %969 = vmatpush.bf16.msra.mxu0 %v6444_v3  ;;  %893 = vmatmul.bf16.gmra.mxu1 %v6554_v29  ;;  %v6684_v3 = vld [vmem:[%s6508_s17 + $0x88] sm:$0xff] }
  0x50   : > { %1002 = vmatmul.bf16.gmra.mxu2 %v6611_v41 }
  0x53   : > { %970 = vmatpush.bf16.msra.mxu0 %v6461_v7  ;;  %1338 = vmatmul.bf16.gmra.mxu3 %v6571_v33 }
  0x57   : > { %971 = vmatpush.bf16.msra.mxu0 %v6473_v10 }
  0x5b   : > { %972 = vmatpush.bf16.msra.mxu0 %v6496_v15 }
  0x5e   : > { %774 = vmatmul.bf16.gmra.mxu0 %v6588_v36 }
  0x5f   : > { %973 = vmatpush.bf16.msra.mxu0 %v5942_v18  ;;  %898 = vmatmul.bf16.gmra.mxu1 %v6591_v37 }
  0x60   : > { %1007 = vmatmul.bf16.gmra.mxu2 %v6618_v42 }
  0x63   : > { %974 = vmatpush.bf16.msra.mxu0 %v5941_v21  ;;  %1343 = vmatmul.bf16.gmra.mxu3 %v6600_v39  ;;  %v6695_v21 = vld [vmem:[%s6508_s17 + $0x90] sm:$0xff] }
  0x67   : > { %975 = vmatpush.bf16.msra.mxu0 %v5940_v24 }
  0x6b   : > { %976 = vmatpush.bf16.msra.mxu0 %v5939_v27 }
  0x6e   : > { %779 = vmatmul.bf16.gmra.mxu0 %v6607_v40 }
  0x6f   : > { %903 = vmatmul.bf16.gmra.mxu1 %v6611_v41 }
  0x70   : > { %1012 = vmatmul.bf16.gmra.mxu2 %v6625_v43 }
  0x73   : > { %1348 = vmatmul.bf16.gmra.mxu3 %v6554_v29 }
  0x7e   : > { %784 = vmatmul.bf16.gmra.mxu0 %v6571_v33 }
  0x7f   : > { %908 = vmatmul.bf16.gmra.mxu1 %v6618_v42 }
  0x80   : > { %1017 = vmatmul.bf16.gmra.mxu2 %v6632_v44 }
  0x83   : > { %1353 = vmatmul.bf16.gmra.mxu3 %v6591_v37 }
  0x8e   : > { %789 = vmatmul.bf16.gmra.mxu0 %v6600_v39 }
  0x8f   : > { %913 = vmatmul.bf16.gmra.mxu1 %v6625_v43 }
  0x90   : > { %1022 = vmatmul.bf16.gmra.mxu2 %v6639_v45 }
  0x93   : > { %1358 = vmatmul.bf16.gmra.mxu3 %v6611_v41 }
  0x9e   : > { %794 = vmatmul.bf16.gmra.mxu0 %v6554_v29 }
  0x9f   : > { %918 = vmatmul.bf16.gmra.mxu1 %v6632_v44 }
  0xa0   : > { %1027 = vmatmul.bf16.gmra.mxu2 %v6646_v46 }
  0xa3   : > { %1363 = vmatmul.bf16.gmra.mxu3 %v6618_v42 }
  0xab   : > { %v6650_v47 = vpop.f32.mrf.mxu0 }
  0xac   : > { %v884_v51 = vpop.f32.mrf.mxu1 }
  0xae   : > { %799 = vmatmul.bf16.gmra.mxu0 %v6591_v37 }
  0xaf   : > { %923 = vmatmul.bf16.gmra.mxu1 %v6639_v45 }
  0xb0   : > { %1032 = vmatmul.bf16.gmra.mxu2 %v6657_v49 }
  0xb3   : > { %v6654_v48 = vpop.f32.mrf.mxu0  ;;  %v993_v52 = vpop.f32.mrf.mxu2  ;;  %1368 = vmatmul.bf16.gmra.mxu3 %v6625_v43 }
  0xb4   : > { %v886_v54 = vpop.f32.mrf.mxu1 }
  0xb6   : > { %v1329_v59 = vpop.f32.mrf.mxu3 }
  0xbb   : > { %v6661_v50 = vpop.f32.mrf.mxu0  ;;  %v995_v55 = vpop.f32.mrf.mxu2 }
  0xbc   : > { %v889_v61 = vpop.f32.mrf.mxu1 }
  0xbe   : > { %804 = vmatmul.bf16.gmra.mxu0 %v6611_v41  ;;  %v1331_v63 = vpop.f32.mrf.mxu3 }
  0xbf   : > { %928 = vmatmul.bf16.gmra.mxu1 %v6646_v46 }
  0xc0   : > { %1037 = vmatmul.bf16.gmra.mxu2 %v6672_v58 }
  0xc3   : > { %v6665_v53 = vpop.f32.mrf.mxu0  ;;  %v998_v62 = vpop.f32.mrf.mxu2  ;;  %1373 = vmatmul.bf16.gmra.mxu3 %v6632_v44 }
  0xc4   : > { %v891_v1 = vpop.f32.mrf.mxu1 }
  0xc6   : > { %v1334_v4 = vpop.f32.mrf.mxu3 }
  0xcb   : > { %v6676_v60 = vpop.f32.mrf.mxu0  ;;  %v1000_v2 = vpop.f32.mrf.mxu2 }
  0xcc   : > { %v894_v6 = vpop.f32.mrf.mxu1 }
  0xce   : > { %809 = vmatmul.bf16.gmra.mxu0 %v6618_v42  ;;  %v1336_v10 = vpop.f32.mrf.mxu3 }
  0xcf   : > { %933 = vmatmul.bf16.gmra.mxu1 %v6657_v49 }
  0xd0   : > { %1042 = vmatmul.bf16.gmra.mxu2 %v6684_v3 }
  0xd3   : > { %v6680_v0 = vpop.f32.mrf.mxu0  ;;  %v1003_v8 = vpop.f32.mrf.mxu2  ;;  %1378 = vmatmul.bf16.gmra.mxu3 %v6639_v45 }
  0xd4   : > { %v896_v14 = vpop.f32.mrf.mxu1 }
  0xd6   : > { %v1339_v24 = vpop.f32.mrf.mxu3 }
  0xdb   : > { %v775_v5 = vpop.f32.mrf.mxu0  ;;  %v1005_v16 = vpop.f32.mrf.mxu2 }
  0xdc   : > { %v885_v7 = vadd.f32 %v884_v51, %v775_v5  ;;  %v899_v30 = vpop.f32.mrf.mxu1 }
  0xde   : > { %v6687_v9 = vadd.f32 %v993_v52, %v885_v7  ;;  %814 = vmatmul.bf16.gmra.mxu0 %v6625_v43  ;;  %v1341_v7 = vpop.f32.mrf.mxu3 }
  0xdf   : > { %938 = vmatmul.bf16.gmra.mxu1 %v6672_v58 }
  0xe0   : > { %v9525_v18 = vrot.slane %v6687_v9, 1  ;;  %1047 = vmatmul.bf16.gmra.mxu2 %v6695_v21 }
  0xe3   : > { %v777_v12 = vpop.f32.mrf.mxu0  ;;  %v1008_v52 = vpop.f32.mrf.mxu2  ;;  %1383 = vmatmul.bf16.gmra.mxu3 %v6646_v46 }
  0xe4   : > { %v887_v15 = vadd.f32 %v886_v54, %v777_v12 }
  0xe6   : > { %v996_v17 = vadd.f32 %v995_v55, %v887_v15 }
  0xe8   : > { %v1085_v20 = vrot.slane %v996_v17, 1 }
  0xea   : > { %v1153_v23 = vsel %vm1120_vm0, %v9525_v18, %v1085_v20 }
  0xeb   : > { %v6702_v26 = vadd.f32 %v1329_v59, %v1153_v23  ;;  %v780_v27 = vpop.f32.mrf.mxu0  ;;  %v901_v59 = vpop.f32.mrf.mxu1 }
  0xec   : > { %v890_v51 = vadd.f32 %v889_v61, %v780_v27  ;;  %v1010_v23 = vpop.f32.mrf.mxu2 }
  0xed   : > { %9554 = vst [vmem:[#allocation2_spill] sm:$0xff] %v6702_v26 }
  0xee   : > { %v999_v54 = vadd.f32 %v998_v62, %v890_v51  ;;  %819 = vmatmul.bf16.gmra.mxu0 %v6632_v44  ;;  %v6712_v62 = vld [vmem:[%s6508_s17 + $0x98] sm:$0xff]  ;;  %v1344_v51 = vpop.f32.mrf.mxu3 }
  0xef   : > { %943 = vmatmul.bf16.gmra.mxu1 %v6684_v3 }
  0xf0   : > { %v1086_v55 = vrot.slane %v999_v54, 1  ;;  %1052 = vmatmul.bf16.gmra.mxu2 %v6712_v62 }
  0xf2   : > { %v1152_v5 = vsel %vm1120_vm0, %v1085_v20, %v1086_v55 }
  0xf3   : > { %v6708_v12 = vadd.f32 %v1331_v63, %v1152_v5  ;;  %v782_v15 = vpop.f32.mrf.mxu0  ;;  %v904_v54 = vpop.f32.mrf.mxu1  ;;  %1388 = vmatmul.bf16.gmra.mxu3 %v6657_v49 }
  0xf4   : > { %v892_v17 = vadd.f32 %v891_v1, %v782_v15  ;;  %v1013_v1 = vpop.f32.mrf.mxu2 }
  0xf5   : > { %9555 = vst [vmem:[#allocation3_spill] sm:$0xff] %v6708_v12 }
  0xf6   : > { %v1001_v56 = vadd.f32 %v1000_v2, %v892_v17 }
  0xf8   : > { %v1087_v61 = vrot.slane %v1001_v56, 1 }
  0xfa   : > { %v1151_v27 = vsel %vm1120_vm0, %v1086_v55, %v1087_v61  ;;  %v1346_v55 = vpop.f32.mrf.mxu3 }
  0xfb   : > { %v6717_v20 = vadd.f32 %v1334_v4, %v1151_v27  ;;  %v785_v63 = vpop.f32.mrf.mxu0  ;;  %v906_v4 = vpop.f32.mrf.mxu1 }
  0xfc   : > { %v895_v5 = vadd.f32 %v894_v6, %v785_v63 }
  0xfd   : > { %9556 = vst [vmem:[#allocation4_spill] sm:$0xff] %v6717_v20  ;;  %v1015_v20 = vpop.f32.mrf.mxu2 }
  0xfe   : > { %v1004_v15 = vadd.f32 %v1003_v8, %v895_v5  ;;  %824 = vmatmul.bf16.gmra.mxu0 %v6639_v45  ;;  %v6727_v8 = vld [vmem:[%s6508_s17 + $0xa0] sm:$0xff] }
  0xff   : > { %948 = vmatmul.bf16.gmra.mxu1 %v6695_v21 }
 0x100   : > { %v1088_v56 = vrot.slane %v1004_v15, 1  ;;  %1057 = vmatmul.bf16.gmra.mxu2 %v6727_v8 }
 0x102   : > { %v1150_v2 = vsel %vm1120_vm0, %v1087_v61, %v1088_v56  ;;  %v1349_v5 = vpop.f32.mrf.mxu3 }
 0x103   : > { %v6723_v17 = vadd.f32 %v1336_v10, %v1150_v2  ;;  %v787_v18 = vpop.f32.mrf.mxu0  ;;  %v909_v15 = vpop.f32.mrf.mxu1  ;;  %1393 = vmatmul.bf16.gmra.mxu3 %v6672_v58 }
 0x104   : > { %v897_v27 = vadd.f32 %v896_v14, %v787_v18 }
 0x105   : > { %9557 = vst [vmem:[#allocation5_spill] sm:$0xff] %v6723_v17  ;;  %v1018_v14 = vpop.f32.mrf.mxu2 }
 0x106   : > { %v1006_v12 = vadd.f32 %v1005_v16, %v897_v27 }
 0x108   : > { %v1089_v6 = vrot.slane %v1006_v12, 1 }
 0x10a   : > { %v1149_v63 = vsel %vm1120_vm0, %v1088_v56, %v1089_v6  ;;  %v1351_v56 = vpop.f32.mrf.mxu3 }
 0x10b   : > { %v6732_v61 = vadd.f32 %v1339_v24, %v1149_v63  ;;  %v790_v10 = vpop.f32.mrf.mxu0  ;;  %v911_v24 = vpop.f32.mrf.mxu1 }
 0x10c   : > { %v900_v2 = vadd.f32 %v899_v30, %v790_v10 }
 0x10d   : > { %9558 = vst [vmem:[#allocation6_spill] sm:$0xff] %v6732_v61  ;;  %v1020_v61 = vpop.f32.mrf.mxu2 }
 0x10e   : > { %v1009_v18 = vadd.f32 %v1008_v52, %v900_v2  ;;  %829 = vmatmul.bf16.gmra.mxu0 %v6646_v46  ;;  %v6742_v52 = vld [vmem:[%s6508_s17 + $0xa8] sm:$0xff] }
 0x10f   : > { %953 = vmatmul.bf16.gmra.mxu1 %v6712_v62 }
 0x110   : > { %v1090_v16 = vrot.slane %v1009_v18, 1  ;;  %1062 = vmatmul.bf16.gmra.mxu2 %v6742_v52 }
 0x112   : > { %v1148_v12 = vsel %vm1120_vm0, %v1089_v6, %v1090_v16  ;;  %v1354_v2 = vpop.f32.mrf.mxu3 }
 0x113   : > { %v6738_v27 = vadd.f32 %v1341_v7, %v1148_v12  ;;  %v792_v17 = vpop.f32.mrf.mxu0  ;;  %v914_v18 = vpop.f32.mrf.mxu1  ;;  %1398 = vmatmul.bf16.gmra.mxu3 %v6684_v3 }
 0x114   : > { %v902_v63 = vadd.f32 %v901_v59, %v792_v17 }
 0x115   : > { %9559 = vst [vmem:[#allocation7_spill] sm:$0xff] %v6738_v27  ;;  %v1023_v59 = vpop.f32.mrf.mxu2 }
 0x116   : > { %v1011_v26 = vadd.f32 %v1010_v23, %v902_v63 }
 0x118   : > { %v1091_v30 = vrot.slane %v1011_v26, 1 }
 0x11a   : > { %v1147_v10 = vsel %vm1120_vm0, %v1090_v16, %v1091_v30  ;;  %v6753_v16 = vpop.f32.mrf.mxu3 }
 0x11b   : > { %v6747_v6 = vadd.f32 %v1344_v51, %v1147_v10  ;;  %v795_v7 = vpop.f32.mrf.mxu0  ;;  %9561 = vst [vmem:[#allocation9_spill] sm:$0xff] %v6753_v16  ;;  %v916_v10 = vpop.f32.mrf.mxu1 }
 0x11c   : > { %v905_v12 = vadd.f32 %v904_v54, %v795_v7  ;;  %v6759_v7 = vld [vmem:[%s6508_s17 + $0xb0] sm:$0xff] }
 0x11d   : > { %9560 = vst [vmem:[#allocation8_spill] sm:$0xff] %v6747_v6  ;;  %v1025_v27 = vpop.f32.mrf.mxu2 }
 0x11e   : > { %v1014_v17 = vadd.f32 %v1013_v1, %v905_v12  ;;  %834 = vmatmul.bf16.gmra.mxu0 %v6657_v49  ;;  %9562 = vst [vmem:[#allocation10_spill] sm:$0xff] %v6759_v7 }
 0x11f   : > { %958 = vmatmul.bf16.gmra.mxu1 %v6727_v8 }
 0x120   : > { %v1092_v26 = vrot.slane %v1014_v17, 1  ;;  %1067 = vmatmul.bf16.gmra.mxu2 %v6759_v7 }
 0x122   : > { %v1146_v23 = vsel %vm1120_vm0, %v1091_v30, %v1092_v26  ;;  %v1359_v30 = vpop.f32.mrf.mxu3 }
 0x123   : > { %v6755_v63 = vadd.f32 %v1346_v55, %v1146_v23  ;;  %v797_v51 = vpop.f32.mrf.mxu0  ;;  %v919_v17 = vpop.f32.mrf.mxu1  ;;  %1403 = vmatmul.bf16.gmra.mxu3 %v6695_v21 }
 0x124   : > { %v907_v6 = vadd.f32 %v906_v4, %v797_v51 }
 0x125   : > { %v1028_v4 = vpop.f32.mrf.mxu2 }
 0x126   : > { %v1016_v54 = vadd.f32 %v1015_v20, %v907_v6 }
 0x128   : > { %v1093_v1 = vrot.slane %v1016_v54, 1 }
 0x12a   : > { %v1145_v49 = vsel %vm1120_vm0, %v1092_v26, %v1093_v1  ;;  %v6770_v26 = vpop.f32.mrf.mxu3 }
 0x12b   : > { %v6764_v12 = vadd.f32 %v1349_v5, %v1145_v49  ;;  %v800_v55 = vpop.f32.mrf.mxu0  ;;  %9563 = vst [vmem:[#allocation11_spill] sm:$0xff] %v6770_v26  ;;  %v921_v49 = vpop.f32.mrf.mxu1 }
 0x12c   : > { %v910_v23 = vadd.f32 %v909_v15, %v800_v55  ;;  %v6776_v55 = vld [vmem:[%s6508_s17 + $0xb8] sm:$0xff] }
 0x12d   : > { %v1030_v7 = vpop.f32.mrf.mxu2  ;;  %9564 = vst [vmem:[#allocation12_spill] sm:$0xff] %v6776_v55 }
 0x12e   : > { %v1019_v51 = vadd.f32 %v1018_v14, %v910_v23  ;;  %839 = vmatmul.bf16.gmra.mxu0 %v6672_v58 }
 0x12f   : > { %963 = vmatmul.bf16.gmra.mxu1 %v6742_v52 }
 0x130   : > { %v1094_v20 = vrot.slane %v1019_v51, 1  ;;  %1072 = vmatmul.bf16.gmra.mxu2 %v6776_v55 }
 0x132   : > { %v1144_v6 = vsel %vm1120_vm0, %v1093_v1, %v1094_v20  ;;  %v1364_v1 = vpop.f32.mrf.mxu3 }
 0x133   : > { %v6772_v54 = vadd.f32 %v1351_v56, %v1144_v6  ;;  %v802_v5 = vpop.f32.mrf.mxu0  ;;  %v924_v51 = vpop.f32.mrf.mxu1  ;;  %1408 = vmatmul.bf16.gmra.mxu3 %v6712_v62 }
 0x134   : > { %v912_v16 = vadd.f32 %v911_v24, %v802_v5 }
 0x135   : > { %v1033_v26 = vpop.f32.mrf.mxu2 }
 0x136   : > { %v1021_v15 = vadd.f32 %v1020_v61, %v912_v16 }
 0x138   : > { %v1095_v14 = vrot.slane %v1021_v15, 1 }
 0x13a   : > { %v1143_v58 = vsel %vm1120_vm0, %v1094_v20, %v1095_v14  ;;  %v6789_v20 = vpop.f32.mrf.mxu3 }
 0x13b   : > { %v6781_v23 = vadd.f32 %v1354_v2, %v1143_v58  ;;  %v805_v56 = vpop.f32.mrf.mxu0  ;;  %9567 = vst [vmem:[#allocation15_spill] sm:$0xff] %v6789_v20  ;;  %v926_v15 = vpop.f32.mrf.mxu1 }
 0x13c   : > { %v915_v6 = vadd.f32 %v914_v18, %v805_v56 }
 0x13d   : > { %9565 = vst [vmem:[#allocation13_spill] sm:$0xff] %v6781_v23  ;;  %v1035_v58 = vpop.f32.mrf.mxu2 }
 0x13e   : > { %v1024_v24 = vadd.f32 %v1023_v59, %v915_v6  ;;  %844 = vmatmul.bf16.gmra.mxu0 %v6684_v3 }
 0x140   : > { %v1096_v61 = vrot.slane %v1024_v24, 1 }
 0x142   : > { %v6787_v16 = vsel %vm1120_vm0, %v1095_v14, %v1096_v61  ;;  %v1369_v59 = vpop.f32.mrf.mxu3 }
 0x143   : > { %9566 = vst [vmem:[#allocation14_spill] sm:$0xff] %v6787_v16  ;;  %v807_v5 = vpop.f32.mrf.mxu0  ;;  %v929_v24 = vpop.f32.mrf.mxu1 }
 0x144   : > { %v917_v2 = vadd.f32 %v916_v10, %v807_v5 }
 0x145   : > { %v1038_v16 = vpop.f32.mrf.mxu2 }
 0x146   : > { %v1026_v55 = vadd.f32 %v1025_v27, %v917_v2 }
 0x148   : > { %v1097_v18 = vrot.slane %v1026_v55, 1 }
 0x14a   : > { %v1141_v3 = vsel %vm1120_vm0, %v1096_v61, %v1097_v18  ;;  %v6801_v10 = vpop.f32.mrf.mxu3 }
 0x14b   : > { %v6794_v56 = vadd.f32 %v1359_v30, %v1141_v3  ;;  %v810_v6 = vpop.f32.mrf.mxu0  ;;  %9570 = vst [vmem:[#allocation18_spill] sm:$0xff] %v6801_v10  ;;  %v931_v61 = vpop.f32.mrf.mxu1 }
 0x14c   : > { %v920_v14 = vadd.f32 %v919_v17, %v810_v6 }
 0x14d   : > { %9568 = vst [vmem:[#allocation16_spill] sm:$0xff] %v6794_v56  ;;  %v1040_v30 = vpop.f32.mrf.mxu2 }
 0x14e   : > { %v1029_v23 = vadd.f32 %v1028_v4, %v920_v14  ;;  %849 = vmatmul.bf16.gmra.mxu0 %v6695_v21 }
 0x150   : > { %v1098_v20 = vrot.slane %v1029_v23, 1 }
 0x152   : > { %v6799_v27 = vsel %vm1120_vm0, %v1097_v18, %v1098_v20  ;;  %v1374_v23 = vpop.f32.mrf.mxu3 }
 0x153   : > { %9569 = vst [vmem:[#allocation17_spill] sm:$0xff] %v6799_v27  ;;  %v812_v55 = vpop.f32.mrf.mxu0  ;;  %v934_v18 = vpop.f32.mrf.mxu1 }
 0x154   : > { %v922_v5 = vadd.f32 %v921_v49, %v812_v55 }
 0x155   : > { %v1043_v10 = vpop.f32.mrf.mxu2 }
 0x156   : > { %v1031_v2 = vadd.f32 %v1030_v7, %v922_v5 }
 0x158   : > { %v1099_v3 = vrot.slane %v1031_v2, 1 }
 0x15a   : > { %v1139_v17 = vsel %vm1120_vm0, %v1098_v20, %v1099_v3  ;;  %v6812_v2 = vpop.f32.mrf.mxu3 }
 0x15b   : > { %v6805_v6 = vadd.f32 %v1364_v1, %v1139_v17  ;;  %v815_v4 = vpop.f32.mrf.mxu0  ;;  %v936_v20 = vpop.f32.mrf.mxu1 }
 0x15c   : > { %v925_v14 = vadd.f32 %v924_v51, %v815_v4 }
 0x15d   : > { %v1045_v4 = vpop.f32.mrf.mxu2 }
 0x15e   : > { %v1034_v56 = vadd.f32 %v1033_v26, %v925_v14  ;;  %854 = vmatmul.bf16.gmra.mxu0 %v6712_v62 }
 0x160   : > { %v1100_v27 = vrot.slane %v1034_v56, 1 }
 0x162   : > { %v6810_v49 = vsel %vm1120_vm0, %v1099_v3, %v1100_v27 }
 0x163   : > { %v817_v7 = vpop.f32.mrf.mxu0 }
 0x164   : > { %v927_v55 = vadd.f32 %v926_v15, %v817_v7  ;;  %v1379_v15 = vpop.f32.mrf.mxu3 }
 0x166   : > { %v1036_v5 = vadd.f32 %v1035_v58, %v927_v55  ;;  %v939_v55 = vpop.f32.mrf.mxu1 }
 0x168   : > { %v1101_v1 = vrot.slane %v1036_v5, 1 }
 0x16a   : > { %v1137_v51 = vsel %vm1120_vm0, %v1100_v27, %v1101_v1  ;;  %v1048_v27 = vpop.f32.mrf.mxu2 }
 0x16b   : > { %v6816_v26 = vadd.f32 %v1369_v59, %v1137_v51  ;;  %v820_v17 = vpop.f32.mrf.mxu0 }
 0x16c   : > { %v930_v56 = vadd.f32 %v929_v24, %v820_v17 }
 0x16e   : > { %v1039_v14 = vadd.f32 %v1038_v16, %v930_v56  ;;  %868 = vmatmul.bf16.vlgmr.msrb.gmra.mxu0 %v6596_v38  ;;  %v941_v56 = vpop.f32.mrf.mxu1 }
 0x16f   : > { %1305 = vmatpush.bf16.msrb.mxu0 %v6478_v11  ;;  %v6828_v11 = vpop.f32.mrf.mxu3 }
 0x170   : > { %v1102_v3 = vrot.slane %v1039_v14, 1 }
 0x172   : > { %v6822_v58 = vsel %vm1120_vm0, %v1101_v1, %v1102_v3 }
 0x173   : > { %v822_v7 = vpop.f32.mrf.mxu0  ;;  %1306 = vmatpush.bf16.msrb.mxu0 %v6487_v13  ;;  %v1050_v13 = vpop.f32.mrf.mxu2 }
 0x174   : > { %v932_v59 = vadd.f32 %v931_v61, %v822_v7 }
 0x176   : > { %v1041_v5 = vadd.f32 %v1040_v30, %v932_v59 }
 0x177   : > { %1307 = vmatpush.bf16.msrb.mxu0 %v6527_v22 }
 0x178   : > { %v1103_v16 = vrot.slane %v1041_v5, 1 }
 0x17a   : > { %v1135_v24 = vsel %vm1120_vm0, %v1102_v3, %v1103_v16  ;;  %v1384_v3 = vpop.f32.mrf.mxu3 }
 0x17b   : > { %v6830_v51 = vadd.f32 %v1374_v23, %v1135_v24  ;;  %v825_v17 = vpop.f32.mrf.mxu0  ;;  %1308 = vmatpush.bf16.msrb.mxu0 %v6539_v25  ;;  %v944_v25 = vpop.f32.mrf.mxu1 }
 0x17c   : > { %v935_v1 = vadd.f32 %v934_v18, %v825_v17  ;;  %v1053_v18 = vpop.f32.mrf.mxu2 }
 0x17e   : > { %v1044_v14 = vadd.f32 %v1043_v10, %v935_v1  ;;  %873 = vmatmul.bf16.gmra.mxu0 %v6588_v36 }
 0x17f   : > { %1309 = vmatpush.bf16.msrb.mxu0 %v6551_v28 }
 0x180   : > { %v1104_v22 = vrot.slane %v1044_v14, 1 }
 0x182   : > { %v6837_v61 = vsel %vm1120_vm0, %v1103_v16, %v1104_v22 }
 0x183   : > { %v827_v30 = vpop.f32.mrf.mxu0  ;;  %1310 = vmatpush.bf16.msrb.mxu0 %v6563_v31  ;;  %v6847_v31 = vpop.f32.mrf.mxu3 }
 0x184   : > { %v937_v23 = vadd.f32 %v936_v20, %v827_v30  ;;  %v1055_v1 = vpop.f32.mrf.mxu2 }
 0x186   : > { %v1046_v7 = vadd.f32 %v1045_v4, %v937_v23  ;;  %v946_v4 = vpop.f32.mrf.mxu1 }
 0x187   : > { %1311 = vmatpush.bf16.msrb.mxu0 %v6578_v34 }
 0x188   : > { %v1105_v10 = vrot.slane %v1046_v7, 1 }
 0x18a   : > { %v1133_v59 = vsel %vm1120_vm0, %v1104_v22, %v1105_v10 }
 0x18b   : > { %v6843_v28 = vadd.f32 %v1379_v15, %v1133_v59  ;;  %v830_v5 = vpop.f32.mrf.mxu0  ;;  %1312 = vmatpush.bf16.msrb.mxu0 %v6584_v35  ;;  %v1389_v30 = vpop.f32.mrf.mxu3 }
 0x18c   : > { %v940_v16 = vadd.f32 %v939_v55, %v830_v5  ;;  %v1058_v59 = vpop.f32.mrf.mxu2 }
 0x18e   : > { %v1049_v24 = vadd.f32 %v1048_v27, %v940_v16  ;;  %878 = vmatmul.bf16.gmra.mxu0 %v6607_v40  ;;  %v949_v23 = vpop.f32.mrf.mxu1 }
 0x190   : > { %v1106_v20 = vrot.slane %v1049_v24, 1 }
 0x192   : > { %v6851_v34 = vsel %vm1120_vm0, %v1105_v10, %v1106_v20 }
 0x193   : > { %v832_v17 = vpop.f32.mrf.mxu0 }
 0x194   : > { %v942_v14 = vadd.f32 %v941_v56, %v832_v17  ;;  %v6862_v56 = vpop.f32.mrf.mxu3 }
 0x196   : > { %v1051_v15 = vadd.f32 %v1050_v13, %v942_v14  ;;  %v951_v17 = vpop.f32.mrf.mxu1 }
 0x198   : > { %v1107_v22 = vrot.slane %v1051_v15, 1 }
 0x19a   : > { %v1131_v35 = vsel %vm1120_vm0, %v1106_v20, %v1107_v22 }
 0x19b   : > { %v6855_v55 = vadd.f32 %v1384_v3, %v1131_v35  ;;  %v835_v27 = vpop.f32.mrf.mxu0  ;;  %v1060_v3 = vpop.f32.mrf.mxu2 }
 0x19c   : > { %v945_v7 = vadd.f32 %v944_v25, %v835_v27  ;;  %v1394_v27 = vpop.f32.mrf.mxu3 }
 0x19e   : > { %v1054_v5 = vadd.f32 %v1053_v18, %v945_v7  ;;  %977 = vmatmul.bf16.vlgmr.msra.gmra.mxu0 %v6607_v40 }
 0x1a0   : > { %v1108_v10 = vrot.slane %v1054_v5, 1 }
 0x1a2   : > { %v6860_v16 = vsel %vm1120_vm0, %v1107_v22, %v1108_v10  ;;  %v954_v22 = vpop.f32.mrf.mxu1 }
 0x1a3   : > { %v837_v13 = vpop.f32.mrf.mxu0 }
 0x1a4   : > { %v947_v24 = vadd.f32 %v946_v4, %v837_v13  ;;  %v5914_v4 = vld [vmem:[%s9517_s1 + $0x78] sm:$0xff] }
 0x1a5   : > { %1414 = vmatpush.bf16.msra.mxu0 %v5914_v4 }
 0x1a6   : > { %v1056_v20 = vadd.f32 %v1055_v1, %v947_v24  ;;  %v1063_v1 = vpop.f32.mrf.mxu2  ;;  %v6879_v24 = vpop.f32.mrf.mxu3 }
 0x1a8   : > { %v1109_v14 = vrot.slane %v1056_v20, 1 }
 0x1aa   : > { %v1129_v25 = vsel %vm1120_vm0, %v1108_v10, %v1109_v14 }
 0x1ab   : > { %v6866_v15 = vadd.f32 %v1389_v30, %v1129_v25  ;;  %v840_v18 = vpop.f32.mrf.mxu0  ;;  %v956_v25 = vpop.f32.mrf.mxu1 }
 0x1ac   : > { %v950_v35 = vadd.f32 %v949_v23, %v840_v18  ;;  %v5913_v23 = vld [vmem:[%s9517_s1 + $0x70] sm:$0xff] }
 0x1ad   : > { %1415 = vmatpush.bf16.msra.mxu0 %v5913_v23 }
 0x1ae   : > { %v1059_v7 = vadd.f32 %v1058_v59, %v950_v35  ;;  %982 = vmatmul.bf16.gmra.mxu0 %v6571_v33  ;;  %v1399_v23 = vpop.f32.mrf.mxu3 }
 0x1b0   : > { %v1110_v5 = vrot.slane %v1059_v7, 1  ;;  %v1065_v7 = vpop.f32.mrf.mxu2 }
 0x1b2   : > { %v6874_v13 = vsel %vm1120_vm0, %v1109_v14, %v1110_v5 }
 0x1b3   : > { %v842_v30 = vpop.f32.mrf.mxu0 }
 0x1b4   : > { %v952_v10 = vadd.f32 %v951_v17, %v842_v30  ;;  %v5912_v17 = vld [vmem:[%s9517_s1 + $0x68] sm:$0xff] }
 0x1b5   : > { %1416 = vmatpush.bf16.msra.mxu0 %v5912_v17 }
 0x1b6   : > { %v1061_v59 = vadd.f32 %v1060_v3, %v952_v10  ;;  %v5922_v3 = vld [vmem:[%s9517_s1 + $0xb8] sm:$0xff] }
 0x1b7   : > { %1523 = vmatpush.bf16.msrb.mxu1 %v5922_v3 }
 0x1b8   : > { %v1111_v20 = vrot.slane %v1061_v59, 1  ;;  %v5921_v59 = vld [vmem:[%s9517_s1 + $0xb0] sm:$0xff] }
 0x1ba   : > { %v1127_v18 = vsel %vm1120_vm0, %v1110_v5, %v1111_v20 }
 0x1bb   : > { %v6883_v35 = vadd.f32 %v1394_v27, %v1127_v18  ;;  %v845_v14 = vpop.f32.mrf.mxu0  ;;  %v5911_v27 = vld [vmem:[%s9517_s1 + $0x60] sm:$0xff]  ;;  %1524 = vmatpush.bf16.msrb.mxu1 %v5921_v59 }
 0x1bc   : > { %v955_v4 = vadd.f32 %v954_v22, %v845_v14  ;;  %1417 = vmatpush.bf16.msra.mxu0 %v5911_v27  ;;  %v1068_v14 = vpop.f32.mrf.mxu2  ;;  %v6910_v27 = vpop.f32.mrf.mxu3 }
 0x1bd   : > { %9571 = vst [vmem:[#allocation19_spill] sm:$0xff] %v6910_v27 }
 0x1be   : > { %v1064_v30 = vadd.f32 %v1063_v1, %v955_v4  ;;  %987 = vmatmul.bf16.gmra.mxu0 %v6600_v39  ;;  %v959_v1 = vpop.f32.mrf.mxu1  ;;  %v5920_v4 = vld [vmem:[%s9517_s1 + $0xa8] sm:$0xff] }
 0x1bf   : > { %1525 = vmatpush.bf16.msrb.mxu1 %v5920_v4 }
 0x1c0   : > { %v1112_v10 = vrot.slane %v1064_v30, 1 }
 0x1c2   : > { %v6897_v5 = vsel %vm1120_vm0, %v1111_v20, %v1112_v10  ;;  %v5910_v20 = vld [vmem:[%s9517_s1 + $0x58] sm:$0xff] }
 0x1c3   : > { %v847_v22 = vpop.f32.mrf.mxu0  ;;  %1418 = vmatpush.bf16.msra.mxu0 %v5910_v20  ;;  %v5908_v20 = vld [vmem:[%s9517_s1 + $0x48] sm:$0xff] }
 0x1c4   : > { %v957_v18 = vadd.f32 %v956_v25, %v847_v22 }
 0x1c6   : > { %v1066_v17 = vadd.f32 %v1065_v7, %v957_v18  ;;  %v5919_v7 = vld [vmem:[%s9517_s1 + $0xa0] sm:$0xff]  ;;  %v5909_v18 = vld [vmem:[%s9517_s1 + $0x50] sm:$0xff] }
 0x1c7   : > { %1526 = vmatpush.bf16.msrb.mxu1 %v5919_v7  ;;  %1419 = vmatpush.bf16.msra.mxu0 %v5909_v18  ;;  %v1404_v7 = vpop.f32.mrf.mxu3  ;;  %v5916_v18 = vld [vmem:[%s9517_s1 + $0x88] sm:$0xff] }
 0x1c8   : > { %v1113_v30 = vrot.slane %v1066_v17, 1  ;;  %v961_v17 = vpop.f32.mrf.mxu1 }
 0x1ca   : > { %v1125_v3 = vsel %vm1120_vm0, %v1112_v10, %v1113_v30  ;;  %v5918_v10 = vld [vmem:[%s9517_s1 + $0x98] sm:$0xff] }
 0x1cb   : > { %v6912_v25 = vadd.f32 %v1399_v23, %v1125_v3  ;;  %v850_v22 = vpop.f32.mrf.mxu0  ;;  %v1070_v23 = vpop.f32.mrf.mxu2  ;;  %1527 = vmatpush.bf16.msrb.mxu1 %v5918_v10  ;;  %1420 = vmatpush.bf16.msra.mxu0 %v5908_v20 }
 0x1cc   : > { %v960_v59 = vadd.f32 %v959_v1, %v850_v22 }
 0x1cd   : > { %9572 = vst [vmem:[#allocation20_spill] sm:$0xff] %v6912_v25 }
 0x1ce   : > { %v1069_v4 = vadd.f32 %v1068_v14, %v960_v59  ;;  %1313 = vmatmul.bf16.vlgmr.msrb.gmra.mxu0 %v6515_v19  ;;  %v5917_v19 = vld [vmem:[%s9517_s1 + $0x90] sm:$0xff]  ;;  %v5907_v59 = vld [vmem:[%s9517_s1 + $0x40] sm:$0xff] }
 0x1cf   : > { %1528 = vmatpush.bf16.msrb.mxu1 %v5917_v19  ;;  %1421 = vmatpush.bf16.msra.mxu0 %v5907_v59  ;;  %v5915_v19 = vld [vmem:[%s9517_s1 + $0x80] sm:$0xff] }
 0x1d0   : > { %v1114_v1 = vrot.slane %v1069_v4, 1 }
 0x1d2   : > { %v6929_v3 = vsel %vm1120_vm0, %v1113_v30, %v1114_v1  ;;  %v964_v30 = vpop.f32.mrf.mxu1 }
 0x1d3   : > { %9573 = vst [vmem:[#allocation21_spill] sm:$0xff] %v6929_v3  ;;  %v852_v22 = vpop.f32.mrf.mxu0  ;;  %v1073_v20 = vpop.f32.mrf.mxu2  ;;  %1529 = vmatpush.bf16.msrb.mxu1 %v5916_v18 }
 0x1d4   : > { %v962_v14 = vadd.f32 %v961_v17, %v852_v22 }
 0x1d6   : > { %v1071_v4 = vadd.f32 %v1070_v23, %v962_v14  ;;  %v6948_v23 = vpop.f32.mrf.mxu3  ;;  %v5970_v14 = vld [vmem:[%s9517_s1 + $0x238] sm:$0xff] }
 0x1d7   : > { %1530 = vmatpush.bf16.msrb.mxu1 %v5915_v19  ;;  %2043 = vmatpush.bf16.msrb.mxu0 %v5970_v14 }
 0x1d8   : > { %v1115_v10 = vrot.slane %v1071_v4, 1 }
 0x1da   : > { %v1123_v27 = vsel %vm1120_vm0, %v1114_v1, %v1115_v10  ;;  %1531 = vmatmul.bf16.vlgmr.msrb.gmra.mxu1 %v6607_v40 }
 0x1db   : > { %v6942_v17 = vadd.f32 %v1404_v7, %v1123_v27  ;;  %v855_v22 = vpop.f32.mrf.mxu0  ;;  %v966_v27 = vpop.f32.mrf.mxu1 }
 0x1dc   : > { %v965_v3 = vadd.f32 %v964_v30, %v855_v22  ;;  %v1075_v18 = vpop.f32.mrf.mxu2 }
 0x1de   : > { %v1074_v25 = vadd.f32 %v1073_v20, %v965_v3  ;;  %1318 = vmatmul.bf16.gmra.mxu0 %v6566_v32  ;;  %v1409_v30 = vpop.f32.mrf.mxu3 }
 0x1e0   : > { %v1116_v59 = vrot.slane %v1074_v25, 1 }
 0x1e2   : > { %v6956_v1 = vsel %vm1120_vm0, %v1115_v10, %v1116_v59 }
 0x1e3   : > { %v857_v7 = vpop.f32.mrf.mxu0 }
 0x1e4   : > { %v967_v3 = vadd.f32 %v966_v27, %v857_v7  ;;  %v5954_v27 = vld [vmem:[%s9517_s1 + $0x1b8] sm:$0xff]  ;;  %v5969_v7 = vld [vmem:[%s9517_s1 + $0x230] sm:$0xff] }
 0x1e5   : > { %1825 = vmatpush.bf16.msrb.mxu2 %v5954_v27  ;;  %2044 = vmatpush.bf16.msrb.mxu0 %v5969_v7 }
 0x1e6   : > { %v1076_v4 = vadd.f32 %v1075_v18, %v967_v3 }
 0x1e8   : > { %v1117_v32 = vrot.slane %v1076_v4, 1 }
 0x1ea   : > { %v1121_v20 = vsel %vm1120_vm0, %v1116_v59, %v1117_v32  ;;  %1536 = vmatmul.bf16.gmra.mxu1 %v6571_v33  ;;  %v5962_v59 = vld [vmem:[%s9517_s1 + $0x1f8] sm:$0xff] }
 0x1eb   : > { %v6960_v22 = vadd.f32 %v1409_v30, %v1121_v20  ;;  %v869_v25 = vpop.f32.mrf.mxu0  ;;  %1934 = vmatpush.bf16.msrb.mxu3 %v5962_v59 }
 0x1ec   : > { %v870_v3 = vadd.f32 %v869_v25, %v6650_v47  ;;  %v5961_v47 = vld [vmem:[%s9517_s1 + $0x1f0] sm:$0xff] }
 0x1ed   : > { %9574 = vst [vmem:[#allocation22_spill] sm:$0xff] %v6960_v22 }
 0x1ee   : > { %1323 = vmatmul.bf16.gmra.mxu0 %v6596_v38 }
 0x1ef   : > { %1935 = vmatpush.bf16.msrb.mxu3 %v5961_v47 }
 0x1f3   : > { %v871_v19 = vpop.f32.mrf.mxu0 }
 0x1f4   : > { %v872_v27 = vadd.f32 %v871_v19, %v6654_v48  ;;  %v5968_v19 = vld [vmem:[%s9517_s1 + $0x228] sm:$0xff] }
 0x1f5   : > { %2045 = vmatpush.bf16.msrb.mxu0 %v5968_v19 }
 0x1fa   : > { %1541 = vmatmul.bf16.gmra.mxu1 %v6600_v39 }
 0x1fb   : > { %v874_v14 = vpop.f32.mrf.mxu0 }
 0x1fe   : > { %1422 = vmatmul.bf16.vlgmr.msra.gmra.mxu0 %v6596_v38 }
 0x203   : > { %v876_v10 = vpop.f32.mrf.mxu0 }
 0x20a   : > { %1546 = vmatmul.bf16.gmra.mxu1 %v6554_v29  ;;  %v5953_v29 = vld [vmem:[%s9517_s1 + $0x1b0] sm:$0xff] }
 0x20b   : > { %v879_v18 = vpop.f32.mrf.mxu0  ;;  %1826 = vmatpush.bf16.msrb.mxu2 %v5953_v29  ;;  %v5952_v29 = vld [vmem:[%s9517_s1 + $0x1a8] sm:$0xff] }
 0x20e   : > { %1427 = vmatmul.bf16.gmra.mxu0 %v6588_v36 }
 0x20f   : > { %1827 = vmatpush.bf16.msrb.mxu2 %v5952_v29  ;;  %v7049_v29 = vld [vmem:[%s6508_s17 + $0x50] sm:$0xff] }
 0x213   : > { %v881_v38 = vpop.f32.mrf.mxu0 }
 0x21a   : > { %1551 = vmatmul.bf16.gmra.mxu1 %v6591_v37  ;;  %v875_v37 = vadd.f32 %v874_v14, %v6661_v50 }
 0x21b   : > { %v978_v4 = vpop.f32.mrf.mxu0 }
 0x21c   : > { %v979_v30 = vadd.f32 %v978_v4, %v870_v3  ;;  %v877_v4 = vadd.f32 %v876_v10, %v6665_v53  ;;  %v882_v53 = vadd.f32 %v881_v38, %v6680_v0 }
 0x21e   : > { %v1078_v20 = vrot.slane %v979_v30, 1  ;;  %1432 = vmatmul.bf16.gmra.mxu0 %v6607_v40 }
 0x220   : > { %v6981_v22 = vsel %vm1120_vm0, %v1117_v32, %v1078_v20 }
 0x223   : > { %v980_v59 = vpop.f32.mrf.mxu0 }
 0x224   : > { %v981_v36 = vadd.f32 %v980_v59, %v872_v27 }
 0x226   : > { %v1079_v7 = vrot.slane %v981_v36, 1 }
 0x228   : > { %v1159_v40 = vsel %vm1120_vm0, %v1078_v20, %v1079_v7 }
 0x22a   : > { %1556 = vmatmul.bf16.gmra.mxu1 %v6611_v41 }
 0x22b   : > { %v983_v32 = vpop.f32.mrf.mxu0 }
 0x22c   : > { %v984_v48 = vadd.f32 %v983_v32, %v875_v37  ;;  %v7023_v37 = vld [vmem:[%s6508_s17 + $0x38] sm:$0xff] }
 0x22e   : > { %v1080_v25 = vrot.slane %v984_v48, 1  ;;  %1437 = vmatmul.bf16.gmra.mxu0 %v6571_v33  ;;  %v880_v33 = vadd.f32 %v879_v18, %v6676_v60  ;;  %v5960_v60 = vld [vmem:[%s9517_s1 + $0x1e8] sm:$0xff] }
 0x22f   : > { %1936 = vmatpush.bf16.msrb.mxu3 %v5960_v60  ;;  %v5966_v60 = vld [vmem:[%s9517_s1 + $0x218] sm:$0xff] }
 0x230   : > { %v1158_v3 = vsel %vm1120_vm0, %v1079_v7, %v1080_v25 }
 0x233   : > { %v985_v30 = vpop.f32.mrf.mxu0 }
 0x234   : > { %v986_v20 = vadd.f32 %v985_v30, %v877_v4  ;;  %v7031_v30 = vld [vmem:[%s6508_s17 + $0x40] sm:$0xff] }
 0x236   : > { %v1081_v50 = vrot.slane %v986_v20, 1 }
 0x238   : > { %v1157_v14 = vsel %vm1120_vm0, %v1080_v25, %v1081_v50  ;;  %v5967_v25 = vld [vmem:[%s9517_s1 + $0x220] sm:$0xff] }
 0x239   : > { %2046 = vmatpush.bf16.msrb.mxu0 %v5967_v25  ;;  %v5950_v25 = vld [vmem:[%s9517_s1 + $0x198] sm:$0xff] }
 0x23a   : > { %1561 = vmatmul.bf16.gmra.mxu1 %v6618_v42  ;;  %v9575_v42 = vrot.slane %v6687_v9, 1 }
 0x23b   : > { %v988_v27 = vpop.f32.mrf.mxu0 }
 0x23c   : > { %v989_v59 = vadd.f32 %v988_v27, %v880_v33  ;;  %v5951_v33 = vld [vmem:[%s9517_s1 + $0x1a0] sm:$0xff]  ;;  %v7042_v27 = vld [vmem:[%s6508_s17 + $0x48] sm:$0xff] }
 0x23d   : > { %1828 = vmatpush.bf16.msrb.mxu2 %v5951_v33  ;;  %2047 = vmatpush.bf16.msrb.mxu0 %v5966_v60  ;;  %v5948_v33 = vld [vmem:[%s9517_s1 + $0x188] sm:$0xff] }
 0x23e   : > { %v1082_v36 = vrot.slane %v989_v59, 1  ;;  %1442 = vmatmul.bf16.gmra.mxu0 %v6600_v39 }
 0x240   : > { %v1156_v41 = vsel %vm1120_vm0, %v1081_v50, %v1082_v36 }
 0x241   : > { %1829 = vmatpush.bf16.msrb.mxu2 %v5950_v25 }
 0x243   : > { %v990_v10 = vpop.f32.mrf.mxu0 }
 0x244   : > { %v991_v7 = vadd.f32 %v990_v10, %v882_v53 }
 0x246   : > { %v1083_v18 = vrot.slane %v991_v7, 1 }
 0x248   : > { %v1155_v39 = vsel %vm1120_vm0, %v1082_v36, %v1083_v18  ;;  %v1154_v0 = vsel %vm1120_vm0, %v1083_v18, %v9575_v42 }
 0x24a   : > { %1566 = vmatmul.bf16.gmra.mxu1 %v6625_v43 }
 0x24b   : > { %v1314_v38 = vpop.f32.mrf.mxu0 }
 0x24c   : > { %v1315_v47 = vadd.f32 %v1314_v38, %v1159_v40 }
 0x24e   : > { %1447 = vmatmul.bf16.gmra.mxu0 %v7023_v37 }
 0x253   : > { %v1316_v32 = vpop.f32.mrf.mxu0 }
 0x254   : > { %v1317_v48 = vadd.f32 %v1316_v32, %v1158_v3  ;;  %v7061_v32 = vld [vmem:[%s6508_s17 + $0x58] sm:$0xff] }
 0x257   : > { %v1532_v4 = vpop.f32.mrf.mxu1 }
 0x25a   : > { %1571 = vmatmul.bf16.gmra.mxu1 %v6632_v44 }
 0x25b   : > { %v1319_v9 = vpop.f32.mrf.mxu0 }
 0x25c   : > { %v1320_v19 = vadd.f32 %v1319_v9, %v1157_v14  ;;  %v5959_v14 = vld [vmem:[%s9517_s1 + $0x1e0] sm:$0xff]  ;;  %v7071_v9 = vld [vmem:[%s6508_s17 + $0x78] sm:$0xff] }
 0x25d   : > { %1937 = vmatpush.bf16.msrb.mxu3 %v5959_v14 }
 0x25e   : > { %1452 = vmatmul.bf16.gmra.mxu0 %v7031_v30 }
 0x25f   : > { %v1534_v43 = vpop.f32.mrf.mxu1 }
 0x263   : > { %v1321_v40 = vpop.f32.mrf.mxu0 }
 0x264   : > { %v1322_v20 = vadd.f32 %v1321_v40, %v1156_v41  ;;  %v5949_v40 = vld [vmem:[%s9517_s1 + $0x190] sm:$0xff] }
 0x265   : > { %1830 = vmatpush.bf16.msrb.mxu2 %v5949_v40  ;;  %v6283_v40 = vld [vmem:[%s6508_s17 + $0x8] sm:$0xff] }
 0x267   : > { %v1537_v44 = vpop.f32.mrf.mxu1 }
 0x269   : > { %1831 = vmatpush.bf16.msrb.mxu2 %v5948_v33 }
 0x26a   : > { %1576 = vmatmul.bf16.gmra.mxu1 %v6639_v45 }
 0x26b   : > { %v1324_v50 = vpop.f32.mrf.mxu0 }
 0x26c   : > { %v1325_v3 = vadd.f32 %v1324_v50, %v1155_v39 }
 0x26e   : > { %1457 = vmatmul.bf16.gmra.mxu0 %v7042_v27 }
 0x26f   : > { %v1539_v53 = vpop.f32.mrf.mxu1 }
 0x273   : > { %v1326_v59 = vpop.f32.mrf.mxu0 }
 0x274   : > { %v1327_v36 = vadd.f32 %v1326_v59, %v1154_v0 }
 0x277   : > { %v1542_v39 = vpop.f32.mrf.mxu1 }
 0x27a   : > { %1581 = vmatmul.bf16.gmra.mxu1 %v6646_v46  ;;  %v5958_v46 = vld [vmem:[%s9517_s1 + $0x1d8] sm:$0xff] }
 0x27b   : > { %v1423_v41 = vpop.f32.mrf.mxu0  ;;  %1938 = vmatpush.bf16.msrb.mxu3 %v5958_v46 }
 0x27c   : > { %v1424_v10 = vadd.f32 %v1423_v41, %v1315_v47  ;;  %v7088_v41 = vld [vmem:[%s6508_s17 + $0x60] sm:$0xff] }
 0x27e   : > { %v7046_v7 = vadd.f32 %v1532_v4, %v1424_v10  ;;  %1462 = vmatmul.bf16.gmra.mxu0 %v7049_v29  ;;  %v6280_v10 = vld [vmem:[%s6508_s17] sm:$0xff] }
 0x283   : > { %v1425_v45 = vpop.f32.mrf.mxu0 }
 0x284   : > { %v1426_v18 = vadd.f32 %v1425_v45, %v1317_v48  ;;  %v1544_v48 = vpop.f32.mrf.mxu1 }
 0x286   : > { %v7056_v42 = vadd.f32 %v1534_v43, %v1426_v18 }
 0x28a   : > { %1586 = vmatmul.bf16.gmra.mxu1 %v7071_v9 }
 0x28b   : > { %v1428_v0 = vpop.f32.mrf.mxu0 }
 0x28c   : > { %v1429_v38 = vadd.f32 %v1428_v0, %v1320_v19  ;;  %v1547_v50 = vpop.f32.mrf.mxu1 }
 0x28e   : > { %v7058_v47 = vadd.f32 %v1537_v44, %v1429_v38  ;;  %1467 = vmatmul.bf16.gmra.mxu0 %v7061_v32  ;;  %v9576_v38 = vld [vmem:[#allocation2_spill] sm:$0xff] }
 0x293   : > { %v1430_v19 = vpop.f32.mrf.mxu0 }
 0x294   : > { %v1431_v4 = vadd.f32 %v1430_v19, %v1322_v20  ;;  %v5947_v20 = vld [vmem:[%s9517_s1 + $0x180] sm:$0xff]  ;;  %v1549_v60 = vpop.f32.mrf.mxu1 }
 0x295   : > { %1832 = vmatpush.bf16.msrb.mxu2 %v5947_v20 }
 0x296   : > { %v7077_v43 = vadd.f32 %v1539_v53, %v1431_v4  ;;  %v7092_v53 = vld [vmem:[%s6508_s17 + $0x80] sm:$0xff]  ;;  %v7105_v4 = vld [vmem:[%s6508_s17 + $0x68] sm:$0xff] }
 0x298   : > { %1833 = vmatmul.bf16.vlgmr.msrb.gmra.mxu2 %v6280_v10  ;;  %v5956_v10 = vld [vmem:[%s9517_s1 + $0x1c8] sm:$0xff] }
 0x29a   : > { %1591 = vmatmul.bf16.gmra.mxu1 %v7092_v53 }
 0x29b   : > { %v1433_v14 = vpop.f32.mrf.mxu0 }
 0x29c   : > { %v1434_v44 = vadd.f32 %v1433_v14, %v1325_v3  ;;  %v1552_v46 = vpop.f32.mrf.mxu1 }
 0x29e   : > { %v7085_v59 = vadd.f32 %v1542_v39, %v1434_v44  ;;  %1472 = vmatmul.bf16.gmra.mxu0 %v7088_v41  ;;  %v5965_v39 = vld [vmem:[%s9517_s1 + $0x210] sm:$0xff] }
 0x29f   : > { %2048 = vmatpush.bf16.msrb.mxu0 %v5965_v39 }
 0x2a3   : > { %v1435_v3 = vpop.f32.mrf.mxu0 }
 0x2a4   : > { %v1436_v45 = vadd.f32 %v1435_v3, %v1327_v36  ;;  %v5957_v36 = vld [vmem:[%s9517_s1 + $0x1d0] sm:$0xff]  ;;  %v1554_v20 = vpop.f32.mrf.mxu1 }
 0x2a5   : > { %1939 = vmatpush.bf16.msrb.mxu3 %v5957_v36  ;;  %v6285_v36 = vld [vmem:[%s6508_s17 + $0x10] sm:$0xff] }
 0x2a6   : > { %v7096_v18 = vadd.f32 %v1544_v48, %v1436_v45  ;;  %v7112_v48 = vld [vmem:[%s6508_s17 + $0x88] sm:$0xff]  ;;  %v9578_v45 = vld [vmem:[#allocation4_spill] sm:$0xff] }
 0x2a8   : > { %1838 = vmatmul.bf16.gmra.mxu2 %v6283_v40 }
 0x2a9   : > { %1940 = vmatpush.bf16.msrb.mxu3 %v5956_v10 }
 0x2aa   : > { %1596 = vmatmul.bf16.gmra.mxu1 %v7112_v48 }
 0x2ab   : > { %v1438_v0 = vpop.f32.mrf.mxu0 }
 0x2ac   : > { %v1439_v25 = vadd.f32 %v1438_v0, %v9576_v38  ;;  %v5955_v0 = vld [vmem:[%s9517_s1 + $0x1c0] sm:$0xff] }
 0x2ad   : > { %1941 = vmatpush.bf16.msrb.mxu3 %v5955_v0  ;;  %v6286_v0 = vld [vmem:[%s6508_s17 + $0x18] sm:$0xff] }
 0x2ae   : > { %v7102_v19 = vadd.f32 %v1547_v50, %v1439_v25  ;;  %1477 = vmatmul.bf16.gmra.mxu0 %v7105_v4  ;;  %v9577_v50 = vld [vmem:[#allocation3_spill] sm:$0xff]  ;;  %v7129_v25 = vld [vmem:[%s6508_s17 + $0x70] sm:$0xff] }
 0x2b0   : > { %1942 = vmatmul.bf16.vlgmr.msrb.gmra.mxu3 %v6285_v36 }
 0x2b3   : > { %v1440_v33 = vpop.f32.mrf.mxu0 }
 0x2b4   : > { %v1441_v14 = vadd.f32 %v1440_v33, %v9577_v50  ;;  %v9579_v33 = vld [vmem:[#allocation5_spill] sm:$0xff] }
 0x2b6   : > { %v7117_v44 = vadd.f32 %v1549_v60, %v1441_v14  ;;  %v1557_v60 = vpop.f32.mrf.mxu1 }
 0x2b8   : > { %1843 = vmatmul.bf16.gmra.mxu2 %v6285_v36  ;;  %v9583_v36 = vld [vmem:[#allocation7_spill] sm:$0xff] }
 0x2ba   : > { %1601 = vmatmul.bf16.gmra.mxu1 %v6695_v21  ;;  %v5964_v21 = vld [vmem:[%s9517_s1 + $0x208] sm:$0xff] }
 0x2bb   : > { %v1443_v3 = vpop.f32.mrf.mxu0  ;;  %2049 = vmatpush.bf16.msrb.mxu0 %v5964_v21 }
 0x2bc   : > { %v1444_v39 = vadd.f32 %v1443_v3, %v9578_v45  ;;  %v9581_v3 = vld [vmem:[#allocation6_spill] sm:$0xff] }
 0x2be   : > { %v7126_v38 = vadd.f32 %v1552_v46, %v1444_v39  ;;  %1482 = vmatmul.bf16.gmra.mxu0 %v7129_v25  ;;  %v1559_v46 = vpop.f32.mrf.mxu1 }
 0x2c0   : > { %1947 = vmatmul.bf16.gmra.mxu3 %v6286_v0 }
 0x2c3   : > { %v1445_v40 = vpop.f32.mrf.mxu0 }
 0x2c4   : > { %v1446_v50 = vadd.f32 %v1445_v40, %v9579_v33 }
 0x2c6   : > { %v7135_v14 = vadd.f32 %v1554_v20, %v1446_v50  ;;  %v1562_v33 = vpop.f32.mrf.mxu1 }
 0x2c8   : > { %9580 = vst [vmem:[#allocation2_spill] sm:$0xff] %v7135_v14  ;;  %1848 = vmatmul.bf16.gmra.mxu2 %v6286_v0 }
 0x2ca   : > { %1606 = vmatmul.bf16.gmra.mxu1 %v6712_v62  ;;  %v7155_v62 = vld [vmem:[%s6508_s17 + $0x20] sm:$0xff] }
 0x2cb   : > { %v1448_v10 = vpop.f32.mrf.mxu0 }
 0x2cc   : > { %v1449_v45 = vadd.f32 %v1448_v10, %v9581_v3  ;;  %v9585_v10 = vld [vmem:[#allocation8_spill] sm:$0xff] }
 0x2ce   : > { %v7138_v39 = vadd.f32 %v1557_v60, %v1449_v45  ;;  %1487 = vmatmul.bf16.gmra.mxu0 %v7071_v9  ;;  %v1564_v21 = vpop.f32.mrf.mxu1 }
 0x2d0   : > { %9582 = vst [vmem:[#allocation3_spill] sm:$0xff] %v7138_v39  ;;  %1952 = vmatmul.bf16.gmra.mxu3 %v7155_v62  ;;  %v7249_v39 = vld [vmem:[%s6508_s17 + $0xa8] sm:$0xff] }
 0x2d3   : > { %v1450_v20 = vpop.f32.mrf.mxu0 }
 0x2d4   : > { %v1451_v40 = vadd.f32 %v1450_v20, %v9583_v36 }
 0x2d6   : > { %v7147_v50 = vadd.f32 %v1559_v46, %v1451_v40  ;;  %v1567_v36 = vpop.f32.mrf.mxu1 }
 0x2d8   : > { %9584 = vst [vmem:[#allocation4_spill] sm:$0xff] %v7147_v50  ;;  %1853 = vmatmul.bf16.gmra.mxu2 %v7155_v62 }
 0x2da   : > { %1611 = vmatmul.bf16.gmra.mxu1 %v6727_v8  ;;  %v7168_v8 = vld [vmem:[%s6508_s17 + $0x28] sm:$0xff] }
 0x2db   : > { %v1453_v60 = vpop.f32.mrf.mxu0 }
 0x2dc   : > { %v1454_v3 = vadd.f32 %v1453_v60, %v9585_v10 }
 0x2de   : > { %v7150_v45 = vadd.f32 %v1562_v33, %v1454_v3  ;;  %1492 = vmatmul.bf16.gmra.mxu0 %v7092_v53  ;;  %v1569_v10 = vpop.f32.mrf.mxu1 }
 0x2e0   : > { %9586 = vst [vmem:[#allocation5_spill] sm:$0xff] %v7150_v45  ;;  %1957 = vmatmul.bf16.gmra.mxu3 %v7168_v8 }
 0x2e3   : > { %v1455_v0 = vpop.f32.mrf.mxu0 }
 0x2e4   : > { %v1456_v46 = vadd.f32 %v1455_v0, %v6755_v63  ;;  %v9590_v0 = vld [vmem:[#allocation13_spill] sm:$0xff] }
 0x2e6   : > { %v7160_v20 = vadd.f32 %v1564_v21, %v1456_v46 }
 0x2e8   : > { %9587 = vst [vmem:[#allocation6_spill] sm:$0xff] %v7160_v20  ;;  %1858 = vmatmul.bf16.gmra.mxu2 %v7168_v8 }
 0x2ea   : > { %1616 = vmatmul.bf16.gmra.mxu1 %v6742_v52 }
 0x2eb   : > { %v1458_v40 = vpop.f32.mrf.mxu0 }
 0x2ec   : > { %v1459_v33 = vadd.f32 %v1458_v40, %v6764_v12  ;;  %v5963_v12 = vld [vmem:[%s9517_s1 + $0x200] sm:$0xff] }
 0x2ed   : > { %2050 = vmatpush.bf16.msrb.mxu0 %v5963_v12  ;;  %v9592_v40 = vld [vmem:[#allocation10_spill] sm:$0xff] }
 0x2ee   : > { %v7163_v60 = vadd.f32 %v1567_v36, %v1459_v33  ;;  %1497 = vmatmul.bf16.gmra.mxu0 %v7112_v48  ;;  %v7182_v36 = vld [vmem:[%s6508_s17 + $0x90] sm:$0xff]  ;;  %v9593_v33 = vld [vmem:[#allocation14_spill] sm:$0xff] }
 0x2f0   : > { %9588 = vst [vmem:[#allocation7_spill] sm:$0xff] %v7163_v60 }
 0x2f3   : > { %v1460_v63 = vpop.f32.mrf.mxu0 }
 0x2f4   : > { %v1461_v3 = vadd.f32 %v1460_v63, %v6772_v54  ;;  %v9594_v54 = vld [vmem:[#allocation9_spill] sm:$0xff] }
 0x2f5   : > { %v1357_v63 = vadd.f32 %v9594_v54, %v9593_v33  ;;  %v9598_v33 = vld [vmem:[#allocation12_spill] sm:$0xff]  ;;  %v9599_v54 = vld [vmem:[#allocation17_spill] sm:$0xff] }
 0x2f6   : > { %v7173_v21 = vadd.f32 %v1569_v10, %v1461_v3  ;;  %v7189_v10 = vld [vmem:[%s6508_s17 + $0x30] sm:$0xff] }
 0x2f7   : > { %1962 = vmatmul.bf16.gmra.mxu3 %v7189_v10 }
 0x2f8   : > { %9589 = vst [vmem:[#allocation8_spill] sm:$0xff] %v7173_v21  ;;  %1863 = vmatmul.bf16.gmra.mxu2 %v7189_v10  ;;  %v9600_v21 = vld [vmem:[#allocation11_spill] sm:$0xff] }
 0x2f9   : > { %v1362_v60 = vadd.f32 %v9600_v21, %v9599_v54  ;;  %v7219_v21 = vadd.s32 24, %v6669_v57 }
 0x2fa   : > { %1621 = vmatmul.bf16.gmra.mxu1 %v9592_v40  ;;  %v7199_v40 = vld [vmem:[%s6508_s17 + $0x98] sm:$0xff] }
 0x2fb   : > { %v1463_v52 = vpop.f32.mrf.mxu0  ;;  %6212 = vset.pattern.permute.xlu0 %v7219_v21 }
 0x2fc   : > { %v7179_v46 = vadd.f32 %v1463_v52, %v9590_v0  ;;  %v9596_v0 = vld [vmem:[#allocation16_spill] sm:$0xff] }
 0x2fe   : > { %9591 = vst [vmem:[#allocation13_spill] sm:$0xff] %v7179_v46  ;;  %1502 = vmatmul.bf16.gmra.mxu0 %v7182_v36 }
 0x303   : > { %v1465_v3 = vpop.f32.mrf.mxu0 }
 0x304   : > { %v7193_v12 = vadd.f32 %v1465_v3, %v1357_v63 }
 0x306   : > { %9595 = vst [vmem:[#allocation10_spill] sm:$0xff] %v7193_v12 }
 0x307   : > { %1967 = vmatmul.bf16.gmra.mxu3 %v7023_v37 }
 0x308   : > { %1868 = vmatmul.bf16.gmra.mxu2 %v7023_v37 }
 0x30a   : > { %1626 = vmatmul.bf16.gmra.mxu1 %v9598_v33  ;;  %v7222_v33 = vadd.s32 8, %v6669_v57 }
 0x30b   : > { %v1468_v52 = vpop.f32.mrf.mxu0 }
 0x30c   : > { %v7196_v46 = vadd.f32 %v1468_v52, %v9596_v0  ;;  %6224 = vset.pattern.permute.xlu1 %v7222_v33  ;;  %vm2373_vm3 = vcmp.lt.s32.totalorder %v7222_v33, 9 }
 0x30e   : > { %9597 = vst [vmem:[#allocation14_spill] sm:$0xff] %v7196_v46  ;;  %1507 = vmatmul.bf16.gmra.mxu0 %v7199_v40  ;;  %v7215_v46 = vld [vmem:[%s6508_s17 + $0xa0] sm:$0xff] }
 0x313   : > { %v1470_v63 = vpop.f32.mrf.mxu0 }
 0x314   : > { %v7207_v3 = vadd.f32 %v1470_v63, %v1362_v60  ;;  %v9603_v60 = vld [vmem:[#allocation15_spill] sm:$0xff] }
 0x315   : > { %v1367_v54 = vadd.f32 %v9603_v60, %v6810_v49 }
 0x316   : > { %9601 = vst [vmem:[#allocation9_spill] sm:$0xff] %v7207_v3 }
 0x317   : > { %1972 = vmatmul.bf16.gmra.mxu3 %v7031_v30 }
 0x318   : > { %1873 = vmatmul.bf16.gmra.mxu2 %v7031_v30 }
 0x31b   : > { %v1473_v52 = vpop.f32.mrf.mxu0  ;;  %v1834_v60 = vpop.f32.mrf.mxu2 }
 0x31c   : > { %v7212_v0 = vadd.f32 %v1473_v52, %v6805_v6  ;;  %v9604_v6 = vlaneseq  ;;  %v2366_v52 = vstv %s2365_s22 }
 0x31d   : > { %vm2367_vm2 = vcmp.eq.s32.totalorder %v2366_v52, 1 }
 0x31e   : > { %9602 = vst [vmem:[#allocation16_spill] sm:$0xff] %v7212_v0  ;;  %1512 = vmatmul.bf16.gmra.mxu0 %v7215_v46  ;;  %v2359_v63 = vand.u32 127, %v9604_v6  ;;  %v2375_v0 = vstv %s2374_s23  ;;  %vm2368_vm6 = vmor %vm2363_vm1, %vm2367_vm2  ;;  %v6357_v6 = vmov 0.0  }
 0x31f   : > { %vm2376_vm4 = vcmp.eq.s32.totalorder %v2375_v0, 1 }
 0x320   : > { %vm2362_vm5 = vcmp.lt.s32.totalorder %v2359_v63, 16  ;;  %vm2378_vm8 = vmor %vm2373_vm3, %vm2376_vm4 }
 0x321   : > { %vm2370_vm7 = vmand %vm2362_vm5, %vm2368_vm6 }
 0x322   : > { %v7235_v12 = vsel %vm2370_vm7, 1.0, %v6357_v6  ;;  %vm2380_vm9 = vmand %vm2362_vm5, %vm2378_vm8 }
 0x323   : > { %v1475_v3 = vpop.f32.mrf.mxu0  ;;  %v2385_v20 = vperm.slane %v7235_v12, 0  ;;  %v2410_v45 = vperm.slane %v7235_v12, 1  ;;  %v7239_v52 = vsel %vm2380_vm9, 1.0, %v6357_v6  ;;  %v1836_v50 = vpop.f32.mrf.mxu2  ;;  %v9609_v6 = vld [vmem:[#allocation18_spill] sm:$0xff] }
 0x324   : > { %v7233_v49 = vadd.f32 %v1475_v3, %v1367_v54  ;;  %9606 = vst [vmem:[#allocation17_spill] sm:$0xff] %v7239_v52  ;;  %v7242_v63 = vperm.slane %v7239_v52, 1  ;;  %v1372_v14 = vadd.f32 %v9609_v6, %v6822_v58  ;;  %v7267_v6 = vadd.s32 16, %v6669_v57 }
 0x325   : > { %v6225_v0 = vpack.i.bf16 %v2385_v20, %v2410_v45 }
 0x326   : > { %9605 = vst [vmem:[#allocation12_spill] sm:$0xff] %v7233_v49  ;;  %v6213_v3 = vpack.i.bf16 %v7242_v63, %v2385_v20 }
 0x327   : > { %9607 = vst [vmem:[#allocation11_spill] sm:$0xff] %v7242_v63  ;;  %6226 = vperm.xlu1 %6224, %v6225_v0   ;;  %1977 = vmatmul.bf16.gmra.mxu3 %v7042_v27 }
 0x328   : > { %6214 = vperm.xlu0 %6212, %v6213_v3   ;;  %1878 = vmatmul.bf16.gmra.mxu2 %v7042_v27 }
 0x32b   : > { %v1478_v54 = vpop.f32.mrf.mxu0 }
 0x32c   : > { %v7246_v49 = vadd.f32 %v1478_v54, %v6816_v26  ;;  %v1839_v26 = vpop.f32.mrf.mxu2 }
 0x32e   : > { %9608 = vst [vmem:[#allocation15_spill] sm:$0xff] %v7246_v49  ;;  %1517 = vmatmul.bf16.gmra.mxu0 %v7249_v39  ;;  %v7263_v49 = vpop.f32.mrf.mxu3 }
 0x32f   : > { %6230 = vset.pattern.permute.xlu1 %v7219_v21 }
 0x330   : > { %6218 = vset.pattern.permute.xlu0 %v6669_v57 }
 0x333   : > { %v1480_v52 = vpop.f32.mrf.mxu0 }
 0x334   : > { %v7257_v20 = vadd.f32 %v1480_v52, %v1372_v14  ;;  %v1841_v58 = vpop.f32.mrf.mxu2  ;;  %v1377_v14 = vadd.f32 %v6812_v2, %v6837_v61 }
 0x336   : > { %9610 = vst [vmem:[#allocation18_spill] sm:$0xff] %v7257_v20 }
 0x337   : > { %2433 = vperm.xlu1 %6230, %v2410_v45   ;;  %1982 = vmatmul.bf16.gmra.mxu3 %v7049_v29 }
 0x338   : > { %6220 = vperm.xlu0 %6218, %v6225_v0   ;;  %1883 = vmatmul.bf16.gmra.mxu2 %v7049_v29 }
 0x33b   : > { %v1483_v3 = vpop.f32.mrf.mxu0 }
 0x33c   : > { %v7261_v54 = vadd.f32 %v1483_v3, %v6830_v51  ;;  %v1844_v52 = vpop.f32.mrf.mxu2  ;;  %v1943_v3 = vpop.f32.mrf.mxu3 }
 0x33e   : > { %9611 = vst [vmem:[#allocation23_spill] sm:$0xff] %v7261_v54  ;;  %2051 = vmatmul.bf16.vlgmr.msrb.gmra.mxu0 %v7155_v62  ;;  %v7277_v62 = vadd.f32 %v1943_v3, %v1834_v60 }
 0x33f   : > { %6233 = vset.pattern.permute.xlu1 %v7267_v6 }
 0x340   : > { %6240 = vset.pattern.permute.xlu0 %v7219_v21 }
 0x343   : > { %v1485_v45 = vpop.f32.mrf.mxu0 }
 0x344   : > { %v7274_v51 = vadd.f32 %v1485_v45, %v1377_v14  ;;  %v1846_v2 = vpop.f32.mrf.mxu2  ;;  %v1945_v61 = vpop.f32.mrf.mxu3  ;;  %v1382_v14 = vadd.f32 %v6828_v11, %v6851_v34 }
 0x345   : > { %v7283_v63 = vadd.f32 %v1945_v61, %v1836_v50  ;;  %v1387_v61 = vadd.f32 %v6847_v31, %v6860_v16  ;;  %v1392_v16 = vadd.f32 %v6862_v56, %v6874_v13  ;;  %v1397_v13 = vadd.f32 %v6879_v24, %v6897_v5 }
 0x346   : > { %9612 = vst [vmem:[#allocation24_spill] sm:$0xff] %v7274_v51  ;;  %v6006_v51 = vld [vmem:[%s9519_s3 + $0x118] sm:$0xff] }
 0x347   : > { %6235 = vperm.xlu1 %6233, %v6225_v0   ;;  %1987 = vmatmul.bf16.gmra.mxu3 %v7061_v32 }
 0x348   : > { %1888 = vmatmul.bf16.gmra.mxu2 %v7061_v32 }
 0x34b   : > { %v1488_v54 = vpop.f32.mrf.mxu0 }
 0x34c   : > { %v7280_v20 = vadd.f32 %v1488_v54, %v6843_v28  ;;  %v7292_v28 = vpop.f32.mrf.mxu2  ;;  %v1948_v54 = vpop.f32.mrf.mxu3 }
 0x34d   : > { %v7294_v45 = vadd.f32 %v1948_v54, %v1839_v26 }
 0x34e   : > { %9613 = vst [vmem:[#allocation25_spill] sm:$0xff] %v7280_v20  ;;  %2056 = vmatmul.bf16.gmra.mxu0 %v7168_v8 }
 0x34f   : > { %6241 = vset.pattern.permute.xlu1 %v6669_v57 }
 0x353   : > { %v1490_v60 = vpop.f32.mrf.mxu0 }
 0x354   : > { %v7290_v0 = vadd.f32 %v1490_v60, %v1382_v14  ;;  %v1851_v3 = vpop.f32.mrf.mxu2  ;;  %v1950_v11 = vpop.f32.mrf.mxu3 }
 0x355   : > { %v7300_v34 = vadd.f32 %v1950_v11, %v1841_v58 }
 0x356   : > { %9614 = vst [vmem:[#allocation26_spill] sm:$0xff] %v7290_v0 }
 0x357   : > { %1992 = vmatmul.bf16.gmra.mxu3 %v7088_v41 }
 0x358   : > { %1893 = vmatmul.bf16.gmra.mxu2 %v7088_v41 }
 0x35b   : > { %v1493_v8 = vpop.f32.mrf.mxu0 }
 0x35c   : > { %v7297_v50 = vadd.f32 %v1493_v8, %v6855_v55  ;;  %v7308_v60 = vpop.f32.mrf.mxu2  ;;  %v1953_v55 = vpop.f32.mrf.mxu3 }
 0x35d   : > { %v7310_v54 = vadd.f32 %v1953_v55, %v1844_v52 }
 0x35e   : > { %9615 = vst [vmem:[#allocation27_spill] sm:$0xff] %v7297_v50  ;;  %2061 = vmatmul.bf16.gmra.mxu0 %v7189_v10 }
 0x363   : > { %v1495_v14 = vpop.f32.mrf.mxu0 }
 0x364   : > { %v7306_v26 = vadd.f32 %v1495_v14, %v1387_v61  ;;  %v1856_v58 = vpop.f32.mrf.mxu2  ;;  %v1955_v11 = vpop.f32.mrf.mxu3 }
 0x365   : > { %v7316_v31 = vadd.f32 %v1955_v11, %v1846_v2  ;;  %v2435_v11 = vperm.slane %v7235_v12, 2 }
 0x366   : > { %9616 = vst [vmem:[#allocation28_spill] sm:$0xff] %v7306_v26 }
 0x367   : > { %1997 = vmatmul.bf16.gmra.mxu3 %v7105_v4  ;;  %2440 = vperm.xlu2 %6231, %v2435_v11  }
 0x368   : > { %1898 = vmatmul.bf16.gmra.mxu2 %v7105_v4  ;;  %2458 = vperm.xlu0 %6240, %v2435_v11  }
 0x36b   : > { %v1498_v8 = vpop.f32.mrf.mxu0 }
 0x36c   : > { %v7313_v10 = vadd.f32 %v1498_v8, %v6866_v15  ;;  %v7324_v14 = vpop.f32.mrf.mxu2  ;;  %v7326_v15 = vpop.f32.mrf.mxu3 }
 0x36e   : > { %9617 = vst [vmem:[#allocation29_spill] sm:$0xff] %v7313_v10  ;;  %2066 = vmatmul.bf16.gmra.mxu0 %v7023_v37  ;;  %v2460_v10 = vperm.slane %v7235_v12, 3 }
 0x36f   : > { %6232 = vset.pattern.permute.xlu2 %v7222_v33 }
 0x370   : > { %6245 = vset.pattern.permute.xlu0 %v6669_v57  ;;  %2465 = vperm.xlu1 %6241, %v2460_v10  }
 0x373   : > { %v1500_v61 = vpop.f32.mrf.mxu0 }
 0x374   : > { %v7322_v52 = vadd.f32 %v1500_v61, %v1392_v16  ;;  %v1861_v37 = vpop.f32.mrf.mxu2  ;;  %v1960_v2 = vpop.f32.mrf.mxu3 }
 0x375   : > { %v7332_v56 = vadd.f32 %v1960_v2, %v1851_v3  ;;  %v9621_v3 = vld [vmem:[#allocation20_spill] sm:$0xff] }
 0x376   : > { %9618 = vst [vmem:[#allocation30_spill] sm:$0xff] %v7322_v52 }
 0x377   : > { %2002 = vmatmul.bf16.gmra.mxu3 %v7129_v25  ;;  %2446 = vperm.xlu2 %6232, %v2435_v11  }
 0x378   : > { %1903 = vmatmul.bf16.gmra.mxu2 %v7129_v25  ;;  %6243 = vset.pattern.permute.xlu1 %v7267_v6 }
 0x37b   : > { %v1503_v55 = vpop.f32.mrf.mxu0 }
 0x37c   : > { %v7329_v8 = vadd.f32 %v1503_v55, %v6883_v35  ;;  %v7341_v35 = vpop.f32.mrf.mxu2  ;;  %v7343_v55 = vpop.f32.mrf.mxu3 }
 0x37e   : > { %9619 = vst [vmem:[#allocation31_spill] sm:$0xff] %v7329_v8  ;;  %2071 = vmatmul.bf16.gmra.mxu0 %v7031_v30 }
 0x37f   : > { %6239 = vset.pattern.permute.xlu2 %v7267_v6 }
 0x380   : > { %2477 = vperm.xlu1 %6243, %v2460_v10  }
 0x383   : > { %v1505_v16 = vpop.f32.mrf.mxu0 }
 0x384   : > { %v7339_v61 = vadd.f32 %v1505_v16, %v1397_v13  ;;  %v1866_v24 = vpop.f32.mrf.mxu2  ;;  %v1965_v5 = vpop.f32.mrf.mxu3  ;;  %v9623_v16 = vld [vmem:[#allocation21_spill] sm:$0xff] }
 0x385   : > { %v7351_v13 = vadd.f32 %v1965_v5, %v1856_v58 }
 0x386   : > { %9620 = vst [vmem:[#allocation32_spill] sm:$0xff] %v7339_v61  ;;  %v9624_v61 = vld [vmem:[#allocation19_spill] sm:$0xff] }
 0x387   : > { %v1402_v8 = vadd.f32 %v9624_v61, %v9623_v16  ;;  %2007 = vmatmul.bf16.gmra.mxu3 %v7071_v9  ;;  %2452 = vperm.xlu2 %6239, %v2435_v11  }
 0x388   : > { %1908 = vmatmul.bf16.gmra.mxu2 %v7071_v9  ;;  %6246 = vset.pattern.permute.xlu1 %v7222_v33 }
 0x38b   : > { %v1508_v30 = vpop.f32.mrf.mxu0 }
 0x38c   : > { %v7346_v2 = vadd.f32 %v1508_v30, %v9621_v3  ;;  %v7359_v3 = vpop.f32.mrf.mxu2 }
 0x38e   : > { %9622 = vst [vmem:[#allocation20_spill] sm:$0xff] %v7346_v2  ;;  %2076 = vmatmul.bf16.gmra.mxu0 %v7042_v27  ;;  %v7361_v2 = vpop.f32.mrf.mxu3 }
 0x38f   : > { %6242 = vset.pattern.permute.xlu2 %v7222_v33 }
 0x393   : > { %v1510_v52 = vpop.f32.mrf.mxu0 }
 0x394   : > { %v7357_v30 = vadd.f32 %v1510_v52, %v1402_v8  ;;  %v7368_v61 = vpop.f32.mrf.mxu2  ;;  %v1407_v8 = vadd.f32 %v6948_v23, %v6956_v1  ;;  %v6002_v23 = vld [vmem:[%s9519_s3 + $0xf8] sm:$0xff] }
 0x395   : > { %3157 = vmatpush.bf16.msra.mxu1 %v6002_v23 }
 0x396   : > { %9625 = vst [vmem:[#allocation21_spill] sm:$0xff] %v7357_v30  ;;  %v1970_v5 = vpop.f32.mrf.mxu3 }
 0x397   : > { %v7371_v52 = vadd.f32 %v1970_v5, %v1861_v37  ;;  %2012 = vmatmul.bf16.gmra.mxu3 %v7092_v53  ;;  %v9628_v37 = vld [vmem:[#allocation22_spill] sm:$0xff]  ;;  %2471 = vperm.xlu2 %6242, %v2460_v10  }
 0x398   : > { %1913 = vmatmul.bf16.gmra.mxu2 %v7092_v53 }
 0x399   : > { %v7426_v30 = vpop.permute.xlu1 %6226 }
 0x39b   : > { %v1513_v27 = vpop.f32.mrf.mxu0 }
 0x39c   : > { %v7365_v58 = vadd.f32 %v1513_v27, %v6942_v17  ;;  %v7380_v27 = vpop.f32.mrf.mxu2 }
 0x39e   : > { %9626 = vst [vmem:[#allocation19_spill] sm:$0xff] %v7365_v58  ;;  %2081 = vmatmul.bf16.gmra.mxu0 %v7049_v29  ;;  %v7382_v58 = vpop.f32.mrf.mxu3  ;;  %v6010_v29 = vld [vmem:[%s9519_s3 + $0x138] sm:$0xff] }
 0x39f   : > { %3246 = vmatpush.bf16.msra.mxu2 %v6010_v29  ;;  %6244 = vset.pattern.permute.xlu2 %v7219_v21 }
 0x3a3   : > { %v1515_v16 = vpop.f32.mrf.mxu0 }
 0x3a4   : > { %v7377_v17 = vadd.f32 %v1515_v16, %v1407_v8  ;;  %v7394_v11 = vpop.f32.mrf.mxu2  ;;  %v1412_v16 = vadd.f32 %v7263_v49, %v6981_v22  ;;  %v6018_v49 = vld [vmem:[%s9519_s3 + $0x178] sm:$0xff] }
 0x3a5   : > { %3335 = vmatpush.bf16.msra.mxu3 %v6018_v49 }
 0x3a6   : > { %9627 = vst [vmem:[#allocation33_spill] sm:$0xff] %v7377_v17  ;;  %v1975_v8 = vpop.f32.mrf.mxu3 }
 0x3a7   : > { %2017 = vmatmul.bf16.gmra.mxu3 %v7112_v48  ;;  %2483 = vperm.xlu2 %6244, %v2460_v10  }
 0x3a8   : > { %1918 = vmatmul.bf16.gmra.mxu2 %v7112_v48 }
 0x3a9   : > { %v7466_v0 = vpop.permute.xlu1 %2433 }
 0x3ab   : > { %v1518_v1 = vpop.f32.mrf.mxu0 }
 0x3ac   : > { %v7391_v5 = vadd.f32 %v1518_v1, %v9628_v37  ;;  %v7404_v23 = vpop.f32.mrf.mxu2  ;;  %v2485_v37 = vperm.slane %v7235_v12, 4 }
 0x3ae   : > { %9629 = vst [vmem:[#allocation22_spill] sm:$0xff] %v7391_v5  ;;  %2086 = vmatmul.bf16.gmra.mxu0 %v7061_v32  ;;  %v7406_v1 = vpop.f32.mrf.mxu3  ;;  %2490 = vperm.xlu0 %6245, %v2485_v37  }
 0x3af   : > { %2496 = vperm.xlu1 %6246, %v2485_v37   ;;  %6247 = vset.pattern.permute.xlu2 %v7267_v6 }
 0x3b3   : > { %v1520_v17 = vpop.f32.mrf.mxu0 }
 0x3b4   : > { %v7401_v29 = vadd.f32 %v1520_v17, %v1412_v16  ;;  %v7413_v22 = vpop.f32.mrf.mxu2  ;;  %v7419_v17 = vadd.f32 %v1975_v8, %v1866_v24  ;;  %v6009_v24 = vld [vmem:[%s9519_s3 + $0x130] sm:$0xff] }
 0x3b5   : > { %9632 = vst [vmem:[#allocation36_spill] sm:$0xff] %v7413_v22  ;;  %3247 = vmatpush.bf16.msra.mxu2 %v6009_v24 }
 0x3b6   : > { %9630 = vst [vmem:[#allocation34_spill] sm:$0xff] %v7401_v29  ;;  %v1980_v16 = vpop.f32.mrf.mxu3  ;;  %6250 = vset.pattern.permute.xlu0 %v7222_v33 }
 0x3b7   : > { %2022 = vmatmul.bf16.gmra.mxu3 %v7182_v36  ;;  %6248 = vset.pattern.permute.xlu1 %v7219_v21  ;;  %v7450_v50 = vadd.f32 %v1980_v16, %v7368_v61  ;;  %v6007_v61 = vld [vmem:[%s9519_s3 + $0x120] sm:$0xff] }
 0x3b8   : > { %1923 = vmatmul.bf16.gmra.mxu2 %v7182_v36  ;;  %2502 = vperm.xlu2 %6247, %v2485_v37  }
 0x3bb   : > { %v2052_v32 = vpop.f32.mrf.mxu0 }
 0x3bc   : > { %v7410_v5 = vadd.f32 %v2052_v32, %v7277_v62  ;;  %v7422_v32 = vpop.permute.xlu0 %6214 }
 0x3bd   : > { %9633 = vst [vmem:[#allocation37_spill] sm:$0xff] %v7422_v32 }
 0x3be   : > { %9631 = vst [vmem:[#allocation35_spill] sm:$0xff] %v7410_v5  ;;  %2091 = vmatmul.bf16.gmra.mxu0 %v7088_v41  ;;  %v7430_v41 = vpop.f32.mrf.mxu2  ;;  %v9532_v8 = vrot.slane %v7410_v5, 2  ;;  %v7437_v26 = vpop.f32.mrf.mxu3 }
 0x3bf   : > { %9634 = vst [vmem:[#allocation38_spill] sm:$0xff] %v7430_v41  ;;  %2508 = vperm.xlu1 %6248, %v2485_v37  }
 0x3c0   : > { %6249 = vset.pattern.permute.xlu2 %v6669_v57 }
 0x3c3   : > { %v2054_v62 = vpop.f32.mrf.mxu0 }
 0x3c4   : > { %v2055_v29 = vadd.f32 %v2054_v62, %v7283_v63  ;;  %v7447_v62 = vld [vmem:[%s9518_s2] ss:$0 sm:$0xff] }
 0x3c6   : > { %v2153_v49 = vrot.slane %v2055_v29, 2  ;;  %v6008_v29 = vld [vmem:[%s9519_s3 + $0x128] sm:$0xff] }
 0x3c7   : > { %3248 = vmatpush.bf16.msra.mxu2 %v6008_v29  ;;  %v7468_v29 = vpop.f32.mrf.mxu3  ;;  %2027 = vmatmul.bf16.gmra.mxu3 %v7199_v40 }
 0x3c8   : > { %v2231_v63 = vsel %vm2192_vm10, %v9532_v8, %v2153_v49  ;;  %v7457_v8 = vpop.permute.xlu0 %6220  ;;  %1928 = vmatmul.bf16.gmra.mxu2 %v7199_v40  ;;  %6251 = vset.pattern.permute.xlu1 %v7267_v6 }
 0x3c9   : > { %v2233_v10 = vadd.f32 %v2231_v63, %v7046_v7  ;;  %v7460_v63 = vpop.f32.mrf.mxu2 }
 0x3ca   : > { %9635 = vst [vmem:[#allocation39_spill] sm:$0xff] %v7460_v63 }
 0x3cb   : > { %v2057_v24 = vpop.f32.mrf.mxu0  ;;  %v2277_v7 = vadd.f32 %v7447_v62, %v2233_v10  ;;  %3249 = vmatpush.bf16.msra.mxu2 %v6007_v61 }
 0x3cc   : > { %v2058_v5 = vadd.f32 %v2057_v24, %v7294_v45  ;;  %v6223_v24 = vunpack.i.h.bf16 %v7457_v8 }
 0x3cd   : > { %v2317_v20 = vmax.f32 %v2277_v7, 0.0 }
 0x3ce   : > { %v2154_v16 = vrot.slane %v2058_v5, 2  ;;  %2096 = vmatmul.bf16.gmra.mxu0 %v7105_v4  ;;  %v6229_v4 = vunpack.i.h.bf16 %v7426_v30 }
 0x3cf   : > { %3250 = vmatpush.bf16.msra.mxu2 %v6006_v51  ;;  %v7482_v61 = vmul.f32 %v6223_v24, %v2317_v20  ;;  %v7495_v20 = vpop.permute.xlu1 %6235  ;;  %v6004_v24 = vld [vmem:[%s9519_s3 + $0x108] sm:$0xff] }
 0x3d0   : > { %v2230_v45 = vsel %vm2192_vm10, %v2153_v49, %v2154_v16 }
 0x3d1   : > { %v2234_v10 = vadd.f32 %v2230_v45, %v7056_v42  ;;  %9636 = vst [vmem:[#allocation40_spill] sm:$0xff] %v7482_v61  ;;  %v7484_v7 = vpop.f32.mrf.mxu2  ;;  %v6005_v45 = vld [vmem:[%s9519_s3 + $0x110] sm:$0xff]  ;;  %v9533_v37 = vrot.slane %v7482_v61, 7  ;;  %v2510_v61 = vperm.slane %v7235_v12, 5 }
 0x3d3   : > { %v2278_v5 = vadd.f32 %v7447_v62, %v2234_v10  ;;  %v2059_v63 = vpop.f32.mrf.mxu0  ;;  %v7490_v10 = vpop.f32.mrf.mxu3  ;;  %3251 = vmatpush.bf16.msra.mxu2 %v6005_v45  ;;  %v6003_v45 = vld [vmem:[%s9519_s3 + $0x100] sm:$0xff]  ;;  %2521 = vperm.xlu0 %6250, %v2510_v61  }
 0x3d4   : > { %v2060_v49 = vadd.f32 %v2059_v63, %v7300_v34  ;;  %2527 = vperm.xlu1 %6251, %v2510_v61   ;;  %2515 = vperm.xlu2 %6249, %v2510_v61  }
 0x3d5   : > { %v2318_v42 = vmax.f32 %v2278_v5, 0.0 }
 0x3d6   : > { %v2155_v41 = vrot.slane %v2060_v49, 2 }
 0x3d7   : > { %v2636_v22 = vmul.f32 %v6229_v4, %v2318_v42  ;;  %3252 = vmatpush.bf16.msra.mxu2 %v6004_v24  ;;  %2032 = vmatmul.bf16.gmra.mxu3 %v7215_v46  ;;  %v1959_v46 = vadd.f32 %v7326_v15, %v7292_v28 }
 0x3d8   : > { %v2229_v51 = vsel %vm2192_vm10, %v2154_v16, %v2155_v41  ;;  %v6238_v16 = vunpack.i.h.bf16 %v7495_v20 }
 0x3d9   : > { %v2676_v34 = vrot.slane %v2636_v22, 7  ;;  %v2235_v63 = vadd.f32 %v2229_v51, %v7058_v47  ;;  %v7512_v42 = vpop.f32.mrf.mxu2 }
 0x3db   : > { %v7506_v4 = vsel %vm2715_vm11, %v9533_v37, %v2676_v34  ;;  %v2062_v5 = vpop.f32.mrf.mxu0  ;;  %v2279_v49 = vadd.f32 %v7447_v62, %v2235_v63  ;;  %v6001_v37 = vld [vmem:[%s9519_s3 + $0xf0] sm:$0xff]  ;;  %v7521_v63 = vpop.f32.mrf.mxu3  ;;  %3253 = vmatpush.bf16.msra.mxu2 %v6003_v45  ;;  %6255 = vset.pattern.permute.xlu0 %v7267_v6 }
 0x3dc   : > { %9637 = vst [vmem:[#allocation41_spill] sm:$0xff] %v7506_v4  ;;  %v2063_v22 = vadd.f32 %v2062_v5, %v7310_v54  ;;  %3158 = vmatpush.bf16.msra.mxu1 %v6001_v37  ;;  %6253 = vset.pattern.permute.xlu1 %v6669_v57 }
 0x3dd   : > { %v2319_v47 = vmax.f32 %v2279_v49, 0.0  ;;  %6252 = vset.pattern.permute.xlu2 %v7219_v21 }
 0x3de   : > { %v2156_v51 = vrot.slane %v2063_v22, 2  ;;  %2101 = vmatmul.bf16.gmra.mxu0 %v7129_v25  ;;  %v6216_v22 = vunpack.i.l.bf16 %v7422_v32 }
 0x3df   : > { %v2637_v24 = vmul.f32 %v6238_v16, %v2319_v47 }
 0x3e0   : > { %v2228_v54 = vsel %vm2192_vm10, %v2155_v41, %v2156_v51 }
 0x3e1   : > { %v2236_v5 = vadd.f32 %v2228_v54, %v7077_v43  ;;  %v2677_v49 = vrot.slane %v2637_v24, 7  ;;  %v6017_v43 = vld [vmem:[%s9519_s3 + $0x170] sm:$0xff]  ;;  %v7536_v37 = vpop.f32.mrf.mxu2 }
 0x3e2   : > { %3336 = vmatpush.bf16.msra.mxu3 %v6017_v43 }
 0x3e3   : > { %v2280_v25 = vadd.f32 %v7447_v62, %v2236_v5  ;;  %v2064_v4 = vpop.f32.mrf.mxu0  ;;  %v2753_v16 = vsel %vm2715_vm11, %v2676_v34, %v2677_v49  ;;  %v7538_v24 = vpop.f32.mrf.mxu3  ;;  %v6016_v5 = vld [vmem:[%s9519_s3 + $0x168] sm:$0xff] }
 0x3e4   : > { %v2065_v47 = vadd.f32 %v2064_v4, %v7316_v31 }
 0x3e5   : > { %v2320_v41 = vmax.f32 %v2280_v25, 0.0  ;;  %v2758_v25 = vpack.c.bf16 %v2753_v16, %v2753_v16  ;;  %v6015_v16 = vld [vmem:[%s9519_s3 + $0x160] sm:$0xff]  ;;  %2533 = vperm.xlu2 %6252, %v2510_v61   ;;  %v6012_v61 = vld [vmem:[%s9519_s3 + $0x148] sm:$0xff] }
 0x3e6   : > { %v2157_v45 = vrot.slane %v2065_v47, 2  ;;  %v6222_v47 = vunpack.i.l.bf16 %v7457_v8  ;;  %3337 = vmatpush.bf16.msra.mxu3 %v6016_v5 }
 0x3e7   : > { %v2638_v54 = vmul.f32 %v6216_v22, %v2320_v41  ;;  %v2830_v43 = vunpack.c.l.b16 %v2758_v25  ;;  %2037 = vmatmul.bf16.gmra.mxu3 %v7249_v39 }
 0x3e8   : > { %v2227_v31 = vsel %vm2192_vm10, %v2156_v51, %v2157_v45 }
 0x3e9   : > { %v2678_v34 = vrot.slane %v2638_v54, 7  ;;  %v2237_v4 = vadd.f32 %v2227_v31, %v7085_v59 }
 0x3ea   : > { %3338 = vmatpush.bf16.msra.mxu3 %v6015_v16 }
 0x3eb   : > { %v2281_v32 = vadd.f32 %v7447_v62, %v2237_v4  ;;  %v2067_v22 = vpop.f32.mrf.mxu0  ;;  %v2752_v28 = vsel %vm2715_vm11, %v2677_v49, %v2678_v34  ;;  %v7559_v41 = vpop.f32.mrf.mxu3 }
 0x3ec   : > { %v2068_v15 = vadd.f32 %v2067_v22, %v1959_v46  ;;  %v2759_v59 = vpack.c.bf16 %v2752_v28, %v2752_v28  ;;  %v7561_v46 = vpop.f32.mrf.mxu2  ;;  %v6228_v22 = vunpack.i.l.bf16 %v7426_v30 }
 0x3ed   : > { %v2321_v51 = vmax.f32 %v2281_v32, 0.0  ;;  %6254 = vset.pattern.permute.xlu2 %v7222_v33 }
 0x3ee   : > { %v2158_v8 = vrot.slane %v2068_v15, 2  ;;  %2106 = vmatmul.bf16.gmra.mxu0 %v7071_v9  ;;  %v2831_v49 = vunpack.c.l.b16 %v2759_v59  ;;  %v6014_v9 = vld [vmem:[%s9519_s3 + $0x158] sm:$0xff] }
 0x3ef   : > { %v2639_v54 = vmul.f32 %v6222_v47, %v2321_v51  ;;  %3339 = vmatpush.bf16.msra.mxu3 %v6014_v9 }
 0x3f0   : > { %v2226_v32 = vsel %vm2192_vm10, %v2157_v45, %v2158_v8  ;;  %v7565_v31 = vpack.c.b16 %v2831_v49, %v2830_v43 }
 0x3f1   : > { %v2679_v4 = vrot.slane %v2639_v54, 7  ;;  %v2238_v5 = vadd.f32 %v2226_v32, %v7096_v18  ;;  %v6013_v18 = vld [vmem:[%s9519_s3 + $0x150] sm:$0xff]  ;;  %v2535_v54 = vperm.slane %v7235_v12, 6  ;;  %v6237_v32 = vunpack.i.l.bf16 %v7495_v20 }
 0x3f3   : > { %v2751_v25 = vsel %vm2715_vm11, %v2678_v34, %v2679_v4  ;;  %v2282_v47 = vadd.f32 %v7447_v62, %v2238_v5  ;;  %v2069_v28 = vpop.f32.mrf.mxu0  ;;  %v7580_v51 = vpop.f32.mrf.mxu3  ;;  %v1964_v34 = vadd.f32 %v7343_v55, %v7308_v60  ;;  %3340 = vmatpush.bf16.msra.mxu3 %v6013_v18  ;;  %2540 = vperm.xlu1 %6253, %v2535_v54   ;;  %v6000_v18 = vld [vmem:[%s9519_s3 + $0xe8] sm:$0xff] }
 0x3f4   : > { %v2070_v45 = vadd.f32 %v2069_v28, %v7332_v56  ;;  %v7587_v43 = vpop.f32.mrf.mxu2  ;;  %v2760_v49 = vpack.c.bf16 %v2751_v25, %v2751_v25  ;;  %2552 = vperm.xlu0 %6255, %v2535_v54   ;;  %3159 = vmatpush.bf16.msra.mxu1 %v6000_v18 }
 0x3f5   : > { %v2322_v15 = vmax.f32 %v2282_v47, 0.0  ;;  %2546 = vperm.xlu2 %6254, %v2535_v54  }
 0x3f6   : > { %v2159_v59 = vrot.slane %v2070_v45, 2  ;;  %v2832_v25 = vunpack.c.l.b16 %v2760_v49 }
 0x3f7   : > { %v2640_v30 = vmul.f32 %v6228_v22, %v2322_v15  ;;  %3341 = vmatpush.bf16.msra.mxu3 %v6012_v61  ;;  %v6011_v22 = vld [vmem:[%s9519_s3 + $0x140] sm:$0xff] }
 0x3f8   : > { %v2225_v16 = vsel %vm2192_vm10, %v2158_v8, %v2159_v59 }
 0x3f9   : > { %v2680_v39 = vrot.slane %v2640_v30, 7  ;;  %v2239_v56 = vadd.f32 %v2225_v16, %v7102_v19 }
 0x3fb   : > { %v2750_v60 = vsel %vm2715_vm11, %v2679_v4, %v2680_v39  ;;  %v2283_v55 = vadd.f32 %v7447_v62, %v2239_v56  ;;  %v2072_v8 = vpop.f32.mrf.mxu0  ;;  %v7602_v4 = vpop.f32.mrf.mxu3  ;;  %3342 = vmatpush.bf16.msra.mxu3 %v6011_v22  ;;  %6256 = vset.pattern.permute.xlu1 %v7219_v21 }
 0x3fc   : > { %v2761_v5 = vpack.c.bf16 %v2750_v60, %v2750_v60  ;;  %v2073_v9 = vadd.f32 %v2072_v8, %v1964_v34  ;;  %6260 = vset.pattern.permute.xlu0 %v7219_v21 }
 0x3fd   : > { %v2323_v19 = vmax.f32 %v2283_v55, 0.0  ;;  %v2441_v55 = vpop.permute.xlu2 %2440  ;;  %6257 = vset.pattern.permute.xlu2 %v6669_v57 }
 0x3fe   : > { %v2833_v20 = vunpack.c.l.b16 %v2761_v5  ;;  %v2160_v47 = vrot.slane %v2073_v9, 2  ;;  %2111 = vmatmul.bf16.gmra.mxu0 %v7092_v53 }
 0x3ff   : > { %v2641_v28 = vmul.f32 %v6237_v32, %v2323_v19 }
 0x400   : > { %v2224_v45 = vsel %vm2192_vm10, %v2159_v59, %v2160_v47  ;;  %v7606_v15 = vpack.c.b16 %v2833_v20, %v2832_v25  ;;  %v7616_v59 = vpop.f32.mrf.mxu2 }
 0x401   : > { %v2681_v30 = vrot.slane %v2641_v28, 7  ;;  %v2240_v34 = vadd.f32 %v2224_v45, %v7117_v44 }
 0x402   : > { %9638 = vst [vmem:[#allocation42_spill] sm:$0xff] %v7606_v15  ;;  %3254 = vmatmul.bf16.vlgmr.msra.gmra.mxu2 %v7606_v15 }
 0x403   : > { %v2749_v53 = vsel %vm2715_vm11, %v2680_v39, %v2681_v30  ;;  %v2284_v16 = vadd.f32 %v7447_v62, %v2240_v34  ;;  %v2074_v56 = vpop.f32.mrf.mxu0  ;;  %v7621_v32 = vpop.f32.mrf.mxu3  ;;  %v1969_v39 = vadd.f32 %v7361_v2, %v7324_v14  ;;  %2558 = vperm.xlu1 %6256, %v2535_v54  }
 0x404   : > { %v2075_v61 = vadd.f32 %v2074_v56, %v7351_v13  ;;  %v2762_v9 = vpack.c.bf16 %v2749_v53, %v2749_v53  ;;  %v7635_v14 = vpop.f32.mrf.mxu1 }
 0x405   : > { %v2324_v49 = vmax.f32 %v2284_v16, 0.0  ;;  %v9640_v16 = vld [vmem:[#allocation2_spill] sm:$0xff] }
 0x406   : > { %v2161_v44 = vrot.slane %v2075_v61, 2  ;;  %v2834_v2 = vunpack.c.l.b16 %v2762_v9  ;;  %v2447_v61 = vpop.permute.xlu2 %2446 }
 0x407   : > { %v2642_v60 = vmul.f32 %v7466_v0, %v2324_v49 }
 0x408   : > { %v2223_v8 = vsel %vm2192_vm10, %v2160_v47, %v2161_v44  ;;  %v7632_v45 = vpop.f32.mrf.mxu2 }
 0x409   : > { %v2241_v13 = vadd.f32 %v2223_v8, %v7126_v38  ;;  %v2682_v5 = vrot.slane %v2642_v60, 7 }
 0x40b   : > { %v2077_v19 = vpop.f32.mrf.mxu0  ;;  %v2285_v22 = vadd.f32 %v7447_v62, %v2241_v13  ;;  %v2748_v25 = vsel %vm2715_vm11, %v2681_v30, %v2682_v5  ;;  %v7638_v34 = vpop.f32.mrf.mxu3  ;;  %6258 = vset.pattern.permute.xlu1 %v7222_v33 }
 0x40c   : > { %v2078_v20 = vadd.f32 %v2077_v19, %v1969_v39  ;;  %v2763_v28 = vpack.c.bf16 %v2748_v25, %v2748_v25  ;;  %v7653_v9 = vpop.f32.mrf.mxu1  ;;  %v1974_v19 = vadd.f32 %v7382_v58, %v7341_v35  ;;  %v9641_v25 = vld [vmem:[#allocation3_spill] sm:$0xff] }
 0x40d   : > { %v2325_v0 = vmax.f32 %v2285_v22, 0.0 }
 0x40e   : > { %v2162_v38 = vrot.slane %v2078_v20, 2  ;;  %v2835_v47 = vunpack.c.l.b16 %v2763_v28  ;;  %2116 = vmatmul.bf16.gmra.mxu0 %v7112_v48 }
 0x40f   : > { %v2643_v18 = vmul.f32 %v2441_v55, %v2325_v0 }
 0x410   : > { %v2222_v30 = vsel %vm2192_vm10, %v2161_v44, %v2162_v38  ;;  %v7642_v53 = vpack.c.b16 %v2835_v47, %v2834_v2  ;;  %v7651_v13 = vpop.f32.mrf.mxu2 }
 0x411   : > { %v2683_v54 = vrot.slane %v2643_v18, 7  ;;  %v2242_v56 = vadd.f32 %v2222_v30, %v9640_v16  ;;  %v2453_v16 = vpop.permute.xlu2 %2452 }
 0x412   : > { %9639 = vst [vmem:[#allocation43_spill] sm:$0xff] %v7642_v53  ;;  %3259 = vmatmul.bf16.gmra.mxu2 %v7642_v53 }
 0x413   : > { %v2747_v49 = vsel %vm2715_vm11, %v2682_v5, %v2683_v54  ;;  %v2079_v60 = vpop.f32.mrf.mxu0  ;;  %v2286_v48 = vadd.f32 %v7447_v62, %v2242_v56  ;;  %v7660_v28 = vpop.f32.mrf.mxu3 }
 0x414   : > { %v2080_v39 = vadd.f32 %v2079_v60, %v7371_v52  ;;  %v2764_v52 = vpack.c.bf16 %v2747_v49, %v2747_v49 }
 0x415   : > { %v2326_v55 = vmax.f32 %v2286_v48, 0.0 }
 0x416   : > { %v2163_v44 = vrot.slane %v2080_v39, 2  ;;  %v2836_v35 = vunpack.c.l.b16 %v2764_v52  ;;  %v2459_v52 = vpop.permute.xlu0 %2458 }
 0x417   : > { %v2644_v8 = vmul.f32 %v2447_v61, %v2326_v55 }
 0x418   : > { %v2221_v5 = vsel %vm2192_vm10, %v2162_v38, %v2163_v44  ;;  %v7671_v55 = vpop.f32.mrf.mxu2 }
 0x419   : > { %v2684_v22 = vrot.slane %v2644_v8, 7  ;;  %v2243_v20 = vadd.f32 %v2221_v5, %v9641_v25  ;;  %v7673_v8 = vpop.f32.mrf.mxu1 }
 0x41b   : > { %v2746_v0 = vsel %vm2715_vm11, %v2683_v54, %v2684_v22  ;;  %v2082_v2 = vpop.f32.mrf.mxu0  ;;  %v2287_v47 = vadd.f32 %v7447_v62, %v2243_v20  ;;  %v9642_v54 = vld [vmem:[#allocation4_spill] sm:$0xff] }
 0x41c   : > { %v2765_v18 = vpack.c.bf16 %v2746_v0, %v2746_v0  ;;  %v2083_v30 = vadd.f32 %v2082_v2, %v1974_v19  ;;  %v2560_v19 = vperm.slane %v7235_v12, 7  ;;  %v5999_v12 = vld [vmem:[%s9519_s3 + $0xe0] sm:$0xff] }
 0x41d   : > { %v2327_v56 = vmax.f32 %v2287_v47, 0.0  ;;  %3160 = vmatpush.bf16.msra.mxu1 %v5999_v12 }
 0x41e   : > { %v2837_v58 = vunpack.c.l.b16 %v2765_v18  ;;  %v2164_v61 = vrot.slane %v2083_v30, 2  ;;  %2121 = vmatmul.bf16.gmra.mxu0 %v7182_v36  ;;  %2571 = vperm.xlu1 %6258, %v2560_v19  }
 0x41f   : > { %v2645_v38 = vmul.f32 %v2453_v16, %v2327_v56  ;;  %2565 = vperm.xlu2 %6257, %v2560_v19   ;;  %2583 = vperm.xlu0 %6260, %v2560_v19  }
 0x420   : > { %v7666_v60 = vpack.c.b16 %v2837_v58, %v2836_v35  ;;  %v2220_v49 = vsel %vm2192_vm10, %v2163_v44, %v2164_v61  ;;  %v7681_v44 = vpop.f32.mrf.mxu3 }
 0x421   : > { %v2685_v48 = vrot.slane %v2645_v38, 7  ;;  %v2244_v39 = vadd.f32 %v2220_v49, %v9642_v54  ;;  %v7695_v49 = vpop.f32.mrf.mxu2  ;;  %v7697_v54 = vpop.f32.mrf.mxu1 }
 0x422   : > { %3264 = vmatmul.bf16.gmra.mxu2 %v7666_v60  ;;  %3343 = vmatmul.bf16.vlgmr.msra.gmra.mxu3 %v7666_v60 }
 0x423   : > { %v2745_v36 = vsel %vm2715_vm11, %v2684_v22, %v2685_v48  ;;  %v2084_v5 = vpop.f32.mrf.mxu0  ;;  %v2288_v25 = vadd.f32 %v7447_v62, %v2244_v39  ;;  %v1979_v22 = vadd.f32 %v7406_v1, %v7359_v3  ;;  %v2466_v1 = vpop.permute.xlu1 %2465 }
 0x424   : > { %v2085_v20 = vadd.f32 %v2084_v5, %v7419_v17  ;;  %v9643_v17 = vld [vmem:[#allocation5_spill] sm:$0xff]  ;;  %v2766_v56 = vpack.c.bf16 %v2745_v36, %v2745_v36 }
 0x425   : > { %v2328_v0 = vmax.f32 %v2288_v25, 0.0 }
 0x426   : > { %v2165_v2 = vrot.slane %v2085_v20, 2  ;;  %6261 = vset.pattern.permute.xlu1 %v6669_v57 }
 0x427   : > { %v2646_v47 = vmul.f32 %v2459_v52, %v2328_v0  ;;  %6259 = vset.pattern.permute.xlu2 %v7267_v6  ;;  %6265 = vset.pattern.permute.xlu0 %v6669_v57 }
 0x428   : > { %v2219_v18 = vsel %vm2192_vm10, %v2164_v61, %v2165_v2  ;;  %v7701_v5 = vpop.f32.mrf.mxu3 }
 0x429   : > { %v2686_v30 = vrot.slane %v2646_v47, 7  ;;  %v2245_v16 = vadd.f32 %v2219_v18, %v9643_v17  ;;  %v9644_v47 = vld [vmem:[#allocation6_spill] sm:$0xff] }
 0x42b   : > { %v2744_v35 = vsel %vm2715_vm11, %v2685_v48, %v2686_v30  ;;  %v2087_v58 = vpop.f32.mrf.mxu0  ;;  %v2289_v38 = vadd.f32 %v7447_v62, %v2245_v16  ;;  %v2838_v48 = vunpack.c.l.b16 %v2766_v56  ;;  %v2472_v56 = vpop.permute.xlu2 %2471 }
 0x42c   : > { %v2767_v39 = vpack.c.bf16 %v2744_v35, %v2744_v35  ;;  %v2088_v3 = vadd.f32 %v2087_v58, %v1979_v22  ;;  %v7716_v58 = vpop.f32.mrf.mxu2 }
 0x42d   : > { %v2329_v61 = vmax.f32 %v2289_v38, 0.0  ;;  %v7719_v38 = vpop.f32.mrf.mxu1 }
 0x42e   : > { %v2839_v36 = vunpack.c.l.b16 %v2767_v39  ;;  %v2166_v25 = vrot.slane %v2088_v3, 2  ;;  %2126 = vmatmul.bf16.gmra.mxu0 %v7199_v40 }
 0x42f   : > { %v2647_v20 = vmul.f32 %v2466_v1, %v2329_v61  ;;  %2577 = vperm.xlu2 %6259, %v2560_v19  }
 0x430   : > { %v7705_v52 = vpack.c.b16 %v2839_v36, %v2838_v48  ;;  %v2218_v0 = vsel %vm2192_vm10, %v2165_v2, %v2166_v25  ;;  %v9645_v2 = vld [vmem:[#allocation11_spill] sm:$0xff]  ;;  %v7721_v1 = vpop.f32.mrf.mxu3 }
 0x431   : > { %v2687_v12 = vrot.slane %v2647_v20, 7  ;;  %v2246_v22 = vadd.f32 %v2218_v0, %v9644_v47  ;;  %2615 = vperm.xlu0 %6265, %v9645_v2   ;;  %v9646_v48 = vld [vmem:[#allocation7_spill] sm:$0xff]  ;;  %v9647_v20 = vld [vmem:[#allocation17_spill] sm:$0xff] }
 0x432   : > { %3269 = vmatmul.bf16.gmra.mxu2 %v7705_v52  ;;  %3348 = vmatmul.bf16.gmra.mxu3 %v7705_v52  ;;  %v7729_v0 = vperm.slane %v9647_v20, 0  ;;  %v9648_v20 = vld [vmem:[#allocation8_spill] sm:$0xff] }
 0x433   : > { %v2743_v18 = vsel %vm2715_vm11, %v2686_v30, %v2687_v12  ;;  %v2089_v17 = vpop.f32.mrf.mxu0  ;;  %v2290_v16 = vadd.f32 %v7447_v62, %v2246_v22  ;;  %v1984_v30 = vadd.f32 %v7437_v26, %v7380_v27  ;;  %v2478_v26 = vpop.permute.xlu1 %2477 }
 0x434   : > { %v2090_v40 = vadd.f32 %v2089_v17, %v7450_v50  ;;  %v2768_v36 = vpack.c.bf16 %v2743_v18, %v2743_v18  ;;  %2590 = vperm.xlu1 %6261, %v7729_v0  }
 0x435   : > { %v2330_v35 = vmax.f32 %v2290_v16, 0.0 }
 0x436   : > { %v2167_v39 = vrot.slane %v2090_v40, 2 }
 0x437   : > { %v2648_v3 = vmul.f32 %v2472_v56, %v2330_v35  ;;  %6262 = vset.pattern.permute.xlu2 %v7222_v33  ;;  %v6294_v35 = vld [vmem:[%s6508_s17 + $0xa0] sm:$0xff] }
 0x438   : > { %v2217_v61 = vsel %vm2192_vm10, %v2166_v25, %v2167_v39  ;;  %v2840_v25 = vunpack.c.l.b16 %v2768_v36  ;;  %v1986_v36 = vadd.f32 %v7468_v29, %v7394_v11 }
 0x439   : > { %v2688_v50 = vrot.slane %v2648_v3, 7  ;;  %v2247_v19 = vadd.f32 %v2217_v61, %v9646_v48  ;;  %6268 = vset.pattern.permute.xlu0 %v7219_v21  ;;  %v7740_v61 = vpop.f32.mrf.mxu1 }
 0x43b   : > { %v2742_v47 = vsel %vm2715_vm11, %v2687_v12, %v2688_v50  ;;  %v2092_v22 = vpop.f32.mrf.mxu0  ;;  %v2291_v17 = vadd.f32 %v7447_v62, %v2247_v19  ;;  %v7738_v12 = vpop.f32.mrf.mxu2 }
 0x43c   : > { %v2769_v16 = vpack.c.bf16 %v2742_v47, %v2742_v47  ;;  %v2093_v40 = vadd.f32 %v2092_v22, %v1984_v30  ;;  %v7747_v22 = vpop.f32.mrf.mxu3  ;;  %6263 = vset.pattern.permute.xlu1 %v7267_v6 }
 0x43d   : > { %v2331_v27 = vmax.f32 %v2291_v17, 0.0 }
 0x43e   : > { %v2841_v18 = vunpack.c.l.b16 %v2769_v16  ;;  %v2168_v56 = vrot.slane %v2093_v40, 2  ;;  %2131 = vmatmul.bf16.gmra.mxu0 %v6294_v35  ;;  %v1989_v35 = vadd.f32 %v7490_v10, %v7404_v23 }
 0x43f   : > { %v2649_v3 = vmul.f32 %v2478_v26, %v2331_v27  ;;  %2596 = vperm.xlu2 %6262, %v7729_v0  }
 0x440   : > { %v7742_v48 = vpack.c.b16 %v2841_v18, %v2840_v25  ;;  %v2216_v30 = vsel %vm2192_vm10, %v2167_v39, %v2168_v56  ;;  %v2484_v39 = vpop.permute.xlu2 %2483  ;;  %v9649_v18 = vld [vmem:[#allocation13_spill] sm:$0xff] }
 0x441   : > { %v2689_v19 = vrot.slane %v2649_v3, 7  ;;  %v2248_v47 = vadd.f32 %v2216_v30, %v9648_v20  ;;  %v1573_v11 = vadd.f32 %v7635_v14, %v9649_v18 }
 0x442   : > { %3274 = vmatmul.bf16.gmra.mxu2 %v7742_v48  ;;  %3353 = vmatmul.bf16.gmra.mxu3 %v7742_v48 }
 0x443   : > { %v2741_v17 = vsel %vm2715_vm11, %v2688_v50, %v2689_v19  ;;  %v2094_v16 = vpop.f32.mrf.mxu0  ;;  %v2292_v40 = vadd.f32 %v7447_v62, %v2248_v47  ;;  %v7764_v20 = vpop.f32.mrf.mxu2 }
 0x444   : > { %v2095_v26 = vadd.f32 %v2094_v16, %v1986_v36  ;;  %v7766_v47 = vpop.f32.mrf.mxu1  ;;  %v2770_v36 = vpack.c.bf16 %v2741_v17, %v2741_v17  ;;  %2602 = vperm.xlu1 %6263, %v7729_v0   ;;  %v6295_v17 = vld [vmem:[%s6508_s17 + $0xa8] sm:$0xff] }
 0x445   : > { %v2332_v27 = vmax.f32 %v2292_v40, 0.0 }
 0x446   : > { %v2169_v25 = vrot.slane %v2095_v26, 2  ;;  %v7771_v26 = vpop.f32.mrf.mxu3 }
 0x447   : > { %v2650_v29 = vmul.f32 %v2484_v39, %v2332_v27  ;;  %v2491_v39 = vpop.permute.xlu0 %2490  ;;  %6264 = vset.pattern.permute.xlu2 %v7219_v21  ;;  %v2842_v27 = vunpack.c.l.b16 %v2770_v36  ;;  %v9652_v36 = vld [vmem:[#allocation36_spill] sm:$0xff] }
 0x448   : > { %v2215_v50 = vsel %vm2192_vm10, %v2168_v56, %v2169_v25 }
 0x449   : > { %v2690_v3 = vrot.slane %v2650_v29, 7  ;;  %v2249_v30 = vadd.f32 %v2215_v50, %v1573_v11  ;;  %v9650_v29 = vld [vmem:[#allocation10_spill] sm:$0xff] }
 0x44b   : > { %v2740_v16 = vsel %vm2715_vm11, %v2689_v19, %v2690_v3  ;;  %v2097_v40 = vpop.f32.mrf.mxu0  ;;  %v2293_v14 = vadd.f32 %v7447_v62, %v2249_v30  ;;  %v1575_v19 = vadd.f32 %v7653_v9, %v9650_v29  ;;  %v9653_v29 = vld [vmem:[#allocation14_spill] sm:$0xff] }
 0x44c   : > { %v2771_v23 = vpack.c.bf16 %v2740_v16, %v2740_v16  ;;  %v2098_v10 = vadd.f32 %v2097_v40, %v1989_v35  ;;  %v5998_v16 = vld [vmem:[%s9519_s3 + $0xd8] sm:$0xff]  ;;  %6266 = vset.pattern.permute.xlu1 %v7222_v33 }
 0x44d   : > { %v2333_v56 = vmax.f32 %v2293_v14, 0.0  ;;  %v1991_v14 = vadd.f32 %v7521_v63, %v9652_v36  ;;  %3161 = vmatpush.bf16.msra.mxu1 %v5998_v16 }
 0x44e   : > { %v2843_v18 = vunpack.c.l.b16 %v2771_v23  ;;  %v2170_v11 = vrot.slane %v2098_v10, 2  ;;  %2136 = vmatmul.bf16.gmra.mxu0 %v6295_v17 }
 0x44f   : > { %v2651_v50 = vmul.f32 %v2491_v39, %v2333_v56  ;;  %v7794_v39 = vpop.f32.mrf.mxu1  ;;  %2608 = vperm.xlu2 %6264, %v7729_v0  }
 0x450   : > { %v7778_v30 = vpack.c.b16 %v2843_v18, %v2842_v27  ;;  %v2214_v35 = vsel %vm2192_vm10, %v2169_v25, %v2170_v11  ;;  %v7792_v25 = vpop.f32.mrf.mxu2  ;;  %v2497_v27 = vpop.permute.xlu1 %2496 }
 0x451   : > { %v2691_v21 = vrot.slane %v2651_v50, 7  ;;  %v2250_v40 = vadd.f32 %v2214_v35, %v1575_v19  ;;  %v7798_v18 = vpop.f32.mrf.mxu3  ;;  %v9654_v50 = vld [vmem:[#allocation38_spill] sm:$0xff] }
 0x452   : > { %9651 = vst [vmem:[#allocation2_spill] sm:$0xff] %v7778_v30  ;;  %3279 = vmatmul.bf16.gmra.mxu2 %v7778_v30  ;;  %3358 = vmatmul.bf16.gmra.mxu3 %v7778_v30  ;;  %v1994_v35 = vadd.f32 %v7538_v24, %v9654_v50 }
 0x453   : > { %v2739_v9 = vsel %vm2715_vm11, %v2690_v3, %v2691_v21  ;;  %v2099_v23 = vpop.f32.mrf.mxu0  ;;  %v2294_v10 = vadd.f32 %v7447_v62, %v2250_v40  ;;  %v1578_v3 = vadd.f32 %v7673_v8, %v9653_v29  ;;  %v2503_v8 = vpop.permute.xlu2 %2502 }
 0x454   : > { %v2100_v56 = vadd.f32 %v2099_v23, %v1991_v14  ;;  %v2772_v33 = vpack.c.bf16 %v2739_v9, %v2739_v9  ;;  %2621 = vperm.xlu1 %6266, %v9645_v2  }
 0x455   : > { %v2334_v63 = vmax.f32 %v2294_v10, 0.0 }
 0x456   : > { %v2171_v17 = vrot.slane %v2100_v56, 2 }
 0x457   : > { %v2652_v19 = vmul.f32 %v2497_v27, %v2334_v63  ;;  %6267 = vset.pattern.permute.xlu2 %v7267_v6  ;;  %v2844_v63 = vunpack.c.l.b16 %v2772_v33 }
 0x458   : > { %v2213_v16 = vsel %vm2192_vm10, %v2170_v11, %v2171_v17  ;;  %v7811_v27 = vpop.f32.mrf.mxu2  ;;  %v7813_v11 = vpop.f32.mrf.mxu1 }
 0x459   : > { %v2692_v40 = vrot.slane %v2652_v19, 7  ;;  %v2251_v36 = vadd.f32 %v2213_v16, %v1578_v3  ;;  %v6296_v3 = vld [vmem:[%s6508_s17 + $0xb0] sm:$0xff] }
 0x45b   : > { %v2738_v0 = vsel %vm2715_vm11, %v2691_v21, %v2692_v40  ;;  %v2102_v14 = vpop.f32.mrf.mxu0  ;;  %v2295_v23 = vadd.f32 %v7447_v62, %v2251_v36  ;;  %v9655_v21 = vld [vmem:[#allocation9_spill] sm:$0xff] }
 0x45c   : > { %v2773_v10 = vpack.c.bf16 %v2738_v0, %v2738_v0  ;;  %v2103_v56 = vadd.f32 %v2102_v14, %v1994_v35  ;;  %v1580_v19 = vadd.f32 %v7697_v54, %v9655_v21  ;;  %v7818_v35 = vpop.f32.mrf.mxu3  ;;  %v9657_v14 = vld [vmem:[#allocation39_spill] sm:$0xff] }
 0x45d   : > { %v2335_v24 = vmax.f32 %v2295_v23, 0.0  ;;  %v1996_v33 = vadd.f32 %v7559_v41, %v9657_v14 }
 0x45e   : > { %v2845_v9 = vunpack.c.l.b16 %v2773_v10  ;;  %v2172_v29 = vrot.slane %v2103_v56, 2  ;;  %2141 = vmatmul.bf16.gmra.mxu0 %v6296_v3 }
 0x45f   : > { %v2653_v50 = vmul.f32 %v2503_v8, %v2335_v24  ;;  %v2509_v8 = vpop.permute.xlu1 %2508  ;;  %2627 = vperm.xlu2 %6267, %v9645_v2  }
 0x460   : > { %v7820_v16 = vpack.c.b16 %v2845_v9, %v2844_v63  ;;  %v2212_v6 = vsel %vm2192_vm10, %v2171_v17, %v2172_v29  ;;  %v9658_v63 = vld [vmem:[#allocation16_spill] sm:$0xff]  ;;  %v7834_v3 = vpop.f32.mrf.mxu2  ;;  %v7836_v21 = vpop.f32.mrf.mxu1 }
 0x461   : > { %v2693_v36 = vrot.slane %v2653_v50, 7  ;;  %v2252_v0 = vadd.f32 %v2212_v6, %v1580_v19  ;;  %v1583_v9 = vadd.f32 %v7719_v38, %v9658_v63  ;;  %v6297_v63 = vld [vmem:[%s6508_s17 + $0xb8] sm:$0xff] }
 0x462   : > { %9656 = vst [vmem:[#allocation3_spill] sm:$0xff] %v7820_v16  ;;  %3284 = vmatmul.bf16.gmra.mxu2 %v7820_v16  ;;  %3363 = vmatmul.bf16.gmra.mxu3 %v7820_v16 }
 0x463   : > { %v2737_v54 = vsel %vm2715_vm11, %v2692_v40, %v2693_v36  ;;  %v2104_v23 = vpop.f32.mrf.mxu0  ;;  %v2296_v10 = vadd.f32 %v7447_v62, %v2252_v0  ;;  %v1999_v40 = vadd.f32 %v7580_v51, %v7484_v7 }
 0x464   : > { %v2105_v56 = vadd.f32 %v2104_v23, %v1996_v33  ;;  %v7842_v2 = vpop.f32.mrf.mxu3  ;;  %v2774_v0 = vpack.c.bf16 %v2737_v54, %v2737_v54 }
 0x465   : > { %v2336_v17 = vmax.f32 %v2296_v10, 0.0 }
 0x466   : > { %v2173_v24 = vrot.slane %v2105_v56, 2  ;;  %v2516_v56 = vpop.permute.xlu2 %2515  ;;  %v2846_v7 = vunpack.c.l.b16 %v2774_v0  ;;  %v2001_v0 = vadd.f32 %v7602_v4, %v7512_v42  ;;  %v5997_v42 = vld [vmem:[%s9519_s3 + $0xd0] sm:$0xff]  ;;  %v9660_v4 = vld [vmem:[#allocation15_spill] sm:$0xff] }
 0x467   : > { %v2654_v41 = vmul.f32 %v2509_v8, %v2336_v17  ;;  %3162 = vmatpush.bf16.msra.mxu1 %v5997_v42 }
 0x468   : > { %v2211_v19 = vsel %vm2192_vm10, %v2172_v29, %v2173_v24  ;;  %v9659_v29 = vld [vmem:[#allocation12_spill] sm:$0xff] }
 0x469   : > { %v2694_v50 = vrot.slane %v2654_v41, 7  ;;  %v2253_v6 = vadd.f32 %v2211_v19, %v1583_v9  ;;  %v1585_v9 = vadd.f32 %v7740_v61, %v9659_v29 }
 0x46b   : > { %v2736_v38 = vsel %vm2715_vm11, %v2693_v36, %v2694_v50  ;;  %v2107_v14 = vpop.f32.mrf.mxu0  ;;  %v2297_v33 = vadd.f32 %v7447_v62, %v2253_v6  ;;  %v7854_v6 = vpop.f32.mrf.mxu2 }
 0x46c   : > { %v2775_v23 = vpack.c.bf16 %v2736_v38, %v2736_v38  ;;  %v2108_v10 = vadd.f32 %v2107_v14, %v1999_v40  ;;  %v7856_v38 = vpop.f32.mrf.mxu1 }
 0x46d   : > { %v2337_v8 = vmax.f32 %v2297_v33, 0.0 }
 0x46e   : > { %v2847_v51 = vunpack.c.l.b16 %v2775_v23  ;;  %v2174_v17 = vrot.slane %v2108_v10, 2  ;;  %2146 = vmatmul.bf16.gmra.mxu0 %v6297_v63  ;;  %v2522_v10 = vpop.permute.xlu0 %2521 }
 0x46f   : > { %v2655_v41 = vmul.f32 %v2516_v56, %v2337_v8 }
 0x470   : > { %v7850_v54 = vpack.c.b16 %v2847_v51, %v2846_v7  ;;  %v2210_v36 = vsel %vm2192_vm10, %v2173_v24, %v2174_v17  ;;  %v7865_v24 = vpop.f32.mrf.mxu3  ;;  %v1588_v7 = vadd.f32 %v7766_v47, %v9660_v4 }
 0x471   : > { %v2695_v19 = vrot.slane %v2655_v41, 7  ;;  %v2254_v40 = vadd.f32 %v2210_v36, %v1585_v9 }
 0x472   : > { %3289 = vmatmul.bf16.gmra.mxu2 %v7850_v54  ;;  %3368 = vmatmul.bf16.gmra.mxu3 %v7850_v54 }
 0x473   : > { %v2735_v61 = vsel %vm2715_vm11, %v2694_v50, %v2695_v19  ;;  %v2109_v14 = vpop.f32.mrf.mxu0  ;;  %v2298_v33 = vadd.f32 %v7447_v62, %v2254_v40  ;;  %v2004_v50 = vadd.f32 %v7621_v32, %v7536_v37  ;;  %v2528_v37 = vpop.permute.xlu1 %2527 }
 0x474   : > { %v2110_v23 = vadd.f32 %v2109_v14, %v2001_v0  ;;  %v2776_v41 = vpack.c.bf16 %v2735_v61, %v2735_v61  ;;  %v7878_v0 = vpop.f32.mrf.mxu2  ;;  %v7881_v47 = vpop.f32.mrf.mxu1  ;;  %v9661_v61 = vld [vmem:[#allocation18_spill] sm:$0xff] }
 0x475   : > { %v2338_v56 = vmax.f32 %v2298_v33, 0.0  ;;  %v1590_v4 = vadd.f32 %v7794_v39, %v9661_v61 }
 0x476   : > { %v2175_v8 = vrot.slane %v2110_v23, 2 }
 0x477   : > { %v2656_v51 = vmul.f32 %v2522_v10, %v2338_v56 }
 0x478   : > { %v2209_v63 = vsel %vm2192_vm10, %v2174_v17, %v2175_v8  ;;  %v7883_v10 = vpop.f32.mrf.mxu3  ;;  %v2848_v17 = vunpack.c.l.b16 %v2776_v41 }
 0x479   : > { %v2696_v29 = vrot.slane %v2656_v51, 7  ;;  %v2255_v9 = vadd.f32 %v2209_v63, %v1588_v7 }
 0x47b   : > { %v2734_v36 = vsel %vm2715_vm11, %v2695_v19, %v2696_v29  ;;  %v2112_v40 = vpop.f32.mrf.mxu0  ;;  %v2299_v14 = vadd.f32 %v7447_v62, %v2255_v9 }
 0x47c   : > { %v2777_v33 = vpack.c.bf16 %v2734_v36, %v2734_v36  ;;  %v2113_v23 = vadd.f32 %v2112_v40, %v2004_v50  ;;  %v2006_v50 = vadd.f32 %v7638_v34, %v7561_v46 }
 0x47d   : > { %v2339_v32 = vmax.f32 %v2299_v14, 0.0  ;;  %v2534_v14 = vpop.permute.xlu2 %2533 }
 0x47e   : > { %v2849_v56 = vunpack.c.l.b16 %v2777_v33  ;;  %v2176_v42 = vrot.slane %v2113_v23, 2  ;;  %v7900_v23 = vpop.f32.mrf.mxu1 }
 0x47f   : > { %v2657_v19 = vmul.f32 %v2528_v37, %v2339_v32  ;;  %v9663_v32 = vld [vmem:[#allocation23_spill] sm:$0xff] }
 0x480   : > { %v7887_v7 = vpack.c.b16 %v2849_v56, %v2848_v17  ;;  %v2208_v51 = vsel %vm2192_vm10, %v2175_v8, %v2176_v42  ;;  %v1593_v46 = vadd.f32 %v7813_v11, %v9663_v32  ;;  %v7904_v17 = vpop.f32.mrf.mxu3  ;;  %v9664_v32 = vld [vmem:[#allocation24_spill] sm:$0xff] }
 0x481   : > { %v2697_v63 = vrot.slane %v2657_v19, 7  ;;  %v2256_v9 = vadd.f32 %v2208_v51, %v1590_v4 }
 0x482   : > { %3294 = vmatmul.bf16.gmra.mxu2 %v7887_v7  ;;  %3373 = vmatmul.bf16.gmra.mxu3 %v7887_v7 }
 0x483   : > { %v2733_v41 = vsel %vm2715_vm11, %v2696_v29, %v2697_v63  ;;  %v2114_v36 = vpop.f32.mrf.mxu0  ;;  %v2300_v39 = vadd.f32 %v7447_v62, %v2256_v9  ;;  %v2009_v29 = vadd.f32 %v7660_v28, %v7587_v43 }
 0x484   : > { %v2115_v40 = vadd.f32 %v2114_v36, %v2006_v50  ;;  %v2778_v19 = vpack.c.bf16 %v2733_v41, %v2733_v41 }
 0x485   : > { %v7898_v33 = vpop.f32.mrf.mxu2  ;;  %v2340_v8 = vmax.f32 %v2300_v39, 0.0  ;;  %v2541_v39 = vpop.permute.xlu1 %2540 }
 0x486   : > { %9662 = vst [vmem:[#allocation4_spill] sm:$0xff] %v7898_v33  ;;  %v2177_v37 = vrot.slane %v2115_v40, 2  ;;  %v7917_v41 = vpop.f32.mrf.mxu1 }
 0x487   : > { %v2658_v34 = vmul.f32 %v2534_v14, %v2340_v8  ;;  %v2850_v8 = vunpack.c.l.b16 %v2778_v19 }
 0x488   : > { %v2207_v56 = vsel %vm2192_vm10, %v2176_v42, %v2177_v37  ;;  %v1595_v42 = vadd.f32 %v7836_v21, %v9664_v32 }
 0x489   : > { %v2698_v61 = vrot.slane %v2658_v34, 7  ;;  %v2257_v4 = vadd.f32 %v2207_v56, %v1593_v46 }
 0x48b   : > { %v2732_v51 = vsel %vm2715_vm11, %v2697_v63, %v2698_v61  ;;  %v2117_v9 = vpop.f32.mrf.mxu0  ;;  %v2301_v50 = vadd.f32 %v7447_v62, %v2257_v4  ;;  %v2011_v4 = vadd.f32 %v7681_v44, %v7616_v59 }
 0x48c   : > { %v2779_v36 = vpack.c.bf16 %v2732_v51, %v2732_v51  ;;  %v2118_v11 = vadd.f32 %v2117_v9, %v2009_v29  ;;  %v7923_v29 = vpop.f32.mrf.mxu3  ;;  %v7934_v51 = vld [vmem:[%s9518_s2] ss:$0 sm:$0xff] }
 0x48d   : > { %v7913_v40 = vpop.f32.mrf.mxu2  ;;  %v2341_v14 = vmax.f32 %v2301_v50, 0.0  ;;  %v2547_v50 = vpop.permute.xlu2 %2546 }
 0x48e   : > { %v2851_v43 = vunpack.c.l.b16 %v2779_v36  ;;  %v2178_v28 = vrot.slane %v2118_v11, 2  ;;  %v9665_v11 = vld [vmem:[#allocation25_spill] sm:$0xff] }
 0x48f   : > { %v2659_v46 = vmul.f32 %v2541_v39, %v2341_v14  ;;  %v1598_v39 = vadd.f32 %v7856_v38, %v9665_v11  ;;  %v9666_v11 = vld [vmem:[#allocation26_spill] sm:$0xff] }
 0x490   : > { %v7919_v34 = vpack.c.b16 %v2851_v43, %v2850_v8  ;;  %v2206_v62 = vsel %vm2192_vm10, %v2177_v37, %v2178_v28 }
 0x491   : > { %v2699_v63 = vrot.slane %v2659_v46, 7  ;;  %v2258_v56 = vadd.f32 %v2206_v62, %v1595_v42  ;;  %v7945_v42 = vpop.f32.mrf.mxu1 }
 0x492   : > { %3299 = vmatmul.bf16.gmra.mxu2 %v7919_v34  ;;  %3378 = vmatmul.bf16.gmra.mxu3 %v7919_v34 }
 0x493   : > { %v2731_v21 = vsel %vm2715_vm11, %v2698_v61, %v2699_v63  ;;  %v2119_v19 = vpop.f32.mrf.mxu0  ;;  %v2302_v37 = vadd.f32 %v7934_v51, %v2258_v56  ;;  %v2014_v61 = vadd.f32 %v7701_v5, %v7632_v45 }
 0x494   : > { %v2120_v9 = vadd.f32 %v2119_v19, %v2011_v4  ;;  %v2780_v46 = vpack.c.bf16 %v2731_v21, %v2731_v21  ;;  %v7949_v4 = vpop.f32.mrf.mxu3  ;;  %v1600_v21 = vadd.f32 %v7881_v47, %v9666_v11 }
 0x495   : > { %v7937_v36 = vpop.f32.mrf.mxu2  ;;  %v2342_v59 = vmax.f32 %v2302_v37, 0.0 }
 0x496   : > { %v2179_v44 = vrot.slane %v2120_v9, 2  ;;  %v2553_v9 = vpop.permute.xlu0 %2552 }
 0x497   : > { %v2660_v14 = vmul.f32 %v2547_v50, %v2342_v59 }
 0x498   : > { %v2205_v8 = vsel %vm2192_vm10, %v2178_v28, %v2179_v44  ;;  %v2852_v28 = vunpack.c.l.b16 %v2780_v46  ;;  %v2016_v46 = vadd.f32 %v7721_v1, %v7651_v13 }
 0x499   : > { %v2700_v43 = vrot.slane %v2660_v14, 7  ;;  %v2259_v32 = vadd.f32 %v2205_v8, %v1598_v39 }
 0x49b   : > { %v2730_v62 = vsel %vm2715_vm11, %v2699_v63, %v2700_v43  ;;  %v2122_v56 = vpop.f32.mrf.mxu0  ;;  %v2303_v38 = vadd.f32 %v7934_v51, %v2259_v32 }
 0x49c   : > { %v2781_v19 = vpack.c.bf16 %v2730_v62, %v2730_v62  ;;  %v2123_v37 = vadd.f32 %v2122_v56, %v2014_v61  ;;  %v5996_v61 = vld [vmem:[%s9519_s3 + $0xc8] sm:$0xff] }
 0x49d   : > { %v7952_v45 = vpop.f32.mrf.mxu2  ;;  %v2343_v5 = vmax.f32 %v2303_v38, 0.0  ;;  %3163 = vmatpush.bf16.msra.mxu1 %v5996_v61 }
 0x49e   : > { %v2853_v50 = vunpack.c.l.b16 %v2781_v19  ;;  %v2180_v59 = vrot.slane %v2123_v37, 2  ;;  %v2559_v19 = vpop.permute.xlu1 %2558 }
 0x49f   : > { %v2661_v39 = vmul.f32 %v2553_v9, %v2343_v5  ;;  %v9668_v5 = vld [vmem:[#allocation27_spill] sm:$0xff] }
 0x4a0   : > { %v7956_v14 = vpack.c.b16 %v2853_v50, %v2852_v28  ;;  %v2204_v63 = vsel %vm2192_vm10, %v2179_v44, %v2180_v59  ;;  %v7970_v44 = vpop.f32.mrf.mxu1  ;;  %v1603_v28 = vadd.f32 %v7900_v23, %v9668_v5 }
 0x4a1   : > { %v2701_v8 = vrot.slane %v2661_v39, 7  ;;  %v2260_v32 = vadd.f32 %v2204_v63, %v1600_v21 }
 0x4a2   : > { %3304 = vmatmul.bf16.gmra.mxu2 %v7956_v14  ;;  %3383 = vmatmul.bf16.gmra.mxu3 %v7956_v14 }
 0x4a3   : > { %v2729_v47 = vsel %vm2715_vm11, %v2700_v43, %v2701_v8  ;;  %v2124_v62 = vpop.f32.mrf.mxu0  ;;  %v2304_v56 = vadd.f32 %v7934_v51, %v2260_v32  ;;  %v2019_v43 = vadd.f32 %v7747_v22, %v7671_v55 }
 0x4a4   : > { %v2125_v38 = vadd.f32 %v2124_v62, %v2016_v46  ;;  %v2782_v63 = vpack.c.bf16 %v2729_v47, %v2729_v47  ;;  %v9669_v47 = vld [vmem:[#allocation28_spill] sm:$0xff] }
 0x4a5   : > { %v7972_v37 = vpop.f32.mrf.mxu2  ;;  %v7974_v9 = vpop.f32.mrf.mxu3  ;;  %v2344_v13 = vmax.f32 %v2304_v56, 0.0 }
 0x4a6   : > { %9667 = vst [vmem:[#allocation5_spill] sm:$0xff] %v7974_v9  ;;  %v2181_v1 = vrot.slane %v2125_v38, 2  ;;  %v2566_v38 = vpop.permute.xlu2 %2565  ;;  %v5982_v9 = vld [vmem:[%s9519_s3 + $0x58] sm:$0xff] }
 0x4a7   : > { %v2662_v50 = vmul.f32 %v2559_v19, %v2344_v13 }
 0x4a8   : > { %v2203_v11 = vsel %vm2192_vm10, %v2180_v59, %v2181_v1  ;;  %v7989_v22 = vpop.f32.mrf.mxu1  ;;  %v2854_v59 = vunpack.c.l.b16 %v2782_v63 }
 0x4a9   : > { %v2702_v21 = vrot.slane %v2662_v50, 7  ;;  %v2261_v39 = vadd.f32 %v2203_v11, %v1603_v28  ;;  %v1605_v28 = vadd.f32 %v7917_v41, %v9669_v47 }
 0x4ab   : > { %v2728_v61 = vsel %vm2715_vm11, %v2701_v8, %v2702_v21  ;;  %v2127_v32 = vpop.f32.mrf.mxu0  ;;  %v2305_v46 = vadd.f32 %v7934_v51, %v2261_v39 }
 0x4ac   : > { %v2783_v62 = vpack.c.bf16 %v2728_v61, %v2728_v61  ;;  %v2128_v56 = vadd.f32 %v2127_v32, %v2019_v43  ;;  %v2021_v61 = vadd.f32 %v7771_v26, %v7695_v49 }
 0x4ad   : > { %v7985_v23 = vpop.f32.mrf.mxu2  ;;  %v7987_v19 = vpop.f32.mrf.mxu3  ;;  %v2345_v55 = vmax.f32 %v2305_v46, 0.0 }
 0x4ae   : > { %v2855_v13 = vunpack.c.l.b16 %v2783_v62  ;;  %v2182_v5 = vrot.slane %v2128_v56, 2  ;;  %v2572_v62 = vpop.permute.xlu1 %2571 }
 0x4af   : > { %v2663_v8 = vmul.f32 %v2566_v38, %v2345_v55 }
 0x4b0   : > { %v7993_v50 = vpack.c.b16 %v2855_v13, %v2854_v59  ;;  %v2202_v43 = vsel %vm2192_vm10, %v2181_v1, %v2182_v5  ;;  %v9670_v59 = vld [vmem:[#allocation29_spill] sm:$0xff]  ;;  %v8010_v13 = vpop.f32.mrf.mxu1 }
 0x4b1   : > { %v2703_v11 = vrot.slane %v2663_v8, 7  ;;  %v2262_v39 = vadd.f32 %v2202_v43, %v1605_v28  ;;  %v1608_v49 = vadd.f32 %v7945_v42, %v9670_v59 }
 0x4b2   : > { %3309 = vmatmul.bf16.gmra.mxu2 %v7993_v50  ;;  %3388 = vmatmul.bf16.gmra.mxu3 %v7993_v50 }
 0x4b3   : > { %v2727_v63 = vsel %vm2715_vm11, %v2702_v21, %v2703_v11  ;;  %v2129_v32 = vpop.f32.mrf.mxu0  ;;  %v2306_v41 = vadd.f32 %v7934_v51, %v2262_v39  ;;  %v2024_v21 = vadd.f32 %v7798_v18, %v7716_v58 }
 0x4b4   : > { %v2130_v46 = vadd.f32 %v2129_v32, %v2021_v61  ;;  %v2784_v43 = vpack.c.bf16 %v2727_v63, %v2727_v63 }
 0x4b5   : > { %v8004_v56 = vpop.f32.mrf.mxu2  ;;  %v8006_v1 = vpop.f32.mrf.mxu3  ;;  %v2346_v38 = vmax.f32 %v2306_v41, 0.0 }
 0x4b6   : > { %v2183_v55 = vrot.slane %v2130_v46, 2  ;;  %v2578_v46 = vpop.permute.xlu2 %2577  ;;  %v2856_v18 = vunpack.c.l.b16 %v2784_v43  ;;  %v2026_v43 = vadd.f32 %v7818_v35, %v7738_v12  ;;  %v5985_v12 = vld [vmem:[%s9519_s3 + $0x70] sm:$0xff] }
 0x4b7   : > { %v2664_v26 = vmul.f32 %v2572_v62, %v2346_v38 }
 0x4b8   : > { %v2201_v47 = vsel %vm2192_vm10, %v2182_v5, %v2183_v55 }
 0x4b9   : > { %v2704_v28 = vrot.slane %v2664_v26, 7  ;;  %v2263_v8 = vadd.f32 %v2201_v47, %v1608_v49  ;;  %v9671_v26 = vld [vmem:[#allocation30_spill] sm:$0xff] }
 0x4ba   : > { %v1610_v63 = vadd.f32 %v7970_v44, %v9671_v26 }
 0x4bb   : > { %v2726_v39 = vsel %vm2715_vm11, %v2703_v11, %v2704_v28  ;;  %v2132_v61 = vpop.f32.mrf.mxu0  ;;  %v2307_v32 = vadd.f32 %v7934_v51, %v2263_v8 }
 0x4bc   : > { %v2785_v41 = vpack.c.bf16 %v2726_v39, %v2726_v39  ;;  %v2133_v42 = vadd.f32 %v2132_v61, %v2024_v21  ;;  %v5986_v39 = vld [vmem:[%s9519_s3 + $0x78] sm:$0xff]  ;;  %v8032_v61 = vpop.f32.mrf.mxu1 }
 0x4bd   : > { %v8019_v62 = vpop.f32.mrf.mxu2  ;;  %v8021_v38 = vpop.f32.mrf.mxu3  ;;  %v2347_v58 = vmax.f32 %v2307_v32, 0.0  ;;  %3721 = vmatpush.bf16.msrb.mxu2 %v5986_v39 }
 0x4be   : > { %v2857_v59 = vunpack.c.l.b16 %v2785_v41  ;;  %v2184_v5 = vrot.slane %v2133_v42, 2  ;;  %v2584_v42 = vpop.permute.xlu0 %2583 }
 0x4bf   : > { %v2665_v49 = vmul.f32 %v2578_v46, %v2347_v58 }
 0x4c0   : > { %v8025_v47 = vpack.c.b16 %v2857_v59, %v2856_v18  ;;  %v2200_v11 = vsel %vm2192_vm10, %v2183_v55, %v2184_v5  ;;  %v9672_v59 = vld [vmem:[#allocation31_spill] sm:$0xff] }
 0x4c1   : > { %v2705_v8 = vrot.slane %v2665_v49, 7  ;;  %v2264_v21 = vadd.f32 %v2200_v11, %v1610_v63  ;;  %v1613_v26 = vadd.f32 %v7989_v22, %v9672_v59  ;;  %3722 = vmatpush.bf16.msrb.mxu2 %v5985_v12  ;;  %v2029_v49 = vadd.f32 %v7842_v2, %v7764_v20 }
 0x4c2   : > { %3314 = vmatmul.bf16.gmra.mxu2 %v8025_v47  ;;  %3393 = vmatmul.bf16.gmra.mxu3 %v8025_v47 }
 0x4c3   : > { %v2725_v44 = vsel %vm2715_vm11, %v2704_v28, %v2705_v8  ;;  %v2134_v32 = vpop.f32.mrf.mxu0  ;;  %v2308_v55 = vadd.f32 %v7934_v51, %v2264_v21  ;;  %v5995_v28 = vld [vmem:[%s9519_s3 + $0xc0] sm:$0xff] }
 0x4c4   : > { %v2135_v41 = vadd.f32 %v2134_v32, %v2026_v43  ;;  %3164 = vmatpush.bf16.msra.mxu1 %v5995_v28  ;;  %v5984_v43 = vld [vmem:[%s9519_s3 + $0x68] sm:$0xff]  ;;  %v6026_v32 = vld [vmem:[%s9519_s3 + $0x1b8] sm:$0xff]  ;;  %v2786_v22 = vpack.c.bf16 %v2725_v44, %v2725_v44  ;;  %v8066_v2 = vpop.f32.mrf.mxu1  ;;  %v5983_v44 = vld [vmem:[%s9519_s3 + $0x60] sm:$0xff] }
 0x4c5   : > { %v8041_v46 = vpop.f32.mrf.mxu2  ;;  %v8043_v58 = vpop.f32.mrf.mxu3  ;;  %v2348_v18 = vmax.f32 %v2308_v55, 0.0  ;;  %3723 = vmatpush.bf16.msrb.mxu2 %v5984_v43  ;;  %4092 = vmatpush.bf16.msra.mxu0 %v6026_v32 }
 0x4c6   : > { %v2185_v35 = vrot.slane %v2135_v41, 2 }
 0x4c7   : > { %v2666_v63 = vmul.f32 %v2584_v42, %v2348_v18  ;;  %v2591_v18 = vpop.permute.xlu1 %2590 }
 0x4c8   : > { %v2199_v11 = vsel %vm2192_vm10, %v2184_v5, %v2185_v35 }
 0x4c9   : > { %v2706_v21 = vrot.slane %v2666_v63, 7  ;;  %v2265_v39 = vadd.f32 %v2199_v11, %v1613_v26  ;;  %v2858_v26 = vunpack.c.l.b16 %v2786_v22  ;;  %3724 = vmatpush.bf16.msrb.mxu2 %v5983_v44  ;;  %v6024_v22 = vld [vmem:[%s9519_s3 + $0x1a8] sm:$0xff] }
 0x4cb   : > { %v2724_v55 = vsel %vm2715_vm11, %v2705_v8, %v2706_v21  ;;  %v2137_v41 = vpop.f32.mrf.mxu0  ;;  %v2309_v20 = vadd.f32 %v7934_v51, %v2265_v39  ;;  %v6025_v8 = vld [vmem:[%s9519_s3 + $0x1b0] sm:$0xff] }
 0x4cc   : > { %v2787_v5 = vpack.c.bf16 %v2724_v55, %v2724_v55  ;;  %v2138_v42 = vadd.f32 %v2137_v41, %v2029_v49  ;;  %v9673_v39 = vld [vmem:[#allocation32_spill] sm:$0xff]  ;;  %4093 = vmatpush.bf16.msra.mxu0 %v6025_v8 }
 0x4cd   : > { %v8068_v12 = vpop.f32.mrf.mxu2  ;;  %v8070_v28 = vpop.f32.mrf.mxu3  ;;  %v2349_v59 = vmax.f32 %v2309_v20, 0.0  ;;  %v1615_v49 = vadd.f32 %v8010_v13, %v9673_v39  ;;  %v2031_v13 = vadd.f32 %v7865_v24, %v7792_v25  ;;  %3725 = vmatpush.bf16.msrb.mxu2 %v5982_v9  ;;  %v5981_v25 = vld [vmem:[%s9519_s3 + $0x50] sm:$0xff]  ;;  %v6023_v24 = vld [vmem:[%s9519_s3 + $0x1a0] sm:$0xff] }
 0x4ce   : > { %v2859_v63 = vunpack.c.l.b16 %v2787_v5  ;;  %v2186_v11 = vrot.slane %v2138_v42, 2  ;;  %v9674_v39 = vld [vmem:[#allocation20_spill] sm:$0xff] }
 0x4cf   : > { %v2667_v43 = vmul.f32 %v2591_v18, %v2349_v59  ;;  %v2597_v59 = vpop.permute.xlu2 %2596  ;;  %v1618_v9 = vadd.f32 %v8032_v61, %v9674_v39 }
 0x4d0   : > { %v8080_v32 = vpack.c.b16 %v2859_v63, %v2858_v26  ;;  %v2198_v55 = vsel %vm2192_vm10, %v2185_v35, %v2186_v11  ;;  %4094 = vmatpush.bf16.msra.mxu0 %v6024_v22 }
 0x4d1   : > { %v2707_v41 = vrot.slane %v2667_v43, 7  ;;  %v2266_v20 = vadd.f32 %v2198_v55, %v1615_v49  ;;  %3726 = vmatpush.bf16.msrb.mxu2 %v5981_v25  ;;  %v2034_v43 = vadd.f32 %v7883_v10, %v7811_v27 }
 0x4d2   : > { %3319 = vmatmul.bf16.gmra.mxu2 %v8080_v32  ;;  %3398 = vmatmul.bf16.gmra.mxu3 %v8080_v32 }
 0x4d3   : > { %v2723_v35 = vsel %vm2715_vm11, %v2706_v21, %v2707_v41  ;;  %v2139_v5 = vpop.f32.mrf.mxu0  ;;  %v2310_v42 = vadd.f32 %v7934_v51, %v2266_v20  ;;  %v1622_v21 = vpop.f32.mrf.mxu1 }
 0x4d4   : > { %v2140_v18 = vadd.f32 %v2139_v5, %v2031_v13  ;;  %4095 = vmatpush.bf16.msra.mxu0 %v6023_v24  ;;  %v5980_v13 = vld [vmem:[%s9519_s3 + $0x48] sm:$0xff]  ;;  %v6022_v5 = vld [vmem:[%s9519_s3 + $0x198] sm:$0xff]  ;;  %v2788_v61 = vpack.c.bf16 %v2723_v35, %v2723_v35  ;;  %v5979_v35 = vld [vmem:[%s9519_s3 + $0x40] sm:$0xff] }
 0x4d5   : > { %v8097_v44 = vpop.f32.mrf.mxu2  ;;  %v8099_v8 = vpop.f32.mrf.mxu3  ;;  %v2350_v26 = vmax.f32 %v2310_v42, 0.0  ;;  %3727 = vmatpush.bf16.msrb.mxu2 %v5980_v13 }
 0x4d6   : > { %v2187_v63 = vrot.slane %v2140_v18, 2  ;;  %v2896_v39 = vunpack.c.l.b16 %v2788_v61  ;;  %v5994_v61 = vld [vmem:[%s9519_s3 + $0xb8] sm:$0xff] }
 0x4d7   : > { %v2668_v49 = vmul.f32 %v2597_v59, %v2350_v26  ;;  %v2603_v59 = vpop.permute.xlu1 %2602  ;;  %3810 = vmatpush.bf16.msrb.mxu3 %v5994_v61 }
 0x4d8   : > { %v2197_v55 = vsel %vm2192_vm10, %v2186_v11, %v2187_v63  ;;  %4096 = vmatpush.bf16.msra.mxu0 %v6022_v5 }
 0x4d9   : > { %v2708_v20 = vrot.slane %v2668_v49, 7  ;;  %v2267_v22 = vadd.f32 %v2197_v55, %v1618_v9  ;;  %v9675_v55 = vld [vmem:[#allocation21_spill] sm:$0xff]  ;;  %3728 = vmatpush.bf16.msrb.mxu2 %v5979_v35  ;;  %v2609_v35 = vpop.permute.xlu2 %2608 }
 0x4db   : > { %v2722_v42 = vsel %vm2715_vm11, %v2707_v41, %v2708_v20  ;;  %v2142_v18 = vpop.f32.mrf.mxu0  ;;  %v2311_v27 = vadd.f32 %v7934_v51, %v2267_v22  ;;  %v6021_v41 = vld [vmem:[%s9519_s3 + $0x190] sm:$0xff]  ;;  %v1624_v13 = vpop.f32.mrf.mxu1 }
 0x4dc   : > { %v2789_v10 = vpack.c.bf16 %v2722_v42, %v2722_v42  ;;  %v2143_v11 = vadd.f32 %v2142_v18, %v2034_v43  ;;  %v1620_v43 = vadd.f32 %v8066_v2, %v9675_v55  ;;  %4097 = vmatpush.bf16.msra.mxu0 %v6021_v41  ;;  %v2036_v2 = vadd.f32 %v7904_v17, %v7834_v3  ;;  %v5993_v3 = vld [vmem:[%s9519_s3 + $0xb0] sm:$0xff]  ;;  %v6019_v17 = vld [vmem:[%s9519_s3 + $0x180] sm:$0xff]  ;;  %v9677_v55 = vld [vmem:[#allocation19_spill] sm:$0xff] }
 0x4dd   : > { %v8122_v26 = vpop.f32.mrf.mxu2  ;;  %v8124_v25 = vpop.f32.mrf.mxu3  ;;  %v2351_v24 = vmax.f32 %v2311_v27, 0.0  ;;  %3811 = vmatpush.bf16.msrb.mxu3 %v5993_v3 }
 0x4de   : > { %v2897_v9 = vunpack.c.l.b16 %v2789_v10  ;;  %v2188_v49 = vrot.slane %v2143_v11, 2  ;;  %v6020_v10 = vld [vmem:[%s9519_s3 + $0x188] sm:$0xff] }
 0x4df   : > { %v2669_v22 = vmul.f32 %v2603_v59, %v2351_v24 }
 0x4e0   : > { %v8134_v5 = vpack.c.b16 %v2897_v9, %v2896_v39  ;;  %v2196_v42 = vsel %vm2192_vm10, %v2187_v63, %v2188_v49  ;;  %4098 = vmatpush.bf16.msra.mxu0 %v6020_v10 }
 0x4e1   : > { %v2709_v18 = vrot.slane %v2669_v22, 7  ;;  %v2268_v27 = vadd.f32 %v2196_v42, %v1620_v43  ;;  %v1623_v43 = vadd.f32 %v1622_v21, %v9677_v55  ;;  %v2039_v42 = vadd.f32 %v7923_v29, %v7854_v6  ;;  %v5978_v21 = vld [vmem:[%s9519_s3 + $0x38] sm:$0xff]  ;;  %v5991_v55 = vld [vmem:[%s9519_s3 + $0xa0] sm:$0xff] }
 0x4e2   : > { %9676 = vst [vmem:[#allocation6_spill] sm:$0xff] %v8134_v5  ;;  %3324 = vmatmul.bf16.gmra.mxu2 %v8134_v5  ;;  %3403 = vmatmul.bf16.gmra.mxu3 %v8134_v5 }
 0x4e3   : > { %v2721_v63 = vsel %vm2715_vm11, %v2708_v20, %v2709_v18  ;;  %v2144_v11 = vpop.f32.mrf.mxu0  ;;  %v2312_v59 = vadd.f32 %v7934_v51, %v2268_v27  ;;  %3632 = vmatpush.bf16.msrb.mxu1 %v5978_v21 }
 0x4e4   : > { %v2145_v24 = vadd.f32 %v2144_v11, %v2036_v2  ;;  %4099 = vmatpush.bf16.msra.mxu0 %v6019_v17  ;;  %v5992_v2 = vld [vmem:[%s9519_s3 + $0xa8] sm:$0xff]  ;;  %v1627_v11 = vpop.f32.mrf.mxu1 }
 0x4e5   : > { %v8151_v41 = vpop.f32.mrf.mxu2  ;;  %v8153_v39 = vpop.f32.mrf.mxu3  ;;  %v2352_v9 = vmax.f32 %v2312_v59, 0.0  ;;  %v2790_v59 = vpack.c.bf16 %v2721_v63, %v2721_v63  ;;  %3812 = vmatpush.bf16.msrb.mxu3 %v5992_v2 }
 0x4e6   : > { %v2189_v20 = vrot.slane %v2145_v24, 2 }
 0x4e7   : > { %v2670_v22 = vmul.f32 %v2609_v35, %v2352_v9  ;;  %v2616_v9 = vpop.permute.xlu0 %2615 }
 0x4e8   : > { %v2195_v27 = vsel %vm2192_vm10, %v2188_v49, %v2189_v20 }
 0x4e9   : > { %v2710_v61 = vrot.slane %v2670_v22, 7  ;;  %v2269_v10 = vadd.f32 %v2195_v27, %v1623_v43  ;;  %v2898_v43 = vunpack.c.l.b16 %v2790_v59  ;;  %v9678_v27 = vld [vmem:[#allocation33_spill] sm:$0xff]  ;;  %3813 = vmatpush.bf16.msrb.mxu3 %v5991_v55  ;;  %v2041_v59 = vadd.f32 %v7949_v4, %v7878_v0  ;;  %v5989_v0 = vld [vmem:[%s9519_s3 + $0x90] sm:$0xff] }
 0x4ea   : > { %v1625_v33 = vadd.f32 %v1624_v13, %v9678_v27 }
 0x4eb   : > { %v2720_v24 = vsel %vm2715_vm11, %v2709_v18, %v2710_v61  ;;  %v2147_v35 = vpop.f32.mrf.mxu0  ;;  %v2313_v6 = vadd.f32 %v7934_v51, %v2269_v10 }
 0x4ec   : > { %v2791_v29 = vpack.c.bf16 %v2720_v24, %v2720_v24  ;;  %v2148_v49 = vadd.f32 %v2147_v35, %v2039_v42  ;;  %v5990_v35 = vld [vmem:[%s9519_s3 + $0x98] sm:$0xff] }
 0x4ed   : > { %v8175_v3 = vpop.f32.mrf.mxu2  ;;  %v8177_v17 = vpop.f32.mrf.mxu3  ;;  %v2353_v63 = vmax.f32 %v2313_v6, 0.0  ;;  %3814 = vmatpush.bf16.msrb.mxu3 %v5990_v35 }
 0x4ee   : > { %v2899_v22 = vunpack.c.l.b16 %v2791_v29  ;;  %v2190_v18 = vrot.slane %v2148_v49, 2  ;;  %v2622_v49 = vpop.permute.xlu1 %2621 }
 0x4ef   : > { %v2671_v10 = vmul.f32 %v2616_v9, %v2353_v63 }
 0x4f0   : > { %v8183_v2 = vpack.c.b16 %v2899_v22, %v2898_v43  ;;  %v2194_v42 = vsel %vm2192_vm10, %v2189_v20, %v2190_v18  ;;  %v1629_v20 = vpop.f32.mrf.mxu1  ;;  %v9681_v43 = vld [vmem:[#allocation22_spill] sm:$0xff] }
 0x4f1   : > { %v2711_v21 = vrot.slane %v2671_v10, 7  ;;  %v2270_v24 = vadd.f32 %v2194_v42, %v1625_v33  ;;  %v1628_v22 = vadd.f32 %v1627_v11, %v9681_v43  ;;  %3815 = vmatpush.bf16.msrb.mxu3 %v5989_v0  ;;  %v9683_v42 = vld [vmem:[#allocation35_spill] sm:$0xff]  ;;  %v2628_v43 = vpop.permute.xlu2 %2627 }
 0x4f2   : > { %9679 = vst [vmem:[#allocation11_spill] sm:$0xff] %v8183_v2  ;;  %3329 = vmatmul.bf16.gmra.mxu2 %v8183_v2  ;;  %3408 = vmatmul.bf16.gmra.mxu3 %v8183_v2 }
 0x4f3   : > { %v2719_v13 = vsel %vm2715_vm11, %v2710_v61, %v2711_v21  ;;  %v2149_v6 = vpop.f32.mrf.mxu0  ;;  %v2314_v29 = vadd.f32 %v7934_v51, %v2270_v24  ;;  %v9682_v61 = vld [vmem:[#allocation34_spill] sm:$0xff]  ;;  %v9684_v24 = vrot.slane %v9683_v42, 2 }
 0x4f4   : > { %v2150_v33 = vadd.f32 %v2149_v6, %v2041_v59  ;;  %v1630_v27 = vadd.f32 %v1629_v20, %v9682_v61  ;;  %v2792_v11 = vpack.c.bf16 %v2719_v13, %v2719_v13  ;;  %v9685_v61 = vld [vmem:[#allocation37_spill] sm:$0xff]  ;;  %v5987_v13 = vld [vmem:[%s9519_s3 + $0x80] sm:$0xff] }
 0x4f5   : > { %v8197_v9 = vpop.f32.mrf.mxu2  ;;  %v8199_v63 = vpop.f32.mrf.mxu3  ;;  %v2354_v55 = vmax.f32 %v2314_v29, 0.0 }
 0x4f6   : > { %9680 = vst [vmem:[#allocation7_spill] sm:$0xff] %v8197_v9  ;;  %v2191_v4 = vrot.slane %v2150_v33, 2  ;;  %v5988_v33 = vld [vmem:[%s9519_s3 + $0x88] sm:$0xff]  ;;  %v2908_v42 = vunpack.c.l.b16 %v2792_v11 }
 0x4f7   : > { %v2672_v10 = vmul.f32 %v2622_v49, %v2354_v55  ;;  %3816 = vmatpush.bf16.msrb.mxu3 %v5988_v33 }
 0x4f8   : > { %v2232_v35 = vsel %vm2192_vm10, %v2191_v4, %v9684_v24  ;;  %v2193_v59 = vsel %vm2192_vm10, %v2190_v18, %v2191_v4  ;;  %v6217_v18 = vunpack.i.h.bf16 %v9685_v61 }
 0x4f9   : > { %v2272_v6 = vadd.f32 %v2232_v35, %v1630_v27  ;;  %v2712_v29 = vrot.slane %v2672_v10, 7  ;;  %v2271_v9 = vadd.f32 %v2193_v59, %v1628_v22 }
 0x4fb   : > { %v2316_v20 = vadd.f32 %v7934_v51, %v2272_v6  ;;  %v2718_v49 = vsel %vm2715_vm11, %v2711_v21, %v2712_v29  ;;  %v2315_v55 = vadd.f32 %v7934_v51, %v2271_v9  ;;  %3817 = vmatpush.bf16.msrb.mxu3 %v5987_v13  ;;  %v9686_v6 = vld [vmem:[#allocation41_spill] sm:$0xff] }
 0x4fc   : > { %v2793_v0 = vpack.c.bf16 %v2718_v49, %v2718_v49  ;;  %v2757_v33 = vpack.c.bf16 %v9686_v6, %v9686_v6  ;;  %v9687_v49 = vld [vmem:[#allocation40_spill] sm:$0xff] }
 0x4fd   : > { %v2356_v4 = vmax.f32 %v2316_v20, 0.0  ;;  %v8220_v27 = vpop.f32.mrf.mxu2  ;;  %v8222_v22 = vpop.f32.mrf.mxu3  ;;  %v2355_v10 = vmax.f32 %v2315_v55, 0.0  ;;  %v9688_v55 = vrot.slane %v9687_v49, 7 }
 0x4fe   : > { %v2909_v24 = vunpack.c.l.b16 %v2793_v0  ;;  %v2829_v13 = vunpack.c.l.b16 %v2757_v33 }
 0x4ff   : > { %v2673_v21 = vmul.f32 %v2628_v43, %v2355_v10  ;;  %v2674_v35 = vmul.f32 %v6217_v18, %v2356_v4 }
 0x500   : > { %v8227_v51 = vpack.c.b16 %v2909_v24, %v2908_v42 }
 0x501   : > { %v2713_v9 = vrot.slane %v2673_v21, 7  ;;  %v2714_v59 = vrot.slane %v2674_v35, 7 }
 0x502   : > { %3413 = vmatmul.bf16.gmra.mxu3 %v8227_v51  ;;  %3729 = vmatmul.bf16.vlgmr.msrb.gmra.mxu2 %v7606_v15 }
 0x503   : > { %v2716_v20 = vsel %vm2715_vm11, %v2713_v9, %v2714_v59  ;;  %v2717_v11 = vsel %vm2715_vm11, %v2712_v29, %v2713_v9  ;;  %v2755_v0 = vsel %vm2715_vm11, %v2714_v59, %v9688_v55  ;;  %v5977_v29 = vld [vmem:[%s9519_s3 + $0x30] sm:$0xff] }
 0x504   : > { %v2794_v43 = vpack.c.bf16 %v2717_v11, %v2717_v11  ;;  %v2795_v61 = vpack.c.bf16 %v2716_v20, %v2716_v20  ;;  %v2756_v18 = vpack.c.bf16 %v2755_v0, %v2755_v0  ;;  %3633 = vmatpush.bf16.msrb.mxu1 %v5977_v29 }
 0x505   : > { %v8241_v4 = vpop.f32.mrf.mxu2  ;;  %v8243_v10 = vpop.f32.mrf.mxu3 }
 0x506   : > { %v2828_v42 = vunpack.c.l.b16 %v2756_v18  ;;  %v2910_v24 = vunpack.c.l.b16 %v2794_v43  ;;  %v2911_v21 = vunpack.c.l.b16 %v2795_v61  ;;  %v5976_v43 = vld [vmem:[%s9519_s3 + $0x28] sm:$0xff] }
 0x508   : > { %v8245_v35 = vpack.c.b16 %v2829_v13, %v2828_v42  ;;  %v8247_v6 = vpack.c.b16 %v2911_v21, %v2910_v24  ;;  %3634 = vmatpush.bf16.msrb.mxu1 %v5976_v43 }
 0x50a   : > { %3165 = vmatmul.bf16.vlgmr.msra.gmra.mxu1 %v8245_v35  ;;  %4100 = vmatmul.bf16.vlgmr.msra.gmra.mxu0 %v8245_v35 }
 0x50d   : > { %v8254_v9 = vpop.f32.mrf.mxu2  ;;  %v8256_v59 = vpop.f32.mrf.mxu3 }
 0x512   : > { %3418 = vmatmul.bf16.gmra.mxu3 %v8247_v6  ;;  %3734 = vmatmul.bf16.gmra.mxu2 %v7642_v53 }
 0x515   : > { %v8260_v33 = vpop.f32.mrf.mxu2  ;;  %v8262_v20 = vpop.f32.mrf.mxu3 }
 0x51a   : > { %3170 = vmatmul.bf16.gmra.mxu1 %v7565_v31  ;;  %4105 = vmatmul.bf16.gmra.mxu0 %v7565_v31 }
 0x51d   : > { %v8266_v11 = vpop.f32.mrf.mxu2  ;;  %v8268_v49 = vpop.f32.mrf.mxu3 }
 0x522   : > { %3739 = vmatmul.bf16.gmra.mxu2 %v7666_v60  ;;  %3818 = vmatmul.bf16.vlgmr.msrb.gmra.mxu3 %v7666_v60 }
 0x525   : > { %v8272_v55 = vpop.f32.mrf.mxu2  ;;  %v8274_v0 = vpop.f32.mrf.mxu3 }
 0x526   : > { %9689 = vst [vmem:[#allocation17_spill] sm:$0xff] %v8272_v55 }
 0x52a   : > { %3175 = vmatmul.bf16.gmra.mxu1 %v7606_v15  ;;  %4110 = vmatmul.bf16.gmra.mxu0 %v7606_v15 }
 0x52d   : > { %v8281_v61 = vpop.f32.mrf.mxu2  ;;  %v8283_v18 = vpop.f32.mrf.mxu3 }
 0x52e   : > { %9690 = vst [vmem:[#allocation8_spill] sm:$0xff] %v8281_v61 }
 0x532   : > { %3744 = vmatmul.bf16.gmra.mxu2 %v7705_v52  ;;  %3823 = vmatmul.bf16.gmra.mxu3 %v7705_v52 }
 0x535   : > { %v8287_v13 = vpop.f32.mrf.mxu2  ;;  %v8289_v42 = vpop.f32.mrf.mxu3 }
 0x536   : > { %9691 = vst [vmem:[#allocation13_spill] sm:$0xff] %v8287_v13 }
 0x53a   : > { %3180 = vmatmul.bf16.gmra.mxu1 %v7642_v53  ;;  %4115 = vmatmul.bf16.gmra.mxu0 %v7642_v53  ;;  %v5975_v53 = vld [vmem:[%s9519_s3 + $0x20] sm:$0xff] }
 0x53b   : > { %3635 = vmatpush.bf16.msrb.mxu1 %v5975_v53 }
 0x53d   : > { %v8293_v24 = vpop.f32.mrf.mxu2  ;;  %v8295_v21 = vpop.f32.mrf.mxu3 }
 0x53e   : > { %9692 = vst [vmem:[#allocation10_spill] sm:$0xff] %v8293_v24 }
 0x542   : > { %3749 = vmatmul.bf16.gmra.mxu2 %v7742_v48  ;;  %3828 = vmatmul.bf16.gmra.mxu3 %v7742_v48 }
 0x545   : > { %v8299_v29 = vpop.f32.mrf.mxu2  ;;  %v8301_v43 = vpop.f32.mrf.mxu3 }
 0x546   : > { %9693 = vst [vmem:[#allocation36_spill] sm:$0xff] %v8299_v29 }
 0x547   : > { %9694 = vst [vmem:[#allocation14_spill] sm:$0xff] %v8301_v43 }
 0x54a   : > { %3185 = vmatmul.bf16.gmra.mxu1 %v7666_v60  ;;  %4120 = vmatmul.bf16.gmra.mxu0 %v7666_v60 }
 0x54d   : > { %v8308_v24 = vpop.f32.mrf.mxu2  ;;  %v8310_v13 = vpop.f32.mrf.mxu3 }
 0x54e   : > { %9695 = vst [vmem:[#allocation38_spill] sm:$0xff] %v8308_v24 }
 0x54f   : > { %9696 = vst [vmem:[#allocation9_spill] sm:$0xff] %v8310_v13 }
 0x552   : > { %3754 = vmatmul.bf16.gmra.mxu2 %v7778_v30  ;;  %3833 = vmatmul.bf16.gmra.mxu3 %v7778_v30 }
 0x555   : > { %v8314_v29 = vpop.f32.mrf.mxu2  ;;  %v8316_v61 = vpop.f32.mrf.mxu3 }
 0x556   : > { %9697 = vst [vmem:[#allocation39_spill] sm:$0xff] %v8314_v29  ;;  %v5974_v29 = vld [vmem:[%s9519_s3 + $0x18] sm:$0xff] }
 0x557   : > { %9698 = vst [vmem:[#allocation16_spill] sm:$0xff] %v8316_v61  ;;  %3636 = vmatpush.bf16.msrb.mxu1 %v5974_v29 }
 0x55a   : > { %3190 = vmatmul.bf16.gmra.mxu1 %v7705_v52  ;;  %4125 = vmatmul.bf16.gmra.mxu0 %v7705_v52 }
 0x55d   : > { %v8320_v15 = vpop.f32.mrf.mxu2  ;;  %v8322_v43 = vpop.f32.mrf.mxu3 }
 0x55e   : > { %9699 = vst [vmem:[#allocation12_spill] sm:$0xff] %v8320_v15 }
 0x55f   : > { %9700 = vst [vmem:[#allocation15_spill] sm:$0xff] %v8322_v43 }
 0x562   : > { %3759 = vmatmul.bf16.gmra.mxu2 %v7820_v16  ;;  %3838 = vmatmul.bf16.gmra.mxu3 %v7820_v16 }
 0x565   : > { %v8326_v53 = vpop.f32.mrf.mxu2  ;;  %v8328_v24 = vpop.f32.mrf.mxu3 }
 0x566   : > { %9701 = vst [vmem:[#allocation18_spill] sm:$0xff] %v8326_v53 }
 0x567   : > { %9702 = vst [vmem:[#allocation23_spill] sm:$0xff] %v8328_v24 }
 0x56a   : > { %3195 = vmatmul.bf16.gmra.mxu1 %v7742_v48  ;;  %4130 = vmatmul.bf16.gmra.mxu0 %v7742_v48 }
 0x56d   : > { %v8335_v61 = vpop.f32.mrf.mxu2  ;;  %v8337_v15 = vpop.f32.mrf.mxu3 }
 0x56e   : > { %9703 = vst [vmem:[#allocation24_spill] sm:$0xff] %v8335_v61 }
 0x56f   : > { %9704 = vst [vmem:[#allocation25_spill] sm:$0xff] %v8337_v15 }
 0x572   : > { %3764 = vmatmul.bf16.gmra.mxu2 %v7850_v54  ;;  %3843 = vmatmul.bf16.gmra.mxu3 %v7850_v54 }
 0x575   : > { %v8341_v53 = vpop.f32.mrf.mxu2  ;;  %v8343_v24 = vpop.f32.mrf.mxu3 }
 0x576   : > { %9705 = vst [vmem:[#allocation26_spill] sm:$0xff] %v8341_v53 }
 0x577   : > { %9706 = vst [vmem:[#allocation27_spill] sm:$0xff] %v8343_v24 }
 0x57a   : > { %3200 = vmatmul.bf16.gmra.mxu1 %v7778_v30  ;;  %4135 = vmatmul.bf16.gmra.mxu0 %v7778_v30 }
 0x57d   : > { %v8347_v43 = vpop.f32.mrf.mxu2  ;;  %v8349_v13 = vpop.f32.mrf.mxu3 }
 0x57e   : > { %9707 = vst [vmem:[#allocation28_spill] sm:$0xff] %v8347_v43  ;;  %v5973_v43 = vld [vmem:[%s9519_s3 + $0x10] sm:$0xff] }
 0x57f   : > { %9708 = vst [vmem:[#allocation29_spill] sm:$0xff] %v8349_v13  ;;  %3637 = vmatpush.bf16.msrb.mxu1 %v5973_v43 }
 0x582   : > { %3769 = vmatmul.bf16.gmra.mxu2 %v7887_v7  ;;  %3848 = vmatmul.bf16.gmra.mxu3 %v7887_v7 }
 0x585   : > { %v8353_v29 = vpop.f32.mrf.mxu3  ;;  %v8355_v61 = vpop.f32.mrf.mxu2 }
 0x586   : > { %9709 = vst [vmem:[#allocation30_spill] sm:$0xff] %v8353_v29 }
 0x587   : > { %9710 = vst [vmem:[#allocation31_spill] sm:$0xff] %v8355_v61  ;;  %v8357_v15 = vpop.f32.mrf.mxu1 }
 0x588   : > { %9711 = vst [vmem:[#allocation32_spill] sm:$0xff] %v8357_v15 }
 0x58a   : > { %3205 = vmatmul.bf16.gmra.mxu1 %v7820_v16  ;;  %4140 = vmatmul.bf16.gmra.mxu0 %v7820_v16 }
 0x58d   : > { %v8364_v53 = vpop.f32.mrf.mxu3  ;;  %v8366_v13 = vpop.f32.mrf.mxu2 }
 0x58e   : > { %9712 = vst [vmem:[#allocation20_spill] sm:$0xff] %v8364_v53 }
 0x58f   : > { %9713 = vst [vmem:[#allocation21_spill] sm:$0xff] %v8366_v13  ;;  %v3168_v24 = vpop.f32.mrf.mxu1 }
 0x590   : > { %v3258_v61 = vadd.f32 %v7913_v40, %v3168_v24 }
 0x592   : > { %3774 = vmatmul.bf16.gmra.mxu2 %v7919_v34  ;;  %3853 = vmatmul.bf16.gmra.mxu3 %v7919_v34  ;;  %v8376_v30 = vadd.f32 %v7987_v19, %v3258_v61 }
 0x594   : > { %v9544_v43 = vrot.slane %v8376_v30, 1 }
 0x595   : > { %v8371_v15 = vpop.f32.mrf.mxu3  ;;  %v8373_v29 = vpop.f32.mrf.mxu2 }
 0x596   : > { %9714 = vst [vmem:[#allocation19_spill] sm:$0xff] %v8373_v29 }
 0x597   : > { %v3171_v16 = vpop.f32.mrf.mxu1 }
 0x598   : > { %v3261_v53 = vadd.f32 %v7937_v36, %v3171_v16 }
 0x59a   : > { %v3350_v13 = vadd.f32 %v8006_v1, %v3261_v53  ;;  %3210 = vmatmul.bf16.gmra.mxu1 %v7850_v54  ;;  %4145 = vmatmul.bf16.gmra.mxu0 %v7850_v54 }
 0x59c   : > { %v3426_v55 = vrot.slane %v3350_v13, 1 }
 0x59d   : > { %v8383_v40 = vpop.f32.mrf.mxu3  ;;  %v8385_v24 = vpop.f32.mrf.mxu2 }
 0x59e   : > { %9715 = vst [vmem:[#allocation33_spill] sm:$0xff] %v8385_v24  ;;  %v8391_v19 = vsel %vm1120_vm0, %v9544_v43, %v3426_v55 }
 0x59f   : > { %v3173_v16 = vpop.f32.mrf.mxu1 }
 0x5a0   : > { %v3263_v36 = vadd.f32 %v7952_v45, %v3173_v16  ;;  %v5972_v16 = vld [vmem:[%s9519_s3 + $0x8] sm:$0xff] }
 0x5a1   : > { %3638 = vmatpush.bf16.msrb.mxu1 %v5972_v16 }
 0x5a2   : > { %v3352_v1 = vadd.f32 %v8021_v38, %v3263_v36  ;;  %3779 = vmatmul.bf16.gmra.mxu2 %v7956_v14  ;;  %3858 = vmatmul.bf16.gmra.mxu3 %v7956_v14 }
 0x5a4   : > { %v3427_v61 = vrot.slane %v3352_v1, 1 }
 0x5a5   : > { %v8397_v13 = vpop.f32.mrf.mxu2  ;;  %v8399_v53 = vpop.f32.mrf.mxu3 }
 0x5a6   : > { %9716 = vst [vmem:[#allocation22_spill] sm:$0xff] %v8397_v13  ;;  %v8403_v24 = vsel %vm1120_vm0, %v3426_v55, %v3427_v61 }
 0x5a7   : > { %9717 = vst [vmem:[#allocation34_spill] sm:$0xff] %v8399_v53  ;;  %v3176_v43 = vpop.f32.mrf.mxu1 }
 0x5a8   : > { %v3266_v29 = vadd.f32 %v7972_v37, %v3176_v43  ;;  %v8424_v43 = vpop.f32.mrf.mxu0 }
 0x5a9   : > { %9720 = vst [vmem:[#allocation41_spill] sm:$0xff] %v8424_v43  ;;  %v9805_v43 = vld [vmem:[#allocation28_spill] sm:$0xff] }
 0x5aa   : > { %v3355_v45 = vadd.f32 %v8043_v58, %v3266_v29  ;;  %3215 = vmatmul.bf16.gmra.mxu1 %v7887_v7  ;;  %4150 = vmatmul.bf16.gmra.mxu0 %v7887_v7 }
 0x5ac   : > { %v3428_v38 = vrot.slane %v3355_v45, 1 }
 0x5ad   : > { %v8412_v36 = vpop.f32.mrf.mxu2  ;;  %v8414_v1 = vpop.f32.mrf.mxu3 }
 0x5ae   : > { %9718 = vst [vmem:[#allocation35_spill] sm:$0xff] %v8412_v36  ;;  %v8418_v55 = vsel %vm1120_vm0, %v3427_v61, %v3428_v38 }
 0x5af   : > { %9719 = vst [vmem:[#allocation37_spill] sm:$0xff] %v8414_v1  ;;  %v3178_v37 = vpop.f32.mrf.mxu1  ;;  %v9789_v1 = vld [vmem:[#allocation29_spill] sm:$0xff] }
 0x5b0   : > { %v3268_v58 = vadd.f32 %v7985_v23, %v3178_v37 }
 0x5b2   : > { %v3357_v29 = vadd.f32 %v8070_v28, %v3268_v58  ;;  %3784 = vmatmul.bf16.gmra.mxu2 %v7993_v50  ;;  %3863 = vmatmul.bf16.gmra.mxu3 %v7993_v50 }
 0x5b4   : > { %v3429_v45 = vrot.slane %v3357_v29, 1 }
 0x5b5   : > { %v8426_v36 = vpop.f32.mrf.mxu2  ;;  %v8428_v13 = vpop.f32.mrf.mxu3 }
 0x5b6   : > { %9721 = vst [vmem:[#allocation40_spill] sm:$0xff] %v8426_v36  ;;  %v8432_v61 = vsel %vm1120_vm0, %v3428_v38, %v3429_v45  ;;  %v8442_v36 = vpop.f32.mrf.mxu0 }
 0x5b7   : > { %9722 = vst [vmem:[#allocation44_spill] sm:$0xff] %v8428_v13  ;;  %v3181_v16 = vpop.f32.mrf.mxu1 }
 0x5b8   : > { %v3271_v23 = vadd.f32 %v8004_v56, %v3181_v16  ;;  %9725 = vst [vmem:[#allocation47_spill] sm:$0xff] %v8442_v36 }
 0x5ba   : > { %v3360_v28 = vadd.f32 %v8099_v8, %v3271_v23  ;;  %3220 = vmatmul.bf16.gmra.mxu1 %v7919_v34  ;;  %4155 = vmatmul.bf16.gmra.mxu0 %v7919_v34  ;;  %v6042_v8 = vld [vmem:[%s9519_s3 + $0x238] sm:$0xff] }
 0x5bb   : > { %4270 = vmatpush.bf16.msra.mxu2 %v6042_v8  ;;  %v6040_v8 = vld [vmem:[%s9519_s3 + $0x228] sm:$0xff] }
 0x5bc   : > { %v3430_v37 = vrot.slane %v3360_v28, 1 }
 0x5bd   : > { %v8438_v58 = vpop.f32.mrf.mxu2  ;;  %v8440_v29 = vpop.f32.mrf.mxu3 }
 0x5be   : > { %9723 = vst [vmem:[#allocation45_spill] sm:$0xff] %v8438_v58  ;;  %v8446_v38 = vsel %vm1120_vm0, %v3429_v45, %v3430_v37 }
 0x5bf   : > { %9724 = vst [vmem:[#allocation46_spill] sm:$0xff] %v8440_v29  ;;  %v3183_v13 = vpop.f32.mrf.mxu1  ;;  %v9774_v29 = vld [vmem:[#allocation3_spill] sm:$0xff] }
 0x5c0   : > { %v3273_v56 = vadd.f32 %v8019_v62, %v3183_v13  ;;  %v6041_v62 = vld [vmem:[%s9519_s3 + $0x230] sm:$0xff] }
 0x5c1   : > { %4271 = vmatpush.bf16.msra.mxu2 %v6041_v62 }
 0x5c2   : > { %v3362_v16 = vadd.f32 %v8124_v25, %v3273_v56  ;;  %3789 = vmatmul.bf16.gmra.mxu2 %v8025_v47  ;;  %3868 = vmatmul.bf16.gmra.mxu3 %v8025_v47  ;;  %v8466_v25 = vpop.f32.mrf.mxu0 }
 0x5c3   : > { %9728 = vst [vmem:[#allocation50_spill] sm:$0xff] %v8466_v25 }
 0x5c4   : > { %v3431_v23 = vrot.slane %v3362_v16, 1 }
 0x5c5   : > { %v8455_v28 = vpop.f32.mrf.mxu2  ;;  %v8457_v58 = vpop.f32.mrf.mxu3  ;;  %4272 = vmatpush.bf16.msra.mxu2 %v6040_v8  ;;  %v6038_v8 = vld [vmem:[%s9519_s3 + $0x218] sm:$0xff] }
 0x5c6   : > { %9726 = vst [vmem:[#allocation48_spill] sm:$0xff] %v8455_v28  ;;  %v8464_v13 = vsel %vm1120_vm0, %v3430_v37, %v3431_v23  ;;  %v5971_v37 = vld [vmem:[%s9519_s3] sm:$0xff] }
 0x5c7   : > { %9727 = vst [vmem:[#allocation49_spill] sm:$0xff] %v8457_v58  ;;  %v3186_v45 = vpop.f32.mrf.mxu1  ;;  %3639 = vmatpush.bf16.msrb.mxu1 %v5971_v37 }
 0x5c8   : > { %v3276_v56 = vadd.f32 %v8041_v46, %v3186_v45  ;;  %v6039_v46 = vld [vmem:[%s9519_s3 + $0x220] sm:$0xff] }
 0x5c9   : > { %4273 = vmatpush.bf16.msra.mxu2 %v6039_v46 }
 0x5ca   : > { %v3365_v16 = vadd.f32 %v8153_v39, %v3276_v56  ;;  %3225 = vmatmul.bf16.gmra.mxu1 %v7956_v14  ;;  %4160 = vmatmul.bf16.gmra.mxu0 %v7956_v14 }
 0x5cc   : > { %v3432_v28 = vrot.slane %v3365_v16, 1  ;;  %v8493_v16 = vpop.f32.mrf.mxu0 }
 0x5cd   : > { %v8478_v62 = vpop.f32.mrf.mxu2  ;;  %v8480_v58 = vpop.f32.mrf.mxu3  ;;  %9731 = vst [vmem:[#allocation53_spill] sm:$0xff] %v8493_v16  ;;  %4274 = vmatpush.bf16.msra.mxu2 %v6038_v8 }
 0x5ce   : > { %9729 = vst [vmem:[#allocation51_spill] sm:$0xff] %v8478_v62  ;;  %v8487_v39 = vsel %vm1120_vm0, %v3431_v23, %v3432_v28 }
 0x5cf   : > { %9730 = vst [vmem:[#allocation52_spill] sm:$0xff] %v8480_v58  ;;  %v3188_v45 = vpop.f32.mrf.mxu1 }
 0x5d0   : > { %v3278_v56 = vadd.f32 %v8068_v12, %v3188_v45  ;;  %v6037_v12 = vld [vmem:[%s9519_s3 + $0x210] sm:$0xff] }
 0x5d1   : > { %4275 = vmatpush.bf16.msra.mxu2 %v6037_v12 }
 0x5d2   : > { %v3367_v62 = vadd.f32 %v8177_v17, %v3278_v56  ;;  %3794 = vmatmul.bf16.gmra.mxu2 %v8080_v32  ;;  %3873 = vmatmul.bf16.gmra.mxu3 %v8080_v32 }
 0x5d4   : > { %v3433_v37 = vrot.slane %v3367_v62, 1  ;;  %v6036_v62 = vld [vmem:[%s9519_s3 + $0x208] sm:$0xff]  ;;  %v8516_v8 = vpop.f32.mrf.mxu0 }
 0x5d5   : > { %v8498_v23 = vpop.f32.mrf.mxu2  ;;  %v8500_v58 = vpop.f32.mrf.mxu3  ;;  %4276 = vmatpush.bf16.msra.mxu2 %v6036_v62  ;;  %9734 = vst [vmem:[#allocation56_spill] sm:$0xff] %v8516_v8 }
 0x5d6   : > { %9732 = vst [vmem:[#allocation54_spill] sm:$0xff] %v8498_v23  ;;  %v8507_v46 = vsel %vm1120_vm0, %v3432_v28, %v3433_v37 }
 0x5d7   : > { %9733 = vst [vmem:[#allocation55_spill] sm:$0xff] %v8500_v58  ;;  %v3191_v45 = vpop.f32.mrf.mxu1 }
 0x5d8   : > { %v3281_v17 = vadd.f32 %v8097_v44, %v3191_v45  ;;  %v6035_v44 = vld [vmem:[%s9519_s3 + $0x200] sm:$0xff] }
 0x5d9   : > { %4277 = vmatpush.bf16.msra.mxu2 %v6035_v44 }
 0x5da   : > { %v3370_v56 = vadd.f32 %v8199_v63, %v3281_v17  ;;  %3230 = vmatmul.bf16.gmra.mxu1 %v7993_v50  ;;  %4165 = vmatmul.bf16.gmra.mxu0 %v7993_v50  ;;  %v6050_v17 = vld [vmem:[%s9521_s5 + $0x38] sm:$0xff] }
 0x5db   : > { %4587 = vmatpush.bf16.msra.mxu3 %v6050_v17  ;;  %v6048_v17 = vld [vmem:[%s9521_s5 + $0x28] sm:$0xff] }
 0x5dc   : > { %v3434_v23 = vrot.slane %v3370_v56, 1  ;;  %v8543_v44 = vpop.f32.mrf.mxu0 }
 0x5dd   : > { %v8518_v28 = vpop.f32.mrf.mxu2  ;;  %v8520_v58 = vpop.f32.mrf.mxu3  ;;  %9739 = vst [vmem:[#allocation61_spill] sm:$0xff] %v8543_v44 }
 0x5de   : > { %9735 = vst [vmem:[#allocation57_spill] sm:$0xff] %v8518_v28  ;;  %v8527_v12 = vsel %vm1120_vm0, %v3433_v37, %v3434_v23 }
 0x5df   : > { %9736 = vst [vmem:[#allocation58_spill] sm:$0xff] %v8520_v58  ;;  %v3193_v63 = vpop.f32.mrf.mxu1 }
 0x5e0   : > { %v3283_v45 = vadd.f32 %v8122_v26, %v3193_v63  ;;  %v6049_v26 = vld [vmem:[%s9521_s5 + $0x30] sm:$0xff] }
 0x5e1   : > { %4588 = vmatpush.bf16.msra.mxu3 %v6049_v26 }
 0x5e2   : > { %v3372_v62 = vadd.f32 %v8222_v22, %v3283_v45  ;;  %3799 = vmatmul.bf16.gmra.mxu2 %v8134_v5  ;;  %3878 = vmatmul.bf16.gmra.mxu3 %v8134_v5 }
 0x5e4   : > { %v3435_v56 = vrot.slane %v3372_v62, 1 }
 0x5e5   : > { %v8536_v28 = vpop.f32.mrf.mxu2  ;;  %v8538_v37 = vpop.f32.mrf.mxu3  ;;  %4589 = vmatpush.bf16.msra.mxu3 %v6048_v17 }
 0x5e6   : > { %9737 = vst [vmem:[#allocation59_spill] sm:$0xff] %v8536_v28  ;;  %v8547_v63 = vsel %vm1120_vm0, %v3434_v23, %v3435_v56  ;;  %v6034_v23 = vld [vmem:[%s9519_s3 + $0x1f8] sm:$0xff] }
 0x5e7   : > { %9738 = vst [vmem:[#allocation60_spill] sm:$0xff] %v8538_v37  ;;  %v3196_v22 = vpop.f32.mrf.mxu1  ;;  %4181 = vmatpush.bf16.msra.mxu1 %v6034_v23 }
 0x5e8   : > { %v3286_v45 = vadd.f32 %v8151_v41, %v3196_v22  ;;  %v6047_v41 = vld [vmem:[%s9521_s5 + $0x20] sm:$0xff] }
 0x5e9   : > { %4590 = vmatpush.bf16.msra.mxu3 %v6047_v41  ;;  %v6045_v41 = vld [vmem:[%s9521_s5 + $0x10] sm:$0xff] }
 0x5ea   : > { %v3375_v62 = vadd.f32 %v8243_v10, %v3286_v45  ;;  %3235 = vmatmul.bf16.gmra.mxu1 %v8025_v47  ;;  %4170 = vmatmul.bf16.gmra.mxu0 %v8025_v47  ;;  %v8570_v45 = vpop.f32.mrf.mxu0 }
 0x5eb   : > { %9742 = vst [vmem:[#allocation64_spill] sm:$0xff] %v8570_v45  ;;  %v9773_v45 = vld [vmem:[#allocation15_spill] sm:$0xff] }
 0x5ec   : > { %v3436_v28 = vrot.slane %v3375_v62, 1  ;;  %v6046_v62 = vld [vmem:[%s9521_s5 + $0x18] sm:$0xff] }
 0x5ed   : > { %v8559_v37 = vpop.f32.mrf.mxu3  ;;  %v8564_v26 = vpop.f32.mrf.mxu2  ;;  %4591 = vmatpush.bf16.msra.mxu3 %v6046_v62 }
 0x5ee   : > { %9740 = vst [vmem:[#allocation62_spill] sm:$0xff] %v8559_v37  ;;  %v8568_v10 = vsel %vm1120_vm0, %v3435_v56, %v3436_v28 }
 0x5ef   : > { %9741 = vst [vmem:[#allocation63_spill] sm:$0xff] %v8564_v26  ;;  %v3198_v22 = vpop.f32.mrf.mxu1 }
 0x5f0   : > { %v3288_v17 = vadd.f32 %v8175_v3, %v3198_v22 }
 0x5f1   : > { %4592 = vmatpush.bf16.msra.mxu3 %v6045_v41  ;;  %v6043_v41 = vld [vmem:[%s9521_s5] sm:$0xff] }
 0x5f2   : > { %v3377_v37 = vadd.f32 %v8256_v59, %v3288_v17  ;;  %3804 = vmatmul.bf16.gmra.mxu2 %v8183_v2  ;;  %3883 = vmatmul.bf16.gmra.mxu3 %v8183_v2  ;;  %v9745_v59 = vld [vmem:[#allocation7_spill] sm:$0xff]  ;;  %v8594_v62 = vpop.f32.mrf.mxu0 }
 0x5f3   : > { %9746 = vst [vmem:[#allocation7_spill] sm:$0xff] %v8594_v62 }
 0x5f4   : > { %v3437_v23 = vrot.slane %v3377_v37, 1  ;;  %v6044_v37 = vld [vmem:[%s9521_s5 + $0x8] sm:$0xff] }
 0x5f5   : > { %v8579_v56 = vpop.f32.mrf.mxu3  ;;  %v8588_v26 = vpop.f32.mrf.mxu2  ;;  %4593 = vmatpush.bf16.msra.mxu3 %v6044_v37 }
 0x5f6   : > { %9743 = vst [vmem:[#allocation65_spill] sm:$0xff] %v8579_v56  ;;  %v8586_v3 = vsel %vm1120_vm0, %v3436_v28, %v3437_v23 }
 0x5f7   : > { %v3201_v22 = vpop.f32.mrf.mxu1  ;;  %9744 = vst [vmem:[#allocation66_spill] sm:$0xff] %v8588_v26 }
 0x5f8   : > { %v3291_v17 = vadd.f32 %v9745_v59, %v3201_v22 }
 0x5f9   : > { %4594 = vmatpush.bf16.msra.mxu3 %v6043_v41 }
 0x5fa   : > { %v3380_v56 = vadd.f32 %v8262_v20, %v3291_v17  ;;  %3240 = vmatmul.bf16.gmra.mxu1 %v8080_v32  ;;  %4175 = vmatmul.bf16.gmra.mxu0 %v8080_v32 }
 0x5fc   : > { %v3438_v28 = vrot.slane %v3380_v56, 1 }
 0x5fd   : > { %v8599_v58 = vpop.f32.mrf.mxu3  ;;  %v8609_v17 = vpop.f32.mrf.mxu2 }
 0x5fe   : > { %9747 = vst [vmem:[#allocation67_spill] sm:$0xff] %v8599_v58  ;;  %v8606_v22 = vsel %vm1120_vm0, %v3437_v23, %v3438_v28 }
 0x5ff   : > { %v3203_v59 = vpop.f32.mrf.mxu1  ;;  %9748 = vst [vmem:[#allocation68_spill] sm:$0xff] %v8609_v17 }
 0x600   : > { %v3293_v20 = vadd.f32 %v8220_v27, %v3203_v59 }
 0x602   : > { %v3382_v26 = vadd.f32 %v8268_v49, %v3293_v20  ;;  %3888 = vmatmul.bf16.gmra.mxu3 %v8227_v51  ;;  %4278 = vmatmul.bf16.vlgmr.msra.gmra.mxu2 %v7666_v60 }
 0x604   : > { %v3439_v56 = vrot.slane %v3382_v26, 1  ;;  %v6033_v26 = vld [vmem:[%s9519_s3 + $0x1f0] sm:$0xff] }
 0x605   : > { %v8614_v37 = vpop.f32.mrf.mxu3  ;;  %v8623_v59 = vpop.f32.mrf.mxu2  ;;  %4182 = vmatpush.bf16.msra.mxu1 %v6033_v26 }
 0x606   : > { %9749 = vst [vmem:[#allocation69_spill] sm:$0xff] %v8614_v37  ;;  %v8618_v58 = vsel %vm1120_vm0, %v3438_v28, %v3439_v56 }
 0x607   : > { %v3206_v23 = vpop.f32.mrf.mxu1  ;;  %9750 = vst [vmem:[#allocation70_spill] sm:$0xff] %v8623_v59 }
 0x608   : > { %v3296_v41 = vadd.f32 %v8241_v4, %v3206_v23 }
 0x60a   : > { %v3385_v27 = vadd.f32 %v8274_v0, %v3296_v41  ;;  %3640 = vmatmul.bf16.vlgmr.msrb.gmra.mxu1 %v8245_v35 }
 0x60c   : > { %v3440_v49 = vrot.slane %v3385_v27, 1 }
 0x60d   : > { %v8628_v20 = vpop.f32.mrf.mxu3  ;;  %v8640_v41 = vpop.f32.mrf.mxu2 }
 0x60e   : > { %9751 = vst [vmem:[#allocation71_spill] sm:$0xff] %v8628_v20  ;;  %v8632_v28 = vsel %vm1120_vm0, %v3439_v56, %v3440_v49 }
 0x60f   : > { %v3208_v17 = vpop.f32.mrf.mxu1  ;;  %9753 = vst [vmem:[#allocation73_spill] sm:$0xff] %v8640_v41 }
 0x610   : > { %v3298_v4 = vadd.f32 %v8254_v9, %v3208_v17 }
 0x612   : > { %v3387_v0 = vadd.f32 %v8283_v18, %v3298_v4  ;;  %3893 = vmatmul.bf16.gmra.mxu3 %v8247_v6  ;;  %4283 = vmatmul.bf16.gmra.mxu2 %v7705_v52 }
 0x614   : > { %v3441_v35 = vrot.slane %v3387_v0, 1 }
 0x615   : > { %v8638_v23 = vpop.f32.mrf.mxu3  ;;  %v8655_v41 = vpop.f32.mrf.mxu2 }
 0x616   : > { %9752 = vst [vmem:[#allocation72_spill] sm:$0xff] %v8638_v23  ;;  %v8644_v27 = vsel %vm1120_vm0, %v3440_v49, %v3441_v35 }
 0x617   : > { %v3211_v56 = vpop.f32.mrf.mxu1  ;;  %9755 = vst [vmem:[#allocation75_spill] sm:$0xff] %v8655_v41 }
 0x618   : > { %v3301_v26 = vadd.f32 %v8260_v33, %v3211_v56  ;;  %v6299_v33 = vld [vmem:[%s6508_s17 + $0x20] sm:$0xff] }
 0x61a   : > { %v3390_v9 = vadd.f32 %v8289_v42, %v3301_v26  ;;  %3645 = vmatmul.bf16.gmra.mxu1 %v7565_v31  ;;  %v9757_v26 = vld [vmem:[#allocation17_spill] sm:$0xff] }
 0x61c   : > { %v3442_v18 = vrot.slane %v3390_v9, 1 }
 0x61d   : > { %v8649_v17 = vpop.f32.mrf.mxu3  ;;  %v8668_v41 = vpop.f32.mrf.mxu2 }
 0x61e   : > { %9754 = vst [vmem:[#allocation74_spill] sm:$0xff] %v8649_v17  ;;  %v8653_v4 = vsel %vm1120_vm0, %v3441_v35, %v3442_v18 }
 0x61f   : > { %v3213_v0 = vpop.f32.mrf.mxu1  ;;  %9758 = vst [vmem:[#allocation17_spill] sm:$0xff] %v8668_v41  ;;  %v9763_v41 = vld [vmem:[#allocation9_spill] sm:$0xff] }
 0x620   : > { %v3303_v49 = vadd.f32 %v8266_v11, %v3213_v0  ;;  %v9759_v11 = vld [vmem:[#allocation14_spill] sm:$0xff] }
 0x622   : > { %v3392_v59 = vadd.f32 %v8295_v21, %v3303_v49  ;;  %4288 = vmatmul.bf16.gmra.mxu2 %v7742_v48  ;;  %4595 = vmatmul.bf16.vlgmr.msra.gmra.mxu3 %v6299_v33  ;;  %v9760_v21 = vld [vmem:[#allocation42_spill] sm:$0xff] }
 0x624   : > { %v3443_v42 = vrot.slane %v3392_v59, 1  ;;  %v6032_v59 = vld [vmem:[%s9519_s3 + $0x1e8] sm:$0xff] }
 0x625   : > { %v8661_v31 = vpop.f32.mrf.mxu3  ;;  %4183 = vmatpush.bf16.msra.mxu1 %v6032_v59 }
 0x626   : > { %9756 = vst [vmem:[#allocation76_spill] sm:$0xff] %v8661_v31  ;;  %v8665_v56 = vsel %vm1120_vm0, %v3442_v18, %v3443_v42 }
 0x627   : > { %v3216_v35 = vpop.f32.mrf.mxu1 }
 0x628   : > { %v3306_v9 = vadd.f32 %v9757_v26, %v3216_v35  ;;  %v9762_v35 = vld [vmem:[#allocation8_spill] sm:$0xff] }
 0x62a   : > { %v3395_v0 = vadd.f32 %v9759_v11, %v3306_v9  ;;  %3650 = vmatmul.bf16.gmra.mxu1 %v9760_v21  ;;  %v9764_v9 = vld [vmem:[#allocation2_spill] sm:$0xff]  ;;  %v6300_v11 = vld [vmem:[%s6508_s17 + $0x28] sm:$0xff] }
 0x62c   : > { %v3444_v49 = vrot.slane %v3395_v0, 1  ;;  %v8685_v0 = vpop.f32.mrf.mxu2 }
 0x62d   : > { %v8675_v33 = vpop.f32.mrf.mxu3  ;;  %9765 = vst [vmem:[#allocation42_spill] sm:$0xff] %v8685_v0 }
 0x62e   : > { %9761 = vst [vmem:[#allocation14_spill] sm:$0xff] %v8675_v33  ;;  %v8679_v18 = vsel %vm1120_vm0, %v3443_v42, %v3444_v49  ;;  %v9767_v33 = vld [vmem:[#allocation13_spill] sm:$0xff] }
 0x62f   : > { %v3218_v31 = vpop.f32.mrf.mxu1 }
 0x630   : > { %v3308_v26 = vadd.f32 %v9762_v35, %v3218_v31  ;;  %v9768_v31 = vld [vmem:[#allocation16_spill] sm:$0xff] }
 0x632   : > { %v3397_v17 = vadd.f32 %v9763_v41, %v3308_v26  ;;  %4293 = vmatmul.bf16.gmra.mxu2 %v9764_v9  ;;  %4600 = vmatmul.bf16.gmra.mxu3 %v6300_v11  ;;  %v9769_v41 = vld [vmem:[#allocation43_spill] sm:$0xff] }
 0x634   : > { %v3445_v23 = vrot.slane %v3397_v17, 1  ;;  %v8698_v11 = vpop.f32.mrf.mxu2 }
 0x635   : > { %v8687_v20 = vpop.f32.mrf.mxu3  ;;  %9771 = vst [vmem:[#allocation2_spill] sm:$0xff] %v8698_v11  ;;  %v9777_v11 = vld [vmem:[#allocation36_spill] sm:$0xff] }
 0x636   : > { %9766 = vst [vmem:[#allocation8_spill] sm:$0xff] %v8687_v20  ;;  %v8691_v59 = vsel %vm1120_vm0, %v3444_v49, %v3445_v23  ;;  %v9772_v20 = vld [vmem:[#allocation10_spill] sm:$0xff] }
 0x637   : > { %v3221_v42 = vpop.f32.mrf.mxu1 }
 0x638   : > { %v3311_v37 = vadd.f32 %v9767_v33, %v3221_v42  ;;  %v6301_v33 = vld [vmem:[%s6508_s17 + $0x30] sm:$0xff] }
 0x63a   : > { %v3400_v35 = vadd.f32 %v9768_v31, %v3311_v37  ;;  %3655 = vmatmul.bf16.gmra.mxu1 %v9769_v41 }
 0x63c   : > { %v3446_v26 = vrot.slane %v3400_v35, 1 }
 0x63d   : > { %v8696_v62 = vpop.f32.mrf.mxu3 }
 0x63e   : > { %9770 = vst [vmem:[#allocation9_spill] sm:$0xff] %v8696_v62  ;;  %v8702_v17 = vsel %vm1120_vm0, %v3445_v23, %v3446_v26  ;;  %v8714_v23 = vpop.f32.mrf.mxu2 }
 0x63f   : > { %v3223_v0 = vpop.f32.mrf.mxu1  ;;  %9776 = vst [vmem:[#allocation16_spill] sm:$0xff] %v8714_v23  ;;  %v9780_v23 = vld [vmem:[#allocation38_spill] sm:$0xff] }
 0x640   : > { %v3313_v49 = vadd.f32 %v9772_v20, %v3223_v0  ;;  %v9778_v20 = vld [vmem:[#allocation23_spill] sm:$0xff] }
 0x642   : > { %v3402_v44 = vadd.f32 %v9773_v45, %v3313_v49  ;;  %4298 = vmatmul.bf16.gmra.mxu2 %v9774_v29  ;;  %4605 = vmatmul.bf16.gmra.mxu3 %v6301_v33 }
 0x644   : > { %v3447_v37 = vrot.slane %v3402_v44, 1  ;;  %v6031_v44 = vld [vmem:[%s9519_s3 + $0x1e0] sm:$0xff] }
 0x645   : > { %v8708_v42 = vpop.f32.mrf.mxu3  ;;  %4184 = vmatpush.bf16.msra.mxu1 %v6031_v44 }
 0x646   : > { %9775 = vst [vmem:[#allocation13_spill] sm:$0xff] %v8708_v42  ;;  %v8712_v31 = vsel %vm1120_vm0, %v3446_v26, %v3447_v37 }
 0x647   : > { %v3226_v35 = vpop.f32.mrf.mxu1 }
 0x648   : > { %v3316_v62 = vadd.f32 %v9777_v11, %v3226_v35  ;;  %v8729_v11 = vpop.f32.mrf.mxu2 }
 0x649   : > { %9781 = vst [vmem:[#allocation10_spill] sm:$0xff] %v8729_v11 }
 0x64a   : > { %v3405_v0 = vadd.f32 %v9778_v20, %v3316_v62  ;;  %3660 = vmatmul.bf16.gmra.mxu1 %v7666_v60  ;;  %v9782_v62 = vld [vmem:[#allocation25_spill] sm:$0xff] }
 0x64b   : > { %v6302_v20 = vld [vmem:[%s6508_s17 + $0x38] sm:$0xff] }
 0x64c   : > { %v3448_v45 = vrot.slane %v3405_v0, 1 }
 0x64d   : > { %v8722_v49 = vpop.f32.mrf.mxu3 }
 0x64e   : > { %9779 = vst [vmem:[#allocation43_spill] sm:$0xff] %v8722_v49  ;;  %v8726_v26 = vsel %vm1120_vm0, %v3447_v37, %v3448_v45  ;;  %v9784_v49 = vld [vmem:[#allocation39_spill] sm:$0xff] }
 0x64f   : > { %v3228_v33 = vpop.f32.mrf.mxu1 }
 0x650   : > { %v3318_v42 = vadd.f32 %v9780_v23, %v3228_v33  ;;  %v9785_v23 = vld [vmem:[#allocation27_spill] sm:$0xff] }
 0x652   : > { %v3407_v35 = vadd.f32 %v9782_v62, %v3318_v42  ;;  %4303 = vmatmul.bf16.gmra.mxu2 %v7850_v54  ;;  %4610 = vmatmul.bf16.gmra.mxu3 %v6302_v20  ;;  %v8743_v42 = vpop.f32.mrf.mxu2 }
 0x653   : > { %9786 = vst [vmem:[#allocation3_spill] sm:$0xff] %v8743_v42  ;;  %v9792_v42 = vld [vmem:[#allocation18_spill] sm:$0xff] }
 0x654   : > { %v3449_v0 = vrot.slane %v3407_v35, 1 }
 0x655   : > { %v8734_v8 = vpop.f32.mrf.mxu3 }
 0x656   : > { %9783 = vst [vmem:[#allocation15_spill] sm:$0xff] %v8734_v8  ;;  %v8738_v44 = vsel %vm1120_vm0, %v3448_v45, %v3449_v0  ;;  %v9788_v8 = vld [vmem:[#allocation12_spill] sm:$0xff] }
 0x657   : > { %v3231_v37 = vpop.f32.mrf.mxu1 }
 0x658   : > { %v3321_v16 = vadd.f32 %v9784_v49, %v3231_v37  ;;  %v6303_v49 = vld [vmem:[%s6508_s17 + $0x40] sm:$0xff] }
 0x65a   : > { %v3410_v33 = vadd.f32 %v9785_v23, %v3321_v16  ;;  %3665 = vmatmul.bf16.gmra.mxu1 %v7705_v52  ;;  %v8757_v23 = vpop.f32.mrf.mxu2 }
 0x65b   : > { %9791 = vst [vmem:[#allocation38_spill] sm:$0xff] %v8757_v23 }
 0x65c   : > { %v3450_v62 = vrot.slane %v3410_v33, 1 }
 0x65d   : > { %v8745_v11 = vpop.f32.mrf.mxu3 }
 0x65e   : > { %9787 = vst [vmem:[#allocation36_spill] sm:$0xff] %v8745_v11  ;;  %v8749_v35 = vsel %vm1120_vm0, %v3449_v0, %v3450_v62 }
 0x65f   : > { %v3233_v20 = vpop.f32.mrf.mxu1 }
 0x660   : > { %v3323_v45 = vadd.f32 %v9788_v8, %v3233_v20  ;;  %v9793_v8 = vld [vmem:[#allocation30_spill] sm:$0xff] }
 0x662   : > { %v3412_v25 = vadd.f32 %v9789_v1, %v3323_v45  ;;  %4308 = vmatmul.bf16.gmra.mxu2 %v7887_v7  ;;  %4615 = vmatmul.bf16.gmra.mxu3 %v6303_v49  ;;  %v8775_v23 = vpop.f32.mrf.mxu2 }
 0x663   : > { %9795 = vst [vmem:[#allocation39_spill] sm:$0xff] %v8775_v23 }
 0x664   : > { %v3451_v16 = vrot.slane %v3412_v25, 1  ;;  %v6030_v25 = vld [vmem:[%s9519_s3 + $0x1d8] sm:$0xff] }
 0x665   : > { %v8755_v37 = vpop.f32.mrf.mxu3  ;;  %4185 = vmatpush.bf16.msra.mxu1 %v6030_v25 }
 0x666   : > { %9790 = vst [vmem:[#allocation23_spill] sm:$0xff] %v8755_v37  ;;  %v8761_v33 = vsel %vm1120_vm0, %v3450_v62, %v3451_v16 }
 0x667   : > { %v3236_v0 = vpop.f32.mrf.mxu1 }
 0x668   : > { %v3326_v11 = vadd.f32 %v9792_v42, %v3236_v0  ;;  %v9796_v42 = vld [vmem:[#allocation24_spill] sm:$0xff] }
 0x66a   : > { %v3415_v20 = vadd.f32 %v9793_v8, %v3326_v11  ;;  %3670 = vmatmul.bf16.gmra.mxu1 %v7742_v48  ;;  %v9797_v11 = vld [vmem:[#allocation20_spill] sm:$0xff]  ;;  %v8788_v23 = vpop.f32.mrf.mxu2 }
 0x66b   : > { %9801 = vst [vmem:[#allocation29_spill] sm:$0xff] %v8788_v23 }
 0x66c   : > { %v3452_v1 = vrot.slane %v3415_v20, 1  ;;  %v6304_v20 = vld [vmem:[%s6508_s17 + $0x48] sm:$0xff] }
 0x66d   : > { %v8769_v45 = vpop.f32.mrf.mxu3 }
 0x66e   : > { %9794 = vst [vmem:[#allocation25_spill] sm:$0xff] %v8769_v45  ;;  %v8773_v49 = vsel %vm1120_vm0, %v3451_v16, %v3452_v1  ;;  %v9800_v45 = vld [vmem:[#allocation26_spill] sm:$0xff] }
 0x66f   : > { %v3238_v62 = vpop.f32.mrf.mxu1 }
 0x670   : > { %v3328_v0 = vadd.f32 %v9796_v42, %v3238_v62 }
 0x672   : > { %v3417_v8 = vadd.f32 %v9797_v11, %v3328_v0  ;;  %4313 = vmatmul.bf16.gmra.mxu2 %v7919_v34  ;;  %4620 = vmatmul.bf16.gmra.mxu3 %v6304_v20  ;;  %v9802_v0 = vld [vmem:[#allocation32_spill] sm:$0xff] }
 0x673   : > { %v9803_v11 = vld [vmem:[#allocation4_spill] sm:$0xff] }
 0x674   : > { %v3453_v37 = vrot.slane %v3417_v8, 1  ;;  %v3256_v8 = vadd.f32 %v9803_v11, %v9802_v0 }
 0x675   : > { %v8781_v53 = vpop.f32.mrf.mxu3 }
 0x676   : > { %9798 = vst [vmem:[#allocation27_spill] sm:$0xff] %v8781_v53  ;;  %v8785_v25 = vsel %vm1120_vm0, %v3452_v1, %v3453_v37 }
 0x677   : > { %9799 = vst [vmem:[#allocation12_spill] sm:$0xff] %v8785_v25  ;;  %v3241_v16 = vpop.f32.mrf.mxu1 }
 0x678   : > { %v3331_v36 = vadd.f32 %v9800_v45, %v3241_v16  ;;  %v9806_v45 = vld [vmem:[#allocation5_spill] sm:$0xff] }
 0x679   : > { %v8802_v16 = vadd.f32 %v9806_v45, %v3256_v8  ;;  %v6029_v45 = vld [vmem:[%s9519_s3 + $0x1d0] sm:$0xff] }
 0x67a   : > { %v3420_v62 = vadd.f32 %v8371_v15, %v3331_v36  ;;  %3675 = vmatmul.bf16.gmra.mxu1 %v9764_v9  ;;  %v6305_v36 = vld [vmem:[%s6508_s17 + $0x50] sm:$0xff] }
 0x67b   : > { %4186 = vmatpush.bf16.msra.mxu1 %v6029_v45 }
 0x67c   : > { %v3454_v42 = vrot.slane %v3420_v62, 1  ;;  %v8809_v62 = vpop.f32.mrf.mxu2 }
 0x67d   : > { %v8794_v20 = vpop.f32.mrf.mxu3  ;;  %9807 = vst [vmem:[#allocation30_spill] sm:$0xff] %v8809_v62 }
 0x67e   : > { %9804 = vst [vmem:[#allocation18_spill] sm:$0xff] %v8794_v20  ;;  %v8798_v53 = vsel %vm1120_vm0, %v3453_v37, %v3454_v42  ;;  %v9546_v37 = vrot.slane %v8802_v16, 1 }
 0x67f   : > { %v3243_v1 = vpop.f32.mrf.mxu1 }
 0x680   : > { %v3333_v25 = vadd.f32 %v9805_v43, %v3243_v1 }
 0x682   : > { %v8805_v15 = vadd.f32 %v8383_v40, %v3333_v25  ;;  %4318 = vmatmul.bf16.gmra.mxu2 %v7956_v14  ;;  %4625 = vmatmul.bf16.gmra.mxu3 %v6305_v36  ;;  %v9809_v40 = vrot.slane %v8376_v30, 1 }
 0x684   : > { %v9545_v0 = vrot.slane %v8805_v15, 1  ;;  %v3486_v25 = vsel %vm1120_vm0, %v9546_v37, %v9809_v40  ;;  %v6306_v40 = vld [vmem:[%s6508_s17 + $0x58] sm:$0xff] }
 0x685   : > { %v8813_v11 = vpop.f32.mrf.mxu3 }
 0x686   : > { %9808 = vst [vmem:[#allocation24_spill] sm:$0xff] %v8813_v11  ;;  %v8819_v43 = vsel %vm1120_vm0, %v3454_v42, %v9545_v0  ;;  %v8835_v42 = vpop.f32.mrf.mxu2 }
 0x687   : > { %v3641_v8 = vpop.f32.mrf.mxu1  ;;  %9811 = vst [vmem:[#allocation26_spill] sm:$0xff] %v8835_v42 }
 0x688   : > { %v8827_v1 = vadd.f32 %v3641_v8, %v3486_v25 }
 0x68a   : > { %3680 = vmatmul.bf16.gmra.mxu1 %v9774_v29 }
 0x68d   : > { %v8833_v36 = vpop.f32.mrf.mxu3 }
 0x68e   : > { %9810 = vst [vmem:[#allocation20_spill] sm:$0xff] %v8833_v36  ;;  %v8844_v37 = vpop.f32.mrf.mxu2 }
 0x68f   : > { %v3643_v30 = vpop.f32.mrf.mxu1  ;;  %9813 = vst [vmem:[#allocation4_spill] sm:$0xff] %v8844_v37 }
 0x690   : > { %v8838_v0 = vadd.f32 %v3643_v30, %v8391_v19 }
 0x692   : > { %4323 = vmatmul.bf16.gmra.mxu2 %v7993_v50  ;;  %4630 = vmatmul.bf16.gmra.mxu3 %v6306_v40  ;;  %v6307_v40 = vld [vmem:[%s6508_s17 + $0x60] sm:$0xff] }
 0x695   : > { %v8842_v25 = vpop.f32.mrf.mxu3 }
 0x696   : > { %9812 = vst [vmem:[#allocation32_spill] sm:$0xff] %v8842_v25  ;;  %v8855_v30 = vpop.f32.mrf.mxu2 }
 0x697   : > { %v3646_v8 = vpop.f32.mrf.mxu1  ;;  %9816 = vst [vmem:[#allocation77_spill] sm:$0xff] %v8855_v30  ;;  %v6308_v30 = vld [vmem:[%s6508_s17 + $0x68] sm:$0xff] }
 0x698   : > { %v8847_v11 = vadd.f32 %v3646_v8, %v8403_v24 }
 0x69a   : > { %3685 = vmatmul.bf16.gmra.mxu1 %v7850_v54 }
 0x69d   : > { %v8850_v45 = vpop.f32.mrf.mxu3 }
 0x69e   : > { %9814 = vst [vmem:[#allocation28_spill] sm:$0xff] %v8850_v45  ;;  %v8865_v8 = vpop.f32.mrf.mxu2 }
 0x69f   : > { %v3648_v36 = vpop.f32.mrf.mxu1 }
 0x6a0   : > { %v8853_v19 = vadd.f32 %v3648_v36, %v8418_v55  ;;  %v6028_v55 = vld [vmem:[%s9519_s3 + $0x1c8] sm:$0xff] }
 0x6a1   : > { %4187 = vmatpush.bf16.msra.mxu1 %v6028_v55 }
 0x6a2   : > { %9815 = vst [vmem:[#allocation5_spill] sm:$0xff] %v8853_v19  ;;  %4328 = vmatmul.bf16.gmra.mxu2 %v8025_v47  ;;  %4635 = vmatmul.bf16.gmra.mxu3 %v6307_v40 }
 0x6a5   : > { %v8859_v25 = vpop.f32.mrf.mxu3 }
 0x6a6   : > { %9817 = vst [vmem:[#allocation78_spill] sm:$0xff] %v8859_v25  ;;  %v8878_v42 = vpop.f32.mrf.mxu2 }
 0x6a7   : > { %v3651_v37 = vpop.f32.mrf.mxu1 }
 0x6a8   : > { %v8862_v24 = vadd.f32 %v3651_v37, %v8432_v61 }
 0x6aa   : > { %9818 = vst [vmem:[#allocation79_spill] sm:$0xff] %v8862_v24  ;;  %3690 = vmatmul.bf16.gmra.mxu1 %v7887_v7 }
 0x6ad   : > { %v8870_v36 = vpop.f32.mrf.mxu3 }
 0x6ae   : > { %v9547_v61 = vrot.slane %v8870_v36, 1 }
 0x6af   : > { %v3653_v45 = vpop.f32.mrf.mxu1 }
 0x6b0   : > { %v8873_v40 = vadd.f32 %v3653_v45, %v8446_v38 }
 0x6b2   : > { %9819 = vst [vmem:[#allocation80_spill] sm:$0xff] %v8873_v40  ;;  %4333 = vmatmul.bf16.gmra.mxu2 %v8080_v32  ;;  %4640 = vmatmul.bf16.gmra.mxu3 %v6308_v30  ;;  %v8890_v40 = vpop.f32.mrf.mxu2 }
 0x6b5   : > { %v4601_v37 = vpop.f32.mrf.mxu3 }
 0x6b6   : > { %v4678_v62 = vrot.slane %v4601_v37, 1 }
 0x6b7   : > { %v3656_v20 = vpop.f32.mrf.mxu1 }
 0x6b8   : > { %v8884_v55 = vsel %vm1120_vm0, %v9547_v61, %v4678_v62  ;;  %v8887_v38 = vadd.f32 %v3656_v20, %v8464_v13  ;;  %v6309_v61 = vld [vmem:[%s6508_s17 + $0x70] sm:$0xff] }
 0x6ba   : > { %9820 = vst [vmem:[#allocation81_spill] sm:$0xff] %v8887_v38  ;;  %3695 = vmatmul.bf16.gmra.mxu1 %v7919_v34 }
 0x6bd   : > { %v4603_v45 = vpop.f32.mrf.mxu3 }
 0x6be   : > { %v4679_v30 = vrot.slane %v4603_v45, 1 }
 0x6bf   : > { %v3658_v23 = vpop.f32.mrf.mxu1 }
 0x6c0   : > { %v8894_v37 = vsel %vm1120_vm0, %v4678_v62, %v4679_v30  ;;  %v8897_v24 = vadd.f32 %v3658_v23, %v8487_v39  ;;  %v8908_v62 = vpop.f32.mrf.mxu2  ;;  %v6027_v39 = vld [vmem:[%s9519_s3 + $0x1c0] sm:$0xff] }
 0x6c1   : > { %4188 = vmatpush.bf16.msra.mxu1 %v6027_v39 }
 0x6c2   : > { %9821 = vst [vmem:[#allocation82_spill] sm:$0xff] %v8897_v24  ;;  %4338 = vmatmul.bf16.gmra.mxu2 %v8134_v5  ;;  %4645 = vmatmul.bf16.gmra.mxu3 %v6309_v61 }
 0x6c5   : > { %v4606_v13 = vpop.f32.mrf.mxu3 }
 0x6c6   : > { %v4680_v20 = vrot.slane %v4606_v13, 1 }
 0x6c7   : > { %v3661_v38 = vpop.f32.mrf.mxu1 }
 0x6c8   : > { %v8903_v45 = vsel %vm1120_vm0, %v4679_v30, %v4680_v20  ;;  %v8906_v19 = vadd.f32 %v3661_v38, %v8507_v46  ;;  %v6310_v46 = vld [vmem:[%s6508_s17 + $0x78] sm:$0xff]  ;;  %v8923_v38 = vpop.f32.mrf.mxu2 }
 0x6c9   : > { %9822 = vst [vmem:[#allocation83_spill] sm:$0xff] %v8903_v45 }
 0x6ca   : > { %9823 = vst [vmem:[#allocation84_spill] sm:$0xff] %v8906_v19  ;;  %3700 = vmatmul.bf16.gmra.mxu1 %v7956_v14 }
 0x6cd   : > { %v4608_v23 = vpop.f32.mrf.mxu3 }
 0x6ce   : > { %v4681_v61 = vrot.slane %v4608_v23, 1 }
 0x6cf   : > { %v3663_v13 = vpop.f32.mrf.mxu1 }
 0x6d0   : > { %v8916_v5 = vsel %vm1120_vm0, %v4680_v20, %v4681_v61  ;;  %v8919_v30 = vadd.f32 %v3663_v13, %v8527_v12  ;;  %v8935_v23 = vpop.f32.mrf.mxu2 }
 0x6d2   : > { %9824 = vst [vmem:[#allocation85_spill] sm:$0xff] %v8919_v30  ;;  %4343 = vmatmul.bf16.gmra.mxu2 %v8183_v2  ;;  %4650 = vmatmul.bf16.gmra.mxu3 %v6310_v46 }
 0x6d5   : > { %v4611_v19 = vpop.f32.mrf.mxu3 }
 0x6d6   : > { %v4682_v24 = vrot.slane %v4611_v19, 1 }
 0x6d7   : > { %v3666_v45 = vpop.f32.mrf.mxu1 }
 0x6d8   : > { %v8927_v39 = vsel %vm1120_vm0, %v4681_v61, %v4682_v24  ;;  %v8930_v20 = vadd.f32 %v3666_v45, %v8547_v63  ;;  %v6311_v63 = vld [vmem:[%s6508_s17 + $0x80] sm:$0xff]  ;;  %v8949_v2 = vpop.f32.mrf.mxu2 }
 0x6da   : > { %9825 = vst [vmem:[#allocation86_spill] sm:$0xff] %v8930_v20  ;;  %3705 = vmatmul.bf16.gmra.mxu1 %v7993_v50 }
 0x6dd   : > { %v8933_v12 = vpop.f32.mrf.mxu3 }
 0x6de   : > { %v9550_v13 = vrot.slane %v8933_v12, 1 }
 0x6df   : > { %v3668_v46 = vpop.f32.mrf.mxu1 }
 0x6e0   : > { %v8942_v19 = vsel %vm1120_vm0, %v4682_v24, %v9550_v13  ;;  %v8945_v61 = vadd.f32 %v3668_v46, %v8568_v10  ;;  %v8958_v13 = vpop.f32.mrf.mxu2 }
 0x6e2   : > { %4348 = vmatmul.bf16.gmra.mxu2 %v8227_v51  ;;  %4655 = vmatmul.bf16.gmra.mxu3 %v6311_v63  ;;  %v6312_v51 = vld [vmem:[%s6508_s17 + $0x88] sm:$0xff] }
 0x6e7   : > { %v3671_v45 = vpop.f32.mrf.mxu1 }
 0x6e8   : > { %v8952_v20 = vadd.f32 %v3671_v45, %v8586_v3  ;;  %v6313_v45 = vld [vmem:[%s6508_s17 + $0x90] sm:$0xff] }
 0x6ea   : > { %3710 = vmatmul.bf16.gmra.mxu1 %v8025_v47 }
 0x6ef   : > { %v3673_v30 = vpop.f32.mrf.mxu1 }
 0x6f0   : > { %v8956_v24 = vadd.f32 %v3673_v30, %v8606_v22 }
 0x6f2   : > { %4353 = vmatmul.bf16.gmra.mxu2 %v8247_v6  ;;  %4660 = vmatmul.bf16.gmra.mxu3 %v6312_v51 }
 0x6f7   : > { %v3676_v10 = vpop.f32.mrf.mxu1 }
 0x6f8   : > { %v8963_v46 = vadd.f32 %v3676_v10, %v8618_v58  ;;  %v6314_v58 = vld [vmem:[%s6508_s17 + $0x98] sm:$0xff]  ;;  %s4971_s17 = sshll.u32 %s6339_s24, 3 }
 0x6f9   : > { %p310_p9 = scmp.lt.s32.totalorder %s4971_s17, 15 }
 0x6fa   : > { %9826 = vst [vmem:[#allocation87_spill] sm:$0xff] %v8963_v46  ;;  %3715 = vmatmul.bf16.gmra.mxu1 %v8080_v32 }
 0x6fb   : > { %s9934_s17 = smov (!%p310_p9, %s4971_s17), 15 }
 0x6fc   : > { %s4972_s10 = sshll.u32 %s9934_s17, 2 }
 0x6fd   : > { %s314_s12 = sadd.s32 %s4973_s11, %s4972_s10 }
 0x6fe   : > { %s4974_s25 = sshll.u32 %s314_s12, 2 }
 0x6ff   : > { %v3678_v3 = vpop.f32.mrf.mxu1  ;;  %s9100_s15 = scalar_lea.vmem %s9523_s7, %s4974_s25 }
 0x700   : > { %v8967_v63 = vadd.f32 %v3678_v3, %v8632_v28 }
 0x702   : > { %4665 = vmatmul.bf16.gmra.mxu3 %v6313_v45 }
 0x707   : > { %v3681_v22 = vpop.f32.mrf.mxu1 }
 0x708   : > { %v8971_v30 = vadd.f32 %v3681_v22, %v8644_v27 }
 0x70a   : > { %4189 = vmatmul.bf16.vlgmr.msra.gmra.mxu1 %v9760_v21 }
 0x70f   : > { %v3683_v6 = vpop.f32.mrf.mxu1 }
 0x710   : > { %v8975_v51 = vadd.f32 %v3683_v6, %v8653_v4 }
 0x712   : > { %4670 = vmatmul.bf16.gmra.mxu3 %v6314_v58 }
 0x717   : > { %v3686_v10 = vpop.f32.mrf.mxu1 }
 0x718   : > { %v8979_v46 = vadd.f32 %v3686_v10, %v8665_v56 }
 0x71a   : > { %4194 = vmatmul.bf16.gmra.mxu1 %v9769_v41 }
 0x71f   : > { %v3688_v28 = vpop.f32.mrf.mxu1 }
 0x720   : > { %v8983_v3 = vadd.f32 %v3688_v28, %v8679_v18  ;;  %v9827_v28 = vld [vmem:[#allocation12_spill] sm:$0xff] }
 0x727   : > { %v3691_v27 = vpop.f32.mrf.mxu1 }
 0x728   : > { %v8986_v45 = vadd.f32 %v3691_v27, %v8691_v59 }
 0x72a   : > { %4199 = vmatmul.bf16.gmra.mxu1 %v7666_v60 }
 0x72f   : > { %v3693_v4 = vpop.f32.mrf.mxu1 }
 0x730   : > { %v8990_v21 = vadd.f32 %v3693_v4, %v8702_v17 }
 0x737   : > { %v3696_v22 = vpop.f32.mrf.mxu1 }
 0x738   : > { %v8993_v56 = vadd.f32 %v3696_v22, %v8712_v31 }
 0x73a   : > { %4204 = vmatmul.bf16.gmra.mxu1 %v7705_v52 }
 0x73f   : > { %v3698_v41 = vpop.f32.mrf.mxu1 }
 0x740   : > { %v8997_v18 = vadd.f32 %v3698_v41, %v8726_v26 }
 0x747   : > { %v3701_v6 = vpop.f32.mrf.mxu1 }
 0x748   : > { %v9000_v59 = vadd.f32 %v3701_v6, %v8738_v44 }
 0x74a   : > { %4209 = vmatmul.bf16.gmra.mxu1 %v7742_v48 }
 0x74f   : > { %v3703_v60 = vpop.f32.mrf.mxu1 }
 0x750   : > { %v9004_v17 = vadd.f32 %v3703_v60, %v8749_v35 }
 0x757   : > { %v3706_v58 = vpop.f32.mrf.mxu1 }
 0x758   : > { %v9007_v31 = vadd.f32 %v3706_v58, %v8761_v33 }
 0x75a   : > { %4214 = vmatmul.bf16.gmra.mxu1 %v9764_v9  ;;  %v9828_v9 = vrot.slane %v8802_v16, 1 }
 0x75f   : > { %v3708_v52 = vpop.f32.mrf.mxu1 }
 0x760   : > { %v9011_v26 = vadd.f32 %v3708_v52, %v8773_v49  ;;  %v9829_v49 = vrot.slane %v8805_v15, 1  ;;  %v9832_v15 = vld [vmem:[#allocation31_spill] sm:$0xff] }
 0x761   : > { %v3731_v58 = vadd.f32 %v9832_v15, %v8827_v1  ;;  %v9073_v15 = vpop.f32.mrf.mxu2 }
 0x762   : > { %v3487_v4 = vsel %vm1120_vm0, %v9829_v49, %v9828_v9 }
 0x767   : > { %v3711_v10 = vpop.f32.mrf.mxu1 }
 0x768   : > { %v9014_v44 = vadd.f32 %v3711_v10, %v9827_v28  ;;  %v9551_v10 = vrot.slane %v8859_v25, 1  ;;  %v9852_v25 = vld [vmem:[#allocation35_spill] sm:$0xff] }
 0x76a   : > { %4219 = vmatmul.bf16.gmra.mxu1 %v9774_v29 }
 0x76f   : > { %v3713_v48 = vpop.f32.mrf.mxu1 }
 0x770   : > { %v9018_v35 = vadd.f32 %v3713_v48, %v8798_v53  ;;  %v9830_v53 = vld [vmem:[#allocation41_spill] sm:$0xff]  ;;  %v9833_v48 = vld [vmem:[#allocation34_spill] sm:$0xff] }
 0x777   : > { %v3716_v27 = vpop.f32.mrf.mxu1 }
 0x778   : > { %v9021_v33 = vadd.f32 %v3716_v27, %v8819_v43  ;;  %v3820_v27 = vadd.f32 %v9833_v48, %v3731_v58 }
 0x77a   : > { %4224 = vmatmul.bf16.gmra.mxu1 %v7850_v54  ;;  %v9831_v54 = vld [vmem:[#allocation47_spill] sm:$0xff] }
 0x77f   : > { %v3718_v29 = vpop.f32.mrf.mxu1 }
 0x780   : > { %v9030_v22 = vadd.f32 %v3718_v29, %v3487_v4  ;;  %v9834_v4 = vrot.slane %v8870_v36, 1 }
 0x782   : > { %v4738_v29 = vsel %vm1120_vm0, %v9551_v10, %v9834_v4 }
 0x787   : > { %v4190_v41 = vpop.f32.mrf.mxu1 }
 0x788   : > { %v4191_v6 = vadd.f32 %v4190_v41, %v9830_v53  ;;  %v9835_v41 = vld [vmem:[#allocation50_spill] sm:$0xff] }
 0x78a   : > { %4229 = vmatmul.bf16.gmra.mxu1 %v7887_v7  ;;  %v9035_v60 = vadd.f32 %v8865_v8, %v4191_v6  ;;  %v9049_v8 = vld [vmem:[%s9520_s4] ss:$0 sm:$0xff]  ;;  %v9068_v6 = vpop.f32.mrf.mxu0 }
 0x78c   : > { %v9552_v28 = vrot.slane %v9035_v60, 2 }
 0x78f   : > { %v4192_v43 = vpop.f32.mrf.mxu1 }
 0x790   : > { %v4193_v16 = vadd.f32 %v4192_v43, %v9831_v54  ;;  %v9836_v43 = vld [vmem:[#allocation21_spill] sm:$0xff] }
 0x791   : > { %v3733_v54 = vadd.f32 %v9836_v43, %v8838_v0 }
 0x792   : > { %v4282_v52 = vadd.f32 %v8878_v42, %v4193_v16  ;;  %v9058_v42 = vld [vmem:[%s9522_s6] ss:$0 sm:$0xff] }
 0x793   : > { %v4744_v58 = vadd.f32 %v9058_v42, %v4738_v29 }
 0x794   : > { %v4360_v7 = vrot.slane %v4282_v52, 2  ;;  %v9078_v52 = vpop.f32.mrf.mxu3 }
 0x796   : > { %v4421_v1 = vsel %vm2192_vm10, %v9552_v28, %v4360_v7 }
 0x797   : > { %v4423_v9 = vadd.f32 %v4421_v1, %v3820_v27  ;;  %v4195_v49 = vpop.f32.mrf.mxu1  ;;  %v9837_v1 = vld [vmem:[#allocation37_spill] sm:$0xff] }
 0x798   : > { %v4196_v53 = vadd.f32 %v4195_v49, %v9835_v41  ;;  %v3822_v49 = vadd.f32 %v9837_v1, %v3733_v54  ;;  %v4745_v54 = vadd.f32 %v9058_v42, %v8884_v55  ;;  %v9840_v1 = vld [vmem:[#allocation44_spill] sm:$0xff] }
 0x799   : > { %v4459_v16 = vadd.f32 %v9049_v8, %v4423_v9 }
 0x79a   : > { %v4285_v36 = vadd.f32 %v8890_v40, %v4196_v53  ;;  %4234 = vmatmul.bf16.gmra.mxu1 %v7919_v34  ;;  %v9838_v40 = vld [vmem:[#allocation53_spill] sm:$0xff]  ;;  %v9839_v34 = vld [vmem:[#allocation19_spill] sm:$0xff] }
 0x79b   : > { %v4491_v48 = vmax.f32 %v4459_v16, 0.0  ;;  %v3736_v29 = vadd.f32 %v9839_v34, %v8847_v11  ;;  %v9842_v34 = vld [vmem:[#allocation5_spill] sm:$0xff] }
 0x79c   : > { %v4361_v27 = vrot.slane %v4285_v36, 2  ;;  %v9088_v36 = vpop.f32.mrf.mxu0 }
 0x79d   : > { %v4776_v4 = vadd.f32 %v4744_v58, %v4491_v48 }
 0x79e   : > { %v4420_v0 = vsel %vm2192_vm10, %v4360_v7, %v4361_v27  ;;  %v9092_v7 = vpop.f32.mrf.mxu2 }
 0x79f   : > { %v4424_v9 = vadd.f32 %v4420_v0, %v3822_v49  ;;  %v4197_v41 = vpop.f32.mrf.mxu1  ;;  %v3825_v49 = vadd.f32 %v9840_v1, %v3736_v29  ;;  %v9095_v0 = vpop.f32.mrf.mxu3 }
 0x7a0   : > { %v4198_v53 = vadd.f32 %v4197_v41, %v9838_v40  ;;  %v9841_v40 = vld [vmem:[#allocation56_spill] sm:$0xff] }
 0x7a1   : > { %v4460_v43 = vadd.f32 %v9049_v8, %v4424_v9 }
 0x7a2   : > { %v4287_v16 = vadd.f32 %v8908_v62, %v4198_v53 }
 0x7a3   : > { %v4492_v58 = vmax.f32 %v4460_v43, 0.0  ;;  %v9843_v43 = vld [vmem:[#allocation33_spill] sm:$0xff] }
 0x7a4   : > { %v4362_v48 = vrot.slane %v4287_v16, 2  ;;  %v3738_v29 = vadd.f32 %v9843_v43, %v9842_v34  ;;  %v9846_v34 = vld [vmem:[#allocation79_spill] sm:$0xff] }
 0x7a5   : > { %v4777_v41 = vadd.f32 %v4745_v54, %v4492_v58  ;;  %v4746_v58 = vadd.f32 %v9058_v42, %v8894_v37  ;;  %v9847_v37 = vld [vmem:[#allocation22_spill] sm:$0xff] }
 0x7a6   : > { %v4419_v11 = vsel %vm2192_vm10, %v4361_v27, %v4362_v48  ;;  %v3741_v43 = vadd.f32 %v9847_v37, %v9846_v34  ;;  %v9850_v37 = vld [vmem:[#allocation64_spill] sm:$0xff] }
 0x7a7   : > { %v6054_v55 = vpack.c.bf16 %v4777_v41, %v4776_v4  ;;  %v4425_v62 = vadd.f32 %v4419_v11, %v3825_v49  ;;  %v4200_v9 = vpop.f32.mrf.mxu1  ;;  %v9113_v4 = vpop.f32.mrf.mxu0  ;;  %v9844_v49 = vld [vmem:[#allocation46_spill] sm:$0xff] }
 0x7a8   : > { %v4201_v53 = vadd.f32 %v4200_v9, %v9841_v40  ;;  %v3827_v41 = vadd.f32 %v9844_v49, %v3738_v29  ;;  %v9116_v9 = vpop.f32.mrf.mxu2 }
 0x7a9   : > { %6055 = vst [vmem:[%s9100_s15] sm:$0xff] %v6054_v55   ;;  %v4461_v16 = vadd.f32 %v9049_v8, %v4425_v62  ;;  %v9120_v62 = vpop.f32.mrf.mxu3 }
 0x7aa   : > { %v4290_v54 = vadd.f32 %v8923_v38, %v4201_v53  ;;  %4239 = vmatmul.bf16.gmra.mxu1 %v7956_v14  ;;  %v9845_v14 = vld [vmem:[#allocation61_spill] sm:$0xff] }
 0x7ab   : > { %v4493_v1 = vmax.f32 %v4461_v16, 0.0 }
 0x7ac   : > { %v4363_v27 = vrot.slane %v4290_v54, 2  ;;  %v9848_v54 = vld [vmem:[#allocation83_spill] sm:$0xff] }
 0x7ad   : > { %v4778_v11 = vadd.f32 %v4746_v58, %v4493_v1  ;;  %v4747_v58 = vadd.f32 %v9058_v42, %v9848_v54 }
 0x7ae   : > { %v4418_v55 = vsel %vm2192_vm10, %v4362_v48, %v4363_v27  ;;  %v9849_v48 = vld [vmem:[#allocation49_spill] sm:$0xff] }
 0x7af   : > { %v4426_v38 = vadd.f32 %v4418_v55, %v3827_v41  ;;  %v4202_v40 = vpop.f32.mrf.mxu1  ;;  %v3830_v10 = vadd.f32 %v9849_v48, %v3741_v43  ;;  %v9132_v55 = vpop.f32.mrf.mxu0 }
 0x7b0   : > { %v4203_v53 = vadd.f32 %v4202_v40, %v9845_v14 }
 0x7b1   : > { %v4462_v16 = vadd.f32 %v9049_v8, %v4426_v38  ;;  %v9134_v38 = vpop.f32.mrf.mxu2 }
 0x7b2   : > { %v4292_v29 = vadd.f32 %v8935_v23, %v4203_v53  ;;  %v9851_v53 = vld [vmem:[#allocation80_spill] sm:$0xff] }
 0x7b3   : > { %v4494_v1 = vmax.f32 %v4462_v16, 0.0  ;;  %v3743_v54 = vadd.f32 %v9852_v25, %v9851_v53  ;;  %v9139_v16 = vpop.f32.mrf.mxu3 }
 0x7b4   : > { %v4364_v49 = vrot.slane %v4292_v29, 2 }
 0x7b5   : > { %v4779_v28 = vadd.f32 %v4747_v58, %v4494_v1 }
 0x7b6   : > { %v4417_v41 = vsel %vm2192_vm10, %v4363_v27, %v4364_v49 }
 0x7b7   : > { %v6059_v40 = vpack.c.bf16 %v4779_v28, %v4778_v11  ;;  %v4427_v14 = vadd.f32 %v4417_v41, %v3830_v10  ;;  %v4205_v34 = vpop.f32.mrf.mxu1  ;;  %v4748_v10 = vadd.f32 %v9058_v42, %v8916_v5  ;;  %v9853_v11 = vld [vmem:[#allocation52_spill] sm:$0xff] }
 0x7b8   : > { %v4206_v23 = vadd.f32 %v4205_v34, %v9850_v37  ;;  %v3832_v58 = vadd.f32 %v9853_v11, %v3743_v54  ;;  %v9856_v37 = vld [vmem:[#allocation40_spill] sm:$0xff]  ;;  %v4749_v54 = vadd.f32 %v9058_v42, %v8927_v39 }
 0x7b9   : > { %6131 = vst [vmem:[%s9100_s15 + $0x8] sm:$0xff] %v6059_v40   ;;  %v4463_v43 = vadd.f32 %v9049_v8, %v4427_v14  ;;  %v9854_v40 = vld [vmem:[#allocation7_spill] sm:$0xff]  ;;  %v9151_v14 = vpop.f32.mrf.mxu0 }
 0x7ba   : > { %v4295_v29 = vadd.f32 %v8949_v2, %v4206_v23  ;;  %4244 = vmatmul.bf16.gmra.mxu1 %v7993_v50  ;;  %v9855_v2 = vld [vmem:[#allocation81_spill] sm:$0xff]  ;;  %v9156_v23 = vpop.f32.mrf.mxu2 }
 0x7bb   : > { %v4495_v28 = vmax.f32 %v4463_v43, 0.0  ;;  %v3746_v50 = vadd.f32 %v9856_v37, %v9855_v2  ;;  %v9858_v2 = vld [vmem:[#allocation82_spill] sm:$0xff] }
 0x7bc   : > { %v4365_v27 = vrot.slane %v4295_v29, 2 }
 0x7bd   : > { %v4780_v1 = vadd.f32 %v4748_v10, %v4495_v28  ;;  %v9857_v10 = vld [vmem:[#allocation55_spill] sm:$0xff] }
 0x7be   : > { %v4416_v25 = vsel %vm2192_vm10, %v4364_v49, %v4365_v27  ;;  %v9161_v49 = vpop.f32.mrf.mxu3  ;;  %v3835_v28 = vadd.f32 %v9857_v10, %v3746_v50 }
 0x7bf   : > { %v4428_v48 = vadd.f32 %v4416_v25, %v3832_v58  ;;  %v4207_v41 = vpop.f32.mrf.mxu1 }
 0x7c0   : > { %v4208_v34 = vadd.f32 %v4207_v41, %v9854_v40 }
 0x7c1   : > { %v4464_v5 = vadd.f32 %v9049_v8, %v4428_v48  ;;  %v9173_v50 = vpop.f32.mrf.mxu0 }
 0x7c2   : > { %v4297_v53 = vadd.f32 %v8958_v13, %v4208_v34  ;;  %v9859_v13 = vld [vmem:[#allocation45_spill] sm:$0xff] }
 0x7c3   : > { %v4496_v43 = vmax.f32 %v4464_v5, 0.0  ;;  %v3748_v34 = vadd.f32 %v9859_v13, %v9858_v2  ;;  %v4684_v5 = vrot.slane %v9078_v52, 1 }
 0x7c4   : > { %v4366_v29 = vrot.slane %v4297_v53, 2  ;;  %v9178_v53 = vpop.f32.mrf.mxu2 }
 0x7c5   : > { %v4781_v11 = vadd.f32 %v4749_v54, %v4496_v43  ;;  %v9860_v54 = vld [vmem:[#allocation58_spill] sm:$0xff] }
 0x7c6   : > { %v4415_v58 = vsel %vm2192_vm10, %v4365_v27, %v4366_v29  ;;  %v4750_v27 = vadd.f32 %v9058_v42, %v8942_v19  ;;  %v3837_v43 = vadd.f32 %v9860_v54, %v3748_v34  ;;  %v9181_v10 = vpop.f32.mrf.mxu3 }
 0x7c7   : > { %v6064_v25 = vpack.c.bf16 %v4781_v11, %v4780_v1  ;;  %v4429_v41 = vadd.f32 %v4415_v58, %v3835_v28  ;;  %v4210_v48 = vpop.f32.mrf.mxu1  ;;  %v9861_v58 = vrot.slane %v8933_v12, 1 }
 0x7c8   : > { %v4211_v40 = vadd.f32 %v4210_v48, %v9068_v6  ;;  %v9862_v48 = vld [vmem:[#allocation84_spill] sm:$0xff] }
 0x7c9   : > { %6132 = vst [vmem:[%s9100_s15 + $0x10] sm:$0xff] %v6064_v25   ;;  %v4465_v39 = vadd.f32 %v9049_v8, %v4429_v41  ;;  %v4731_v19 = vsel %vm1120_vm0, %v9861_v58, %v4684_v5 }
 0x7ca   : > { %v4300_v37 = vadd.f32 %v9073_v15, %v4211_v40  ;;  %4249 = vmatmul.bf16.gmra.mxu1 %v8025_v47  ;;  %v9863_v40 = vld [vmem:[#allocation48_spill] sm:$0xff]  ;;  %v4751_v13 = vadd.f32 %v9058_v42, %v4731_v19 }
 0x7cb   : > { %v4497_v1 = vmax.f32 %v4465_v39, 0.0  ;;  %v3751_v2 = vadd.f32 %v9863_v40, %v9862_v48  ;;  %v9195_v39 = vpop.f32.mrf.mxu0  ;;  %v9867_v48 = vld [vmem:[#allocation62_spill] sm:$0xff] }
 0x7cc   : > { %v4367_v6 = vrot.slane %v4300_v37, 2  ;;  %v9197_v37 = vpop.f32.mrf.mxu2 }
 0x7cd   : > { %v4782_v28 = vadd.f32 %v4750_v27, %v4497_v1  ;;  %v9864_v27 = vld [vmem:[#allocation60_spill] sm:$0xff] }
 0x7ce   : > { %v4414_v15 = vsel %vm2192_vm10, %v4366_v29, %v4367_v6  ;;  %v3840_v1 = vadd.f32 %v9864_v27, %v3751_v2  ;;  %v9202_v54 = vpop.f32.mrf.mxu3 }
 0x7cf   : > { %v4430_v47 = vadd.f32 %v4414_v15, %v3837_v43  ;;  %v4212_v11 = vpop.f32.mrf.mxu1 }
 0x7d0   : > { %v4213_v52 = vadd.f32 %v4212_v11, %v9088_v36  ;;  %v9866_v11 = vld [vmem:[#allocation51_spill] sm:$0xff] }
 0x7d1   : > { %v4466_v25 = vadd.f32 %v9049_v8, %v4430_v47  ;;  %v9865_v47 = vld [vmem:[#allocation85_spill] sm:$0xff] }
 0x7d2   : > { %v4302_v41 = vadd.f32 %v9092_v7, %v4213_v52  ;;  %v3753_v58 = vadd.f32 %v9866_v11, %v9865_v47 }
 0x7d3   : > { %v4498_v29 = vmax.f32 %v4466_v25, 0.0  ;;  %v4685_v25 = vrot.slane %v9095_v0, 1  ;;  %v9216_v2 = vpop.f32.mrf.mxu0 }
 0x7d4   : > { %v4368_v34 = vrot.slane %v4302_v41, 2  ;;  %v3842_v40 = vadd.f32 %v9867_v48, %v3753_v58  ;;  %v9222_v0 = vpop.f32.mrf.mxu2 }
 0x7d5   : > { %v4783_v12 = vadd.f32 %v4751_v13, %v4498_v29 }
 0x7d6   : > { %v4413_v36 = vsel %vm2192_vm10, %v4367_v6, %v4368_v34  ;;  %v4686_v6 = vrot.slane %v9120_v62, 1 }
 0x7d7   : > { %v6069_v7 = vpack.c.bf16 %v4783_v12, %v4782_v28  ;;  %v4215_v43 = vpop.f32.mrf.mxu1  ;;  %v4431_v19 = vadd.f32 %v4413_v36, %v3840_v1  ;;  %v9225_v12 = vpop.f32.mrf.mxu3  ;;  %v9868_v1 = vld [vmem:[#allocation86_spill] sm:$0xff] }
 0x7d8   : > { %v4216_v15 = vadd.f32 %v4215_v43, %v9113_v4 }
 0x7d9   : > { %6133 = vst [vmem:[%s9100_s15 + $0x18] sm:$0xff] %v6069_v7   ;;  %v4467_v28 = vadd.f32 %v9049_v8, %v4431_v19  ;;  %v9869_v7 = vld [vmem:[#allocation54_spill] sm:$0xff] }
 0x7da   : > { %v4305_v52 = vadd.f32 %v9116_v9, %v4216_v15  ;;  %4254 = vmatmul.bf16.gmra.mxu1 %v8080_v32  ;;  %v4730_v9 = vsel %vm1120_vm0, %v4684_v5, %v4685_v25  ;;  %v4729_v32 = vsel %vm1120_vm0, %v4685_v25, %v4686_v6  ;;  %v3756_v43 = vadd.f32 %v9869_v7, %v9868_v1 }
 0x7db   : > { %v4499_v36 = vmax.f32 %v4467_v28, 0.0  ;;  %v4752_v5 = vadd.f32 %v9058_v42, %v4730_v9  ;;  %v4753_v15 = vadd.f32 %v9058_v42, %v4729_v32  ;;  %v9237_v28 = vpop.f32.mrf.mxu0 }
 0x7dc   : > { %v4369_v41 = vrot.slane %v4305_v52, 2  ;;  %v9870_v52 = vld [vmem:[#allocation65_spill] sm:$0xff]  ;;  %v9242_v9 = vpop.f32.mrf.mxu2 }
 0x7dd   : > { %v4784_v58 = vadd.f32 %v4752_v5, %v4499_v36  ;;  %v3845_v25 = vadd.f32 %v9870_v52, %v3756_v43  ;;  %v4687_v36 = vrot.slane %v9139_v16, 1 }
 0x7de   : > { %v4412_v4 = vsel %vm2192_vm10, %v4368_v34, %v4369_v41 }
 0x7df   : > { %v4432_v13 = vadd.f32 %v4412_v4, %v3842_v40  ;;  %v4217_v29 = vpop.f32.mrf.mxu1  ;;  %v9871_v4 = vld [vmem:[#allocation57_spill] sm:$0xff] }
 0x7e0   : > { %v4218_v62 = vadd.f32 %v4217_v29, %v9132_v55 }
 0x7e1   : > { %v4468_v27 = vadd.f32 %v9049_v8, %v4432_v13  ;;  %v3758_v13 = vadd.f32 %v9871_v4, %v8945_v61 }
 0x7e2   : > { %v4307_v34 = vadd.f32 %v9134_v38, %v4218_v62  ;;  %v9872_v62 = vld [vmem:[#allocation6_spill] sm:$0xff] }
 0x7e3   : > { %v4500_v47 = vmax.f32 %v4468_v27, 0.0  ;;  %v4688_v27 = vrot.slane %v9161_v49, 1 }
 0x7e4   : > { %v4370_v11 = vrot.slane %v4307_v34, 2  ;;  %v9873_v34 = vld [vmem:[#allocation67_spill] sm:$0xff] }
 0x7e5   : > { %v4785_v19 = vadd.f32 %v4753_v15, %v4500_v47  ;;  %v3847_v1 = vadd.f32 %v9873_v34, %v3758_v13  ;;  %v4727_v15 = vsel %vm1120_vm0, %v4687_v36, %v4688_v27  ;;  %v9875_v13 = vld [vmem:[#allocation69_spill] sm:$0xff] }
 0x7e6   : > { %v4411_v55 = vsel %vm2192_vm10, %v4369_v41, %v4370_v11  ;;  %v9246_v41 = vpop.f32.mrf.mxu3 }
 0x7e7   : > { %v6074_v48 = vpack.c.bf16 %v4785_v19, %v4784_v58  ;;  %v4220_v40 = vpop.f32.mrf.mxu1  ;;  %v4433_v29 = vadd.f32 %v4411_v55, %v3845_v25  ;;  %v9261_v19 = vpop.f32.mrf.mxu0  ;;  %v9874_v55 = vld [vmem:[#allocation59_spill] sm:$0xff] }
 0x7e8   : > { %v4221_v38 = vadd.f32 %v4220_v40, %v9151_v14 }
 0x7e9   : > { %6134 = vst [vmem:[%s9100_s15 + $0x20] sm:$0xff] %v6074_v48   ;;  %v4469_v7 = vadd.f32 %v9049_v8, %v4433_v29  ;;  %v9267_v48 = vpop.f32.mrf.mxu2 }
 0x7ea   : > { %v4310_v32 = vadd.f32 %v9156_v23, %v4221_v38  ;;  %4259 = vmatmul.bf16.gmra.mxu1 %v9872_v62  ;;  %v4728_v23 = vsel %vm1120_vm0, %v4686_v6, %v4687_v36  ;;  %v4755_v6 = vadd.f32 %v9058_v42, %v4727_v15  ;;  %v9876_v36 = vld [vmem:[#allocation63_spill] sm:$0xff] }
 0x7eb   : > { %v4501_v47 = vmax.f32 %v4469_v7, 0.0  ;;  %v4754_v52 = vadd.f32 %v9058_v42, %v4728_v23  ;;  %v3763_v34 = vadd.f32 %v9876_v36, %v8956_v24  ;;  %v9878_v15 = vld [vmem:[#allocation71_spill] sm:$0xff] }
 0x7ec   : > { %v4371_v14 = vrot.slane %v4310_v32, 2 }
 0x7ed   : > { %v4786_v38 = vadd.f32 %v4754_v52, %v4501_v47 }
 0x7ee   : > { %v4410_v61 = vsel %vm2192_vm10, %v4370_v11, %v4371_v14  ;;  %v3761_v11 = vadd.f32 %v9874_v55, %v8952_v20 }
 0x7ef   : > { %v4434_v43 = vadd.f32 %v4410_v61, %v3847_v1  ;;  %v4222_v5 = vpop.f32.mrf.mxu1  ;;  %v9877_v61 = vld [vmem:[#allocation11_spill] sm:$0xff]  ;;  %v4146_v23 = vpop.f32.mrf.mxu0 }
 0x7f0   : > { %v4223_v16 = vadd.f32 %v4222_v5, %v9173_v50  ;;  %v9269_v50 = vpop.f32.mrf.mxu3  ;;  %v3850_v29 = vadd.f32 %v9875_v13, %v3761_v11  ;;  %v4690_v5 = vrot.slane %v9202_v54, 1 }
 0x7f1   : > { %v4470_v49 = vadd.f32 %v9049_v8, %v4434_v43  ;;  %v4689_v43 = vrot.slane %v9181_v10, 1 }
 0x7f2   : > { %v4312_v58 = vadd.f32 %v9178_v53, %v4223_v16  ;;  %v3852_v16 = vadd.f32 %v9878_v15, %v3763_v34 }
 0x7f3   : > { %v4502_v25 = vmax.f32 %v4470_v49, 0.0  ;;  %v4726_v55 = vsel %vm1120_vm0, %v4688_v27, %v4689_v43  ;;  %v4725_v10 = vsel %vm1120_vm0, %v4689_v43, %v4690_v5 }
 0x7f4   : > { %v4372_v40 = vrot.slane %v4312_v58, 2 }
 0x7f5   : > { %v4787_v4 = vadd.f32 %v4755_v6, %v4502_v25  ;;  %v9879_v25 = vld [vmem:[#allocation87_spill] sm:$0xff] }
 0x7f6   : > { %v4409_v53 = vsel %vm2192_vm10, %v4371_v14, %v4372_v40 }
 0x7f7   : > { %v6079_v32 = vpack.c.bf16 %v4787_v4, %v4786_v38  ;;  %v4225_v62 = vpop.f32.mrf.mxu1  ;;  %v4435_v1 = vadd.f32 %v4409_v53, %v3850_v29  ;;  %v9880_v38 = vld [vmem:[#allocation66_spill] sm:$0xff]  ;;  %v4756_v4 = vadd.f32 %v9058_v42, %v4726_v55  ;;  %v4757_v53 = vadd.f32 %v9058_v42, %v4725_v10 }
 0x7f8   : > { %v4226_v20 = vadd.f32 %v4225_v62, %v9195_v39  ;;  %v4324_v39 = vpop.f32.mrf.mxu2  ;;  %v9286_v49 = vpop.f32.mrf.mxu3 }
 0x7f9   : > { %6135 = vst [vmem:[%s9100_s15 + $0x28] sm:$0xff] %v6079_v32   ;;  %v4471_v47 = vadd.f32 %v9049_v8, %v4435_v1  ;;  %v4148_v62 = vpop.f32.mrf.mxu0 }
 0x7fa   : > { %v4315_v7 = vadd.f32 %v9197_v37, %v4226_v20  ;;  %4264 = vmatmul.bf16.gmra.mxu1 %v9877_v61  ;;  %v9881_v20 = vld [vmem:[#allocation72_spill] sm:$0xff] }
 0x7fb   : > { %v4503_v11 = vmax.f32 %v4471_v47, 0.0  ;;  %v9882_v61 = vld [vmem:[#allocation68_spill] sm:$0xff] }
 0x7fc   : > { %v4373_v14 = vrot.slane %v4315_v7, 2  ;;  %v3768_v43 = vadd.f32 %v9882_v61, %v8967_v63 }
 0x7fd   : > { %v4788_v29 = vadd.f32 %v4756_v4, %v4503_v11 }
 0x7fe   : > { %v4408_v24 = vsel %vm2192_vm10, %v4372_v40, %v4373_v14  ;;  %v3766_v40 = vadd.f32 %v9880_v38, %v9879_v25 }
 0x7ff   : > { %v4436_v58 = vadd.f32 %v4408_v24, %v3852_v16  ;;  %v4227_v37 = vpop.f32.mrf.mxu1  ;;  %v4691_v24 = vrot.slane %v9225_v12, 1 }
 0x800   : > { %v4228_v54 = vadd.f32 %v4227_v37, %v9216_v2  ;;  %v3855_v36 = vadd.f32 %v9881_v20, %v3766_v40  ;;  %v4326_v1 = vpop.f32.mrf.mxu2  ;;  %v9305_v15 = vpop.f32.mrf.mxu3  ;;  %v9883_v37 = vld [vmem:[#allocation74_spill] sm:$0xff]  ;;  %v9885_v20 = vld [vmem:[#allocation76_spill] sm:$0xff] }
 0x801   : > { %v4472_v52 = vadd.f32 %v9049_v8, %v4436_v58  ;;  %v3857_v55 = vadd.f32 %v9883_v37, %v3768_v43  ;;  %v4724_v11 = vsel %vm1120_vm0, %v4690_v5, %v4691_v24  ;;  %v9884_v40 = vld [vmem:[#allocation70_spill] sm:$0xff]  ;;  %v4694_v37 = vrot.slane %v9286_v49, 1 }
 0x802   : > { %v4317_v6 = vadd.f32 %v9222_v0, %v4228_v54  ;;  %v3771_v4 = vadd.f32 %v9884_v40, %v8971_v30  ;;  %v9886_v30 = vld [vmem:[#allocation73_spill] sm:$0xff] }
 0x803   : > { %v4504_v13 = vmax.f32 %v4472_v52, 0.0  ;;  %v4151_v52 = vpop.f32.mrf.mxu0 }
 0x804   : > { %v4374_v27 = vrot.slane %v4317_v6, 2 }
 0x805   : > { %v4789_v32 = vadd.f32 %v4757_v53, %v4504_v13  ;;  %v4758_v53 = vadd.f32 %v9058_v42, %v4724_v11 }
 0x806   : > { %v4407_v2 = vsel %vm2192_vm10, %v4373_v14, %v4374_v27  ;;  %v4692_v14 = vrot.slane %v9246_v41, 1 }
 0x807   : > { %v6084_v34 = vpack.c.bf16 %v4789_v32, %v4788_v29  ;;  %v4230_v0 = vpop.f32.mrf.mxu1  ;;  %v4437_v16 = vadd.f32 %v4407_v2, %v3855_v36  ;;  %v3860_v36 = vadd.f32 %v9885_v20, %v3771_v4 }
 0x808   : > { %v4231_v7 = vadd.f32 %v4230_v0, %v9237_v28  ;;  %v4329_v25 = vpop.f32.mrf.mxu2  ;;  %v9326_v13 = vpop.f32.mrf.mxu3 }
 0x809   : > { %6136 = vst [vmem:[%s9100_s15 + $0x30] sm:$0xff] %v6084_v34   ;;  %v4473_v10 = vadd.f32 %v9049_v8, %v4437_v16 }
 0x80a   : > { %v4320_v47 = vadd.f32 %v9242_v9, %v4231_v7  ;;  %v4723_v9 = vsel %vm1120_vm0, %v4691_v24, %v4692_v14  ;;  %v3773_v7 = vadd.f32 %v9886_v30, %v8975_v51  ;;  %v4693_v24 = vrot.slane %v9269_v50, 1 }
 0x80b   : > { %v4505_v41 = vmax.f32 %v4473_v10, 0.0  ;;  %v4759_v5 = vadd.f32 %v9058_v42, %v4723_v9  ;;  %v4153_v16 = vpop.f32.mrf.mxu0  ;;  %v9887_v10 = vld [vmem:[#allocation14_spill] sm:$0xff]  ;;  %v4695_v30 = vrot.slane %v9305_v15, 1 }
 0x80c   : > { %v4375_v58 = vrot.slane %v4320_v47, 2  ;;  %v4721_v50 = vsel %vm1120_vm0, %v4693_v24, %v4694_v37 }
 0x80d   : > { %v4761_v40 = vadd.f32 %v9058_v42, %v4721_v50  ;;  %v9892_v50 = vld [vmem:[#allocation42_spill] sm:$0xff] }
 0x80e   : > { %v4406_v28 = vsel %vm2192_vm10, %v4374_v27, %v4375_v58 }
 0x80f   : > { %v4438_v54 = vadd.f32 %v4406_v28, %v3857_v55  ;;  %v4232_v63 = vpop.f32.mrf.mxu1 }
 0x810   : > { %v4233_v12 = vadd.f32 %v4232_v63, %v9261_v19  ;;  %v4790_v19 = vadd.f32 %v4758_v53, %v4505_v41  ;;  %v4331_v47 = vpop.f32.mrf.mxu2  ;;  %v9337_v28 = vpop.f32.mrf.mxu3  ;;  %v9888_v41 = vld [vmem:[#allocation75_spill] sm:$0xff] }
 0x811   : > { %v4474_v6 = vadd.f32 %v9049_v8, %v4438_v54 }
 0x812   : > { %v4322_v38 = vadd.f32 %v9267_v48, %v4233_v12 }
 0x813   : > { %v4506_v27 = vmax.f32 %v4474_v6, 0.0  ;;  %v3776_v6 = vadd.f32 %v9888_v41, %v8979_v46 }
 0x814   : > { %v4376_v29 = vrot.slane %v4322_v38, 2 }
 0x815   : > { %v4791_v32 = vadd.f32 %v4759_v5, %v4506_v27  ;;  %v4156_v5 = vpop.f32.mrf.mxu0 }
 0x816   : > { %v4405_v2 = vsel %vm2192_vm10, %v4375_v58, %v4376_v29  ;;  %v3862_v58 = vadd.f32 %v9887_v10, %v3773_v7  ;;  %v4696_v7 = vrot.slane %v9326_v13, 1 }
 0x817   : > { %v6089_v34 = vpack.c.bf16 %v4791_v32, %v4790_v19  ;;  %v4235_v48 = vpop.f32.mrf.mxu1  ;;  %v4439_v61 = vadd.f32 %v4405_v2, %v3860_v36  ;;  %v9889_v19 = vld [vmem:[#allocation8_spill] sm:$0xff]  ;;  %v9890_v36 = vld [vmem:[#allocation17_spill] sm:$0xff] }
 0x818   : > { %v4236_v0 = vadd.f32 %v4235_v48, %v4146_v23  ;;  %v3865_v32 = vadd.f32 %v9889_v19, %v3776_v6  ;;  %v4719_v15 = vsel %vm1120_vm0, %v4695_v30, %v4696_v7 }
 0x819   : > { %6137 = vst [vmem:[%s9100_s15 + $0x38] sm:$0xff] %v6089_v34   ;;  %v4475_v54 = vadd.f32 %v9049_v8, %v4439_v61  ;;  %v3778_v34 = vadd.f32 %v9890_v36, %v8983_v3  ;;  %v4720_v3 = vsel %vm1120_vm0, %v4694_v37, %v4695_v30 }
 0x81a   : > { %v4325_v43 = vadd.f32 %v4324_v39, %v4236_v0  ;;  %v4722_v39 = vsel %vm1120_vm0, %v4692_v14, %v4693_v24 }
 0x81b   : > { %v4507_v49 = vmax.f32 %v4475_v54, 0.0  ;;  %v4760_v38 = vadd.f32 %v9058_v42, %v4722_v39 }
 0x81c   : > { %v4377_v55 = vrot.slane %v4325_v43, 2  ;;  %v9891_v43 = vld [vmem:[#allocation9_spill] sm:$0xff] }
 0x81d   : > { %v4792_v14 = vadd.f32 %v4760_v38, %v4507_v49  ;;  %v3867_v24 = vadd.f32 %v9891_v43, %v3778_v34  ;;  %v4762_v49 = vadd.f32 %v9058_v42, %v4720_v3  ;;  %v9893_v38 = vld [vmem:[#allocation13_spill] sm:$0xff]  ;;  %v9895_v34 = vld [vmem:[#allocation43_spill] sm:$0xff] }
 0x81e   : > { %v4404_v23 = vsel %vm2192_vm10, %v4376_v29, %v4377_v55  ;;  %v4334_v29 = vpop.f32.mrf.mxu2 }
 0x81f   : > { %v4440_v51 = vadd.f32 %v4404_v23, %v3862_v58  ;;  %v4237_v63 = vpop.f32.mrf.mxu1  ;;  %v4158_v58 = vpop.f32.mrf.mxu0 }
 0x820   : > { %v4238_v11 = vadd.f32 %v4237_v63, %v4148_v62 }
 0x821   : > { %v4476_v9 = vadd.f32 %v9049_v8, %v4440_v51 }
 0x822   : > { %v4327_v12 = vadd.f32 %v4326_v1, %v4238_v11  ;;  %v9354_v1 = vpop.f32.mrf.mxu3  ;;  %v3781_v11 = vadd.f32 %v9892_v50, %v8986_v45  ;;  %v9897_v50 = vld [vmem:[#allocation15_spill] sm:$0xff] }
 0x823   : > { %v4508_v4 = vmax.f32 %v4476_v9, 0.0  ;;  %v4763_v9 = vadd.f32 %v9058_v42, %v4719_v15 }
 0x824   : > { %v4378_v53 = vrot.slane %v4327_v12, 2 }
 0x825   : > { %v4793_v27 = vadd.f32 %v4761_v40, %v4508_v4  ;;  %v3870_v40 = vadd.f32 %v9893_v38, %v3781_v11 }
 0x826   : > { %v4403_v62 = vsel %vm2192_vm10, %v4377_v55, %v4378_v53  ;;  %v4336_v23 = vpop.f32.mrf.mxu2 }
 0x827   : > { %v6094_v2 = vpack.c.bf16 %v4793_v27, %v4792_v14  ;;  %v4240_v46 = vpop.f32.mrf.mxu1  ;;  %v4441_v48 = vadd.f32 %v4403_v62, %v3865_v32  ;;  %v9894_v27 = vld [vmem:[#allocation2_spill] sm:$0xff] }
 0x828   : > { %v4241_v20 = vadd.f32 %v4240_v46, %v4151_v52  ;;  %v3783_v45 = vadd.f32 %v9894_v27, %v8990_v21  ;;  %v4697_v46 = vrot.slane %v9337_v28, 1 }
 0x829   : > { %6138 = vst [vmem:[%s9100_s15 + $0x40] sm:$0xff] %v6094_v2   ;;  %v4477_v55 = vadd.f32 %v9049_v8, %v4441_v48 }
 0x82a   : > { %v4330_v0 = vadd.f32 %v4329_v25, %v4241_v20  ;;  %v9369_v13 = vpop.f32.mrf.mxu3  ;;  %v4698_v20 = vrot.slane %v9354_v1, 1  ;;  %v3872_v48 = vadd.f32 %v9895_v34, %v3783_v45  ;;  %v9900_v34 = vld [vmem:[#allocation3_spill] sm:$0xff] }
 0x82b   : > { %v4509_v51 = vmax.f32 %v4477_v55, 0.0 }
 0x82c   : > { %v4379_v61 = vrot.slane %v4330_v0, 2 }
 0x82d   : > { %v4794_v41 = vadd.f32 %v4762_v49, %v4509_v51 }
 0x82e   : > { %v4402_v10 = vsel %vm2192_vm10, %v4378_v53, %v4379_v61  ;;  %v4339_v19 = vpop.f32.mrf.mxu2 }
 0x82f   : > { %v4442_v52 = vadd.f32 %v4402_v10, %v3867_v24  ;;  %v4242_v54 = vpop.f32.mrf.mxu1  ;;  %v9896_v10 = vld [vmem:[#allocation16_spill] sm:$0xff] }
 0x830   : > { %v4243_v25 = vadd.f32 %v4242_v54, %v4153_v16 }
 0x831   : > { %v4478_v63 = vadd.f32 %v9049_v8, %v4442_v52  ;;  %v3786_v52 = vadd.f32 %v9896_v10, %v8993_v56  ;;  %v9898_v56 = vld [vmem:[#allocation10_spill] sm:$0xff] }
 0x832   : > { %v4332_v39 = vadd.f32 %v4331_v47, %v4243_v25  ;;  %v4161_v47 = vpop.f32.mrf.mxu0  ;;  %v9382_v2 = vpop.f32.mrf.mxu3 }
 0x833   : > { %v4510_v12 = vmax.f32 %v4478_v63, 0.0 }
 0x834   : > { %v4380_v37 = vrot.slane %v4332_v39, 2 }
 0x835   : > { %v4795_v6 = vadd.f32 %v4763_v9, %v4510_v12  ;;  %v3788_v12 = vadd.f32 %v9898_v56, %v8997_v18 }
 0x836   : > { %v4401_v16 = vsel %vm2192_vm10, %v4379_v61, %v4380_v37  ;;  %v4718_v61 = vsel %vm1120_vm0, %v4696_v7, %v4697_v46  ;;  %v4341_v25 = vpop.f32.mrf.mxu2 }
 0x837   : > { %v6099_v4 = vpack.c.bf16 %v4795_v6, %v4794_v41  ;;  %v4245_v53 = vpop.f32.mrf.mxu1  ;;  %v4443_v62 = vadd.f32 %v4401_v16, %v3870_v40  ;;  %v4764_v54 = vadd.f32 %v9058_v42, %v4718_v61  ;;  %v4699_v6 = vrot.slane %v9369_v13, 1 }
 0x838   : > { %v4246_v14 = vadd.f32 %v4245_v53, %v4156_v5  ;;  %v4700_v16 = vrot.slane %v9382_v2, 1 }
 0x839   : > { %6139 = vst [vmem:[%s9100_s15 + $0x48] sm:$0xff] %v6099_v4   ;;  %v4479_v0 = vadd.f32 %v9049_v8, %v4443_v62  ;;  %v9899_v4 = vld [vmem:[#allocation36_spill] sm:$0xff] }
 0x83a   : > { %v4335_v32 = vadd.f32 %v4334_v29, %v4246_v14  ;;  %v4717_v29 = vsel %vm1120_vm0, %v4697_v46, %v4698_v20  ;;  %v4163_v55 = vpop.f32.mrf.mxu0  ;;  %v4658_v51 = vpop.f32.mrf.mxu3  ;;  %v3877_v53 = vadd.f32 %v9899_v4, %v3788_v12  ;;  %v4715_v13 = vsel %vm1120_vm0, %v4699_v6, %v4700_v16 }
 0x83b   : > { %v4511_v28 = vmax.f32 %v4479_v0, 0.0  ;;  %v4765_v3 = vadd.f32 %v9058_v42, %v4717_v29 }
 0x83c   : > { %v4381_v36 = vrot.slane %v4335_v32, 2 }
 0x83d   : > { %v4796_v63 = vadd.f32 %v4764_v54, %v4511_v28  ;;  %v9901_v28 = vld [vmem:[#allocation23_spill] sm:$0xff] }
 0x83e   : > { %v4400_v5 = vsel %vm2192_vm10, %v4380_v37, %v4381_v36  ;;  %v4344_v27 = vpop.f32.mrf.mxu2 }
 0x83f   : > { %v4444_v30 = vadd.f32 %v4400_v5, %v3872_v48  ;;  %v4247_v21 = vpop.f32.mrf.mxu1  ;;  %v3791_v48 = vadd.f32 %v9900_v34, %v9000_v59  ;;  %v4767_v5 = vadd.f32 %v9058_v42, %v4715_v13  ;;  %v9902_v59 = vld [vmem:[#allocation38_spill] sm:$0xff] }
 0x840   : > { %v4248_v43 = vadd.f32 %v4247_v21, %v4158_v58  ;;  %v3793_v54 = vadd.f32 %v9902_v59, %v9004_v17 }
 0x841   : > { %v4480_v1 = vadd.f32 %v9049_v8, %v4444_v30 }
 0x842   : > { %v4337_v24 = vadd.f32 %v4336_v23, %v4248_v43  ;;  %v3875_v23 = vadd.f32 %v9897_v50, %v3786_v52  ;;  %v4166_v40 = vpop.f32.mrf.mxu0  ;;  %v9411_v45 = vpop.f32.mrf.mxu3 }
 0x843   : > { %v4512_v15 = vmax.f32 %v4480_v1, 0.0  ;;  %v3880_v1 = vadd.f32 %v9901_v28, %v3791_v48 }
 0x844   : > { %v4382_v7 = vrot.slane %v4337_v24, 2 }
 0x845   : > { %v4797_v39 = vadd.f32 %v4765_v3, %v4512_v15 }
 0x846   : > { %v4399_v58 = vsel %vm2192_vm10, %v4381_v36, %v4382_v7  ;;  %v4346_v10 = vpop.f32.mrf.mxu2 }
 0x847   : > { %v6104_v11 = vpack.c.bf16 %v4797_v39, %v4796_v63  ;;  %v4250_v49 = vpop.f32.mrf.mxu1  ;;  %v4445_v37 = vadd.f32 %v4399_v58, %v3875_v23  ;;  %v4702_v63 = vrot.slane %v9411_v45, 1  ;;  %v9903_v58 = vld [vmem:[#allocation25_spill] sm:$0xff] }
 0x848   : > { %v4251_v9 = vadd.f32 %v4250_v49, %v4161_v47  ;;  %v3882_v50 = vadd.f32 %v9903_v58, %v3793_v54 }
 0x849   : > { %6140 = vst [vmem:[%s9100_s15 + $0x50] sm:$0xff] %v6104_v11   ;;  %v4481_v14 = vadd.f32 %v9049_v8, %v4445_v37 }
 0x84a   : > { %v4340_v41 = vadd.f32 %v4339_v19, %v4251_v9  ;;  %v4716_v19 = vsel %vm1120_vm0, %v4698_v20, %v4699_v6  ;;  %v4168_v43 = vpop.f32.mrf.mxu0  ;;  %v4663_v3 = vpop.f32.mrf.mxu3 }
 0x84b   : > { %v4513_v2 = vmax.f32 %v4481_v14, 0.0  ;;  %v4766_v0 = vadd.f32 %v9058_v42, %v4716_v19  ;;  %v9905_v19 = vld [vmem:[#allocation27_spill] sm:$0xff] }
 0x84c   : > { %v4383_v38 = vrot.slane %v4340_v41, 2 }
 0x84d   : > { %v4798_v61 = vadd.f32 %v4766_v0, %v4513_v2 }
 0x84e   : > { %v4398_v47 = vsel %vm2192_vm10, %v4382_v7, %v4383_v38  ;;  %v4701_v7 = vrot.slane %v4658_v51, 1  ;;  %v4349_v6 = vpop.f32.mrf.mxu2 }
 0x84f   : > { %v4446_v18 = vadd.f32 %v4398_v47, %v3877_v53  ;;  %v4252_v62 = vpop.f32.mrf.mxu1 }
 0x850   : > { %v4253_v32 = vadd.f32 %v4252_v62, %v4163_v55  ;;  %v4714_v17 = vsel %vm1120_vm0, %v4700_v16, %v4701_v7  ;;  %v4713_v56 = vsel %vm1120_vm0, %v4701_v7, %v4702_v63 }
 0x851   : > { %v4482_v46 = vadd.f32 %v9049_v8, %v4446_v18  ;;  %v4768_v53 = vadd.f32 %v9058_v42, %v4714_v17  ;;  %v4769_v14 = vadd.f32 %v9058_v42, %v4713_v56  ;;  %v9909_v17 = vld [vmem:[#allocation24_spill] sm:$0xff] }
 0x852   : > { %v4342_v36 = vadd.f32 %v4341_v25, %v4253_v32  ;;  %v4171_v51 = vpop.f32.mrf.mxu0 }
 0x853   : > { %v4514_v30 = vmax.f32 %v4482_v46, 0.0 }
 0x854   : > { %v4384_v21 = vrot.slane %v4342_v36, 2  ;;  %v9906_v36 = vld [vmem:[#allocation29_spill] sm:$0xff] }
 0x855   : > { %v4799_v20 = vadd.f32 %v4767_v5, %v4514_v30  ;;  %v4703_v30 = vrot.slane %v4663_v3, 1 }
 0x856   : > { %v4397_v29 = vsel %vm2192_vm10, %v4383_v38, %v4384_v21  ;;  %v4351_v5 = vpop.f32.mrf.mxu2 }
 0x857   : > { %v6109_v24 = vpack.c.bf16 %v4799_v20, %v4798_v61  ;;  %v4255_v55 = vpop.f32.mrf.mxu1  ;;  %v4447_v15 = vadd.f32 %v4397_v29, %v3880_v1  ;;  %v9907_v20 = vld [vmem:[#allocation18_spill] sm:$0xff] }
 0x858   : > { %v4256_v52 = vadd.f32 %v4255_v55, %v4166_v40  ;;  %v9904_v40 = vld [vmem:[#allocation39_spill] sm:$0xff] }
 0x859   : > { %6141 = vst [vmem:[%s9100_s15 + $0x58] sm:$0xff] %v6109_v24   ;;  %v4483_v23 = vadd.f32 %v9049_v8, %v4447_v15  ;;  %v3796_v4 = vadd.f32 %v9904_v40, %v9007_v31  ;;  %v3798_v31 = vadd.f32 %v9906_v36, %v9011_v26  ;;  %v4712_v26 = vsel %vm1120_vm0, %v4702_v63, %v4703_v30  ;;  %v9908_v15 = vld [vmem:[#allocation30_spill] sm:$0xff]  ;;  %v9913_v36 = vld [vmem:[#allocation77_spill] sm:$0xff] }
 0x85a   : > { %v4345_v25 = vadd.f32 %v4344_v27, %v4256_v52  ;;  %v4666_v27 = vpop.f32.mrf.mxu3  ;;  %v4173_v0 = vpop.f32.mrf.mxu0  ;;  %v4770_v7 = vadd.f32 %v9058_v42, %v4712_v26 }
 0x85b   : > { %v4515_v37 = vmax.f32 %v4483_v23, 0.0  ;;  %v3885_v13 = vadd.f32 %v9905_v19, %v3796_v4  ;;  %v3887_v29 = vadd.f32 %v9907_v20, %v3798_v31 }
 0x85c   : > { %v4385_v39 = vrot.slane %v4345_v25, 2  ;;  %v3801_v25 = vadd.f32 %v9908_v15, %v9014_v44 }
 0x85d   : > { %v4800_v45 = vadd.f32 %v4768_v53, %v4515_v37 }
 0x85e   : > { %v4396_v11 = vsel %vm2192_vm10, %v4384_v21, %v4385_v39  ;;  %v4704_v21 = vrot.slane %v4666_v27, 1  ;;  %v3890_v56 = vadd.f32 %v9909_v17, %v3801_v25  ;;  %v9917_v25 = vld [vmem:[#allocation78_spill] sm:$0xff] }
 0x85f   : > { %v4448_v49 = vadd.f32 %v4396_v11, %v3882_v50  ;;  %v4257_v9 = vpop.f32.mrf.mxu1 }
 0x860   : > { %v4258_v12 = vadd.f32 %v4257_v9, %v4168_v43 }
 0x861   : > { %v4484_v41 = vadd.f32 %v9049_v8, %v4448_v49  ;;  %v4354_v49 = vpop.f32.mrf.mxu2 }
 0x862   : > { %v4347_v38 = vadd.f32 %v4346_v10, %v4258_v12  ;;  %v4668_v43 = vpop.f32.mrf.mxu3  ;;  %v4711_v10 = vsel %vm1120_vm0, %v4703_v30, %v4704_v21  ;;  %v4176_v23 = vpop.f32.mrf.mxu0  ;;  %v6316_v30 = vld [vmem:[%s9522_s6] ss:$0 sm:$0xff] }
 0x863   : > { %v4516_v16 = vmax.f32 %v4484_v41, 0.0  ;;  %v9910_v41 = vld [vmem:[#allocation26_spill] sm:$0xff]  ;;  %v4705_v40 = vrot.slane %v4668_v43, 1  ;;  %v9914_v43 = vld [vmem:[#allocation32_spill] sm:$0xff] }
 0x864   : > { %v4386_v47 = vrot.slane %v4347_v38, 2 }
 0x865   : > { %v4801_v18 = vadd.f32 %v4769_v14, %v4516_v16  ;;  %v9911_v14 = vld [vmem:[#allocation20_spill] sm:$0xff]  ;;  %v4710_v19 = vsel %vm1120_vm0, %v4704_v21, %v4705_v40 }
 0x866   : > { %v4395_v62 = vsel %vm2192_vm10, %v4385_v39, %v4386_v47  ;;  %v4771_v39 = vadd.f32 %v9058_v42, %v4711_v10  ;;  %v4772_v21 = vadd.f32 %v6316_v30, %v4710_v19  ;;  %v9916_v10 = vrot.slane %v9035_v60, 2 }
 0x867   : > { %v6114_v32 = vpack.c.bf16 %v4801_v18, %v4800_v45  ;;  %v4260_v2 = vpop.f32.mrf.mxu1  ;;  %v4449_v34 = vadd.f32 %v4395_v62, %v3885_v13 }
 0x868   : > { %v4261_v46 = vadd.f32 %v4260_v2, %v4171_v51 }
 0x869   : > { %6142 = vst [vmem:[%s9100_s15 + $0x60] sm:$0xff] %v6114_v32   ;;  %v4485_v28 = vadd.f32 %v9049_v8, %v4449_v34  ;;  %v9912_v32 = vld [vmem:[#allocation4_spill] sm:$0xff] }
 0x86a   : > { %v4350_v48 = vadd.f32 %v4349_v6, %v4261_v46  ;;  %v4671_v12 = vpop.f32.mrf.mxu3  ;;  %v3803_v6 = vadd.f32 %v9910_v41, %v9018_v35  ;;  %v4178_v45 = vpop.f32.mrf.mxu0  ;;  %v3806_v2 = vadd.f32 %v9912_v32, %v9021_v33 }
 0x86b   : > { %v4517_v59 = vmax.f32 %v4485_v28, 0.0  ;;  %v4706_v4 = vrot.slane %v4671_v12, 1  ;;  %v4356_v46 = vpop.f32.mrf.mxu2  ;;  %v9915_v28 = vld [vmem:[#allocation28_spill] sm:$0xff] }
 0x86c   : > { %v4387_v61 = vrot.slane %v4350_v48, 2  ;;  %v3892_v27 = vadd.f32 %v9911_v14, %v3803_v6  ;;  %v6315_v48 = vld [vmem:[%s9520_s4] ss:$0 sm:$0xff] }
 0x86d   : > { %v4802_v63 = vadd.f32 %v4770_v7, %v4517_v59  ;;  %v4709_v35 = vsel %vm1120_vm0, %v4705_v40, %v4706_v4  ;;  %v9918_v7 = vrot.slane %v9917_v25, 1 }
 0x86e   : > { %v4394_v1 = vsel %vm2192_vm10, %v4386_v47, %v4387_v61 }
 0x86f   : > { %v4450_v24 = vadd.f32 %v4394_v1, %v3887_v29  ;;  %v4262_v55 = vpop.f32.mrf.mxu1 }
 0x870   : > { %v4263_v52 = vadd.f32 %v4262_v55, %v4173_v0 }
 0x871   : > { %v4486_v54 = vadd.f32 %v9049_v8, %v4450_v24 }
 0x872   : > { %v4352_v3 = vadd.f32 %v4351_v5, %v4263_v52  ;;  %v4673_v31 = vpop.f32.mrf.mxu3 }
 0x873   : > { %v4518_v58 = vmax.f32 %v4486_v54, 0.0  ;;  %v4707_v20 = vrot.slane %v4673_v31, 1 }
 0x874   : > { %v4388_v50 = vrot.slane %v4352_v3, 2 }
 0x875   : > { %v4803_v11 = vadd.f32 %v4771_v39, %v4518_v58  ;;  %v4708_v15 = vsel %vm1120_vm0, %v4706_v4, %v4707_v20  ;;  %v4739_v39 = vsel %vm1120_vm0, %v4707_v20, %v9918_v7 }
 0x876   : > { %v4393_v9 = vsel %vm2192_vm10, %v4387_v61, %v4388_v50  ;;  %v4773_v61 = vadd.f32 %v6316_v30, %v4709_v35  ;;  %v4775_v60 = vadd.f32 %v6316_v30, %v4739_v39 }
 0x877   : > { %v6119_v51 = vpack.c.bf16 %v4803_v11, %v4802_v63  ;;  %v4265_v37 = vpop.f32.mrf.mxu1  ;;  %v4451_v42 = vadd.f32 %v4393_v9, %v3890_v56 }
 0x878   : > { %v4266_v44 = vadd.f32 %v4265_v37, %v4176_v23  ;;  %v4774_v23 = vadd.f32 %v6316_v30, %v4708_v15 }
 0x879   : > { %6143 = vst [vmem:[%s9100_s15 + $0x68] sm:$0xff] %v6119_v51   ;;  %v4487_v16 = vadd.f32 %v9049_v8, %v4451_v42  ;;  %v3808_v8 = vadd.f32 %v9913_v36, %v9030_v22  ;;  %v3895_v22 = vadd.f32 %v9914_v43, %v3806_v2 }
 0x87a   : > { %v4355_v38 = vadd.f32 %v4354_v49, %v4266_v44 }
 0x87b   : > { %v4519_v34 = vmax.f32 %v4487_v16, 0.0  ;;  %v3897_v1 = vadd.f32 %v9915_v28, %v3808_v8 }
 0x87c   : > { %v4389_v53 = vrot.slane %v4355_v38, 2 }
 0x87d   : > { %v4804_v24 = vadd.f32 %v4772_v21, %v4519_v34 }
 0x87e   : > { %v4392_v47 = vsel %vm2192_vm10, %v4388_v50, %v4389_v53 }
 0x87f   : > { %v4452_v18 = vadd.f32 %v4392_v47, %v3892_v27  ;;  %v4267_v62 = vpop.f32.mrf.mxu1 }
 0x880   : > { %v4268_v13 = vadd.f32 %v4267_v62, %v4178_v45 }
 0x881   : > { %v4488_v0 = vadd.f32 %v6315_v48, %v4452_v18 }
 0x882   : > { %v4357_v5 = vadd.f32 %v4356_v46, %v4268_v13 }
 0x883   : > { %v4520_v33 = vmax.f32 %v4488_v0, 0.0 }
 0x884   : > { %v4390_v29 = vrot.slane %v4357_v5, 2 }
 0x885   : > { %v4805_v55 = vadd.f32 %v4773_v61, %v4520_v33 }
 0x886   : > { %v4391_v26 = vsel %vm2192_vm10, %v4389_v53, %v4390_v29  ;;  %v4422_v52 = vsel %vm2192_vm10, %v4390_v29, %v9916_v10 }
 0x887   : > { %v6124_v59 = vpack.c.bf16 %v4805_v55, %v4804_v24  ;;  %v4453_v54 = vadd.f32 %v4391_v26, %v3895_v22  ;;  %v4454_v3 = vadd.f32 %v4422_v52, %v3897_v1 }
 0x889   : > { %6144 = vst [vmem:[%s9100_s15 + $0x70] sm:$0xff] %v6124_v59   ;;  %v4489_v58 = vadd.f32 %v6315_v48, %v4453_v54  ;;  %v4490_v50 = vadd.f32 %v6315_v48, %v4454_v3 }
 0x88b   : > { %v4521_v63 = vmax.f32 %v4489_v58, 0.0  ;;  %v4522_v11 = vmax.f32 %v4490_v50, 0.0 }
 0x88d   : > { %v4806_v49 = vadd.f32 %v4774_v23, %v4521_v63  ;;  %v4807_v9 = vadd.f32 %v4775_v60, %v4522_v11 }
 0x88f   : > { %v6129_v17 = vpack.c.bf16 %v4807_v9, %v4806_v49 }
 0x891   : > { %6145 = vst [vmem:[%s9100_s15 + $0x78] sm:$0xff] %v6129_v17  }
 0x892 PF: > { %s17_s28 = sadd.s32 1, %s6355_s28   ;;  %s9919_s24 = smov %s6347_s26 }
 0x893   : > { %p14_p10 = scmp.ge.s32.totalorder %s17_s28, 6   ;;  %s9920_s25 = smov %s6351_s27 }
 0x894   : > { %s9921_s26 = smov %s9924_s29  ;;  %s9922_s27 = smov %s9928_s30 }
 0x895   :  { %16 = sbr.rel (!%p14_p10) target bundleno = 3 (0x3), region = 82 }

</bundles_post_ra>
